<compile_context>
chip_gen: v7x
topology: tpu7x:2x2x1
jax: 0.10.0
libtpu: 0.0.40
codegen_flags: <defaults>
</compile_context>

<pallas_src>
import functools

import jax
import jax.numpy as jnp
from jax import lax
from jax.experimental import pallas as pl
from jax.experimental.pallas import tpu as pltpu


# ----------------------------------------------------------------------------- helpers
def _round_up(x: int, m: int) -> int:
    return (x + m - 1) // m * m


def _choose_tm(m: int) -> int:
    """Row-tile size: as large as useful, but keep >=2 grid steps when possible."""
    m8 = _round_up(m, 8)
    if m8 < 16:
        return m8                       # single tiny full-dim tile
    if m8 >= 1024:
        return 512                      # big tiles; grid >= 2 automatically
    return max(16, _round_up(m8 // 2, 16))   # force a 2-step parallel grid


def _im2col_bf16(x_nhwc, k: int, stride: int, pad: int):
    """Extract conv patches in bf16. Returns (patches[(N*Ho*Wo), k*k*C], Ho, Wo)."""
    n, h, w, c = x_nhwc.shape
    x = x_nhwc.astype(jnp.bfloat16)
    xp = jnp.pad(x, ((0, 0), (pad, pad), (pad, pad), (0, 0)))
    ho = (h + 2 * pad - k) // stride + 1
    wo = (w + 2 * pad - k) // stride + 1
    cols = []
    for kh in range(k):
        for kw in range(k):
            cols.append(xp[:, kh:kh + stride * ho:stride, kw:kw + stride * wo:stride, :])
    patches = jnp.stack(cols, axis=3)                      # (N, Ho, Wo, k*k, C)
    return patches.reshape(n * ho * wo, k * k * c), ho, wo


def _prep_weight(weight_oihw, kdim, kpad, o_chan, opad):
    w_mat = jnp.transpose(weight_oihw, (2, 3, 1, 0)).reshape(kdim, o_chan)  # (kh,kw,ci,co)
    w_mat = jnp.pad(w_mat, ((0, kpad - kdim), (0, opad - o_chan)))
    return w_mat.astype(jnp.bfloat16)


# ----------------------------------------------------------------------------- kernels
def _conv_bias_kernel(apply_silu: bool, a_ref, b_ref, bias_ref, o_ref):
    # a_ref: (tm, Kp) bf16 patch tile, b_ref: (Kp, Op) bf16 weights, bias: (1, Op) f32.
    acc = jnp.dot(a_ref[...], b_ref[...], preferred_element_type=jnp.float32)
    acc = acc + bias_ref[...]
    if apply_silu:
        acc = acc * jax.nn.sigmoid(acc)
    o_ref[...] = acc.astype(o_ref.dtype)


def _conv_stats_kernel(a_ref, b_ref, o_ref, stats_ref):
    # Conv (no bias: it is cancelled by the following BatchNorm) + per-tile
    # channel sum / sum-of-squares for the subsequent normalize pass.
    acc = jnp.dot(a_ref[...], b_ref[...], preferred_element_type=jnp.float32)
    o_ref[...] = acc.astype(o_ref.dtype)
    s1 = jnp.sum(acc, axis=0, keepdims=True)            # (1, Op)
    s2 = jnp.sum(acc * acc, axis=0, keepdims=True)      # (1, Op)
    stats_ref[...] = jnp.concatenate([s1, s2], axis=0)[None]   # (1, 2, Op)


def _bn_silu_kernel(inv_m: float, eps: float,
                    x_ref, stats_ref, gamma_ref, beta_ref, o_ref):
    # Reduce the (tiny) per-tile partial stats, normalize this M tile, SiLU.
    stats = stats_ref[...]                               # (n_tiles, 2, Op)
    sums = jnp.sum(stats, axis=0)                        # (2, Op)
    mean = sums[0:1, :] * inv_m                          # (1, Op)
    var = jnp.maximum(sums[1:2, :] * inv_m - mean * mean, 0.0)
    inv = lax.rsqrt(var + eps)
    y = (x_ref[...] - mean) * (inv * gamma_ref[...]) + beta_ref[...]
    o_ref[...] = (y * jax.nn.sigmoid(y)).astype(o_ref.dtype)


# ----------------------------------------------------------------------------- wrappers
def conv2d_bias_act(x_nhwc, weight_oihw, bias, *, stride, pad, apply_silu):
    """Conv2d (+bias, optional fused SiLU) for layers NOT followed by BatchNorm."""
    n = x_nhwc.shape[0]
    o_chan, _, k, _ = weight_oihw.shape
    patches, ho, wo = _im2col_bf16(x_nhwc, k, stride, pad)
    m, kdim = patches.shape
    kpad = _round_up(kdim, 128)
    opad = _round_up(o_chan, 128)
    tm = _choose_tm(m)
    m_pad = _round_up(m, tm)

    patches = jnp.pad(patches, ((0, m_pad - m), (0, kpad - kdim)))
    w_mat = _prep_weight(weight_oihw, kdim, kpad, o_chan, opad)
    bias2 = jnp.pad(bias.astype(jnp.float32), (0, opad - o_chan)).reshape(1, opad)

    out = pl.pallas_call(
        functools.partial(_conv_bias_kernel, apply_silu),
        out_shape=jax.ShapeDtypeStruct((m_pad, opad), jnp.float32),
        grid=(m_pad // tm,),
        in_specs=[
            pl.BlockSpec((tm, kpad), lambda i: (i, 0)),
            pl.BlockSpec((kpad, opad), lambda i: (0, 0)),
            pl.BlockSpec((1, opad), lambda i: (0, 0)),
        ],
        out_specs=pl.BlockSpec((tm, opad), lambda i: (i, 0)),
        compiler_params=pltpu.CompilerParams(dimension_semantics=("parallel",)),
    )(patches, w_mat, bias2)

    return out[:m, :o_chan].reshape(n, ho, wo, o_chan)


def conv2d_bn_silu(x_nhwc, weight_oihw, gamma, beta, *, stride, pad, eps=1e-5):
    """Conv2d -> BatchNorm(batch stats) -> SiLU.

    Pass 1: conv matmul + per-tile channel sum/sumsq (stats in the conv epilogue).
    Pass 2: tiled normalize + SiLU (parallel over M tiles).
    The conv bias is skipped: BN's mean subtraction cancels it exactly, which
    also keeps padded M rows exactly zero so they do not perturb the statistics.
    """
    n = x_nhwc.shape[0]
    o_chan, _, k, _ = weight_oihw.shape
    patches, ho, wo = _im2col_bf16(x_nhwc, k, stride, pad)
    m, kdim = patches.shape
    kpad = _round_up(kdim, 128)
    opad = _round_up(o_chan, 128)
    tm = _choose_tm(m)
    m_pad = _round_up(m, tm)
    n_tiles = m_pad // tm

    patches = jnp.pad(patches, ((0, m_pad - m), (0, kpad - kdim)))
    w_mat = _prep_weight(weight_oihw, kdim, kpad, o_chan, opad)

    conv_out, stats = pl.pallas_call(
        _conv_stats_kernel,
        out_shape=(
            jax.ShapeDtypeStruct((m_pad, opad), jnp.float32),
            jax.ShapeDtypeStruct((n_tiles, 2, opad), jnp.float32),
        ),
        grid=(n_tiles,),
        in_specs=[
            pl.BlockSpec((tm, kpad), lambda i: (i, 0)),
            pl.BlockSpec((kpad, opad), lambda i: (0, 0)),
        ],
        out_specs=(
            pl.BlockSpec((tm, opad), lambda i: (i, 0)),
            pl.BlockSpec((1, 2, opad), lambda i: (i, 0, 0)),
        ),
        compiler_params=pltpu.CompilerParams(dimension_semantics=("parallel",)),
    )(patches, w_mat)

    gamma2 = jnp.pad(gamma.astype(jnp.float32), (0, opad - o_chan)).reshape(1, opad)
    beta2 = jnp.pad(beta.astype(jnp.float32), (0, opad - o_chan)).reshape(1, opad)

    out = pl.pallas_call(
        functools.partial(_bn_silu_kernel, 1.0 / m, eps),
        out_shape=jax.ShapeDtypeStruct((m_pad, opad), jnp.float32),
        grid=(n_tiles,),
        in_specs=[
            pl.BlockSpec((tm, opad), lambda i: (i, 0)),
            pl.BlockSpec((n_tiles, 2, opad), lambda i: (0, 0, 0)),
            pl.BlockSpec((1, opad), lambda i: (0, 0)),
            pl.BlockSpec((1, opad), lambda i: (0, 0)),
        ],
        out_specs=pl.BlockSpec((tm, opad), lambda i: (i, 0)),
        compiler_params=pltpu.CompilerParams(dimension_semantics=("parallel",)),
    )(conv_out, stats, gamma2, beta2)

    return out[:m, :o_chan].reshape(n, ho, wo, o_chan)


# ----------------------------------------------------------------------------- model
def init_params(key, n_channels_init=8, in_chan=3, out_chan=4, num_layers_main=3):
    def conv_init_w(k, o, i, ksz):
        return (jax.random.normal(k, (o, i, ksz, ksz), jnp.float32)
                / jnp.sqrt(float(i * ksz * ksz)))

    keys = iter(jax.random.split(key, 64))
    params = {
        "conv_init": {
            "w": conv_init_w(next(keys), n_channels_init, in_chan, 7),
            "b": 0.1 * jax.random.normal(next(keys), (n_channels_init,), jnp.float32),
        },
        "blocks": [],
    }
    for i in range(num_layers_main):
        c = n_channels_init << i
        blk = {
            "conv1_w": conv_init_w(next(keys), 2 * c, c, 3),
            "conv1_b": 0.1 * jax.random.normal(next(keys), (2 * c,), jnp.float32),
            "bn1_gamma": 1.0 + 0.1 * jax.random.normal(next(keys), (2 * c,), jnp.float32),
            "bn1_beta": 0.1 * jax.random.normal(next(keys), (2 * c,), jnp.float32),
            "conv2_w": conv_init_w(next(keys), 2 * c, 2 * c, 3),
            "conv2_b": 0.1 * jax.random.normal(next(keys), (2 * c,), jnp.float32),
            "bn2_gamma": 1.0 + 0.1 * jax.random.normal(next(keys), (2 * c,), jnp.float32),
            "bn2_beta": 0.1 * jax.random.normal(next(keys), (2 * c,), jnp.float32),
        }
        params["blocks"].append(blk)
    c_last = n_channels_init << num_layers_main
    params["last"] = {
        "w": conv_init_w(next(keys), out_chan, c_last, 3),
        "b": 0.1 * jax.random.normal(next(keys), (out_chan,), jnp.float32),
    }
    return params


def encoder_forward_pallas(params, x_nchw):
    x = jnp.transpose(x_nchw, (0, 2, 3, 1))  # NCHW -> NHWC internal layout
    p = params["conv_init"]
    x = conv2d_bias_act(x, p["w"], p["b"], stride=1, pad=3, apply_silu=True)
    for blk in params["blocks"]:
        # conv biases (conv1_b/conv2_b) are mathematically cancelled by the
        # following BatchNorm -> intentionally not applied.
        x = conv2d_bn_silu(x, blk["conv1_w"], blk["bn1_gamma"], blk["bn1_beta"],
                           stride=1, pad=1)
        x = conv2d_bn_silu(x, blk["conv2_w"], blk["bn2_gamma"], blk["bn2_beta"],
                           stride=2, pad=1)
    p = params["last"]
    x = conv2d_bias_act(x, p["w"], p["b"], stride=1, pad=1, apply_silu=False)
    return jnp.transpose(x, (0, 3, 1, 2))    # back to NCHW


# ----------------------------------------------------------------------------- reference (plain JAX, validation only)
def encoder_forward_ref(params, x):
    def conv(x, w, b, stride, pad):
        y = lax.conv_general_dilated(
            x, w, (stride, stride), [(pad, pad), (pad, pad)],
            dimension_numbers=("NCHW", "OIHW", "NCHW"),
            precision=lax.Precision.HIGHEST)
        return y + b[None, :, None, None]

    def bn(x, g, bt, eps=1e-5):
        m = jnp.mean(x, axis=(0, 2, 3), keepdims=True)
        v = jnp.mean((x - m) ** 2, axis=(0, 2, 3), keepdims=True)
        return (x - m) * lax.rsqrt(v + eps) * g[None, :, None, None] + bt[None, :, None, None]

    silu = lambda z: z * jax.nn.sigmoid(z)

    p = params["conv_init"]
    x = silu(conv(x, p["w"], p["b"], 1, 3))
    for blk in params["blocks"]:
        x = silu(bn(conv(x, blk["conv1_w"], blk["conv1_b"], 1, 1), blk["bn1_gamma"], blk["bn1_beta"]))
        x = silu(bn(conv(x, blk["conv2_w"], blk["conv2_b"], 2, 1), blk["bn2_gamma"], blk["bn2_beta"]))
    p = params["last"]
    return conv(x, p["w"], p["b"], 1, 1)


# ----------------------------------------------------------------------------- main
if __name__ == "__main__":
    key = jax.random.PRNGKey(0)
    k_param, k_x = jax.random.split(key)

    params = init_params(k_param, n_channels_init=8, in_chan=3, out_chan=4, num_layers_main=3)
    x = jax.random.normal(k_x, (2, 3, 16, 16), jnp.float32)   # NCHW, like PyTorch

    fwd = jax.jit(encoder_forward_pallas)
    out = jax.block_until_ready(fwd(params, x))

    assert out.shape == (2, 4, 2, 2), out.shape

    ref = jax.block_until_ready(encoder_forward_ref(params, x))
    # Tolerance accounts for bf16 MXU operands (f32 accumulation) vs the f32
    # HIGHEST-precision reference, compounded over 8 conv layers.
    assert jnp.allclose(out, ref, atol=5e-2, rtol=5e-2), (
        float(jnp.max(jnp.abs(out - ref))))

    print("KERNEL_OK")
</pallas_src>

<mosaic_0001>
module attributes {stable_mosaic.version = 11 : i64} {
  func.func @_conv_bias_kernel(%arg0: i32, %arg1: memref<256x256xbf16, #tpu.memory_space<vmem>>, %arg2: memref<256x128xbf16, #tpu.memory_space<vmem>>, %arg3: memref<1x128xf32, #tpu.memory_space<vmem>>, %arg4: memref<256x128xf32, #tpu.memory_space<vmem>>) attributes {dimension_semantics = [#tpu.dimension_semantics<parallel>], iteration_bounds = array<i64: 2>, scalar_prefetch = 0 : i64, scratch_operands = 0 : i64, tpu.core_type = #tpu.core_type<tc>, window_params = [{transform_indices = @transform_0, window_bounds = array<i64: 256, 256>}, {pipeline_mode = #tpu.pipeline_mode<synchronous>, transform_indices = @transform_1, window_bounds = array<i64: 256, 128>}, {pipeline_mode = #tpu.pipeline_mode<synchronous>, transform_indices = @transform_2, window_bounds = array<i64: 1, 128>}, {transform_indices = @transform_3, window_bounds = array<i64: 256, 128>}]} {
    %c0 = arith.constant 0 : index
    %c0_0 = arith.constant 0 : index
    %0 = vector.load %arg1[%c0, %c0_0] : memref<256x256xbf16, #tpu.memory_space<vmem>>, vector<256x256xbf16>
    %c0_1 = arith.constant 0 : index
    %c0_2 = arith.constant 0 : index
    %1 = vector.load %arg2[%c0_1, %c0_2] : memref<256x128xbf16, #tpu.memory_space<vmem>>, vector<256x128xbf16>
    %cst = arith.constant dense<0.000000e+00> : vector<256x128xf32>
    %2 = tpu.matmul %0, %1, %cst {dimension_numbers = #tpu.dot_dimension_numbers<[1], [0], [0], [1], [0, 0, 1, 1], [], []>} : vector<256x256xbf16>, vector<256x128xbf16>, vector<256x128xf32> -> vector<256x128xf32>
    %c0_3 = arith.constant 0 : index
    %c0_4 = arith.constant 0 : index
    %3 = vector.load %arg3[%c0_3, %c0_4] : memref<1x128xf32, #tpu.memory_space<vmem>>, vector<1x128xf32>
    %4 = vector.broadcast %3 : vector<1x128xf32> to vector<256x128xf32>
    %5 = arith.addf %2, %4 : vector<256x128xf32>
    %6 = arith.negf %5 : vector<256x128xf32>
    %7 = math.exp %6 : vector<256x128xf32>
    %cst_5 = arith.constant 1.000000e+00 : f32
    %8 = vector.broadcast %cst_5 : f32 to vector<256x128xf32>
    %9 = arith.addf %8, %7 : vector<256x128xf32>
    %10 = arith.divf %8, %9 : vector<256x128xf32>
    %11 = arith.mulf %5, %10 : vector<256x128xf32>
    %c0_6 = arith.constant 0 : index
    %c0_7 = arith.constant 0 : index
    %12 = vector.load %arg4[%c0_6, %c0_7] : memref<256x128xf32, #tpu.memory_space<vmem>>, vector<256x128xf32>
    tpu.vector_store %arg4[%c0_6, %c0_7], %11 {strides = array<i32>} : memref<256x128xf32, #tpu.memory_space<vmem>>, vector<256x128xf32>,
    return
  }
  func.func @transform_0(%arg0: i32) -> (i32, i32) {
    %c0_i32 = arith.constant 0 : i32
    %c0_i32_0 = arith.constant 0 : i32
    return %arg0, %c0_i32 : i32, i32
  }
  func.func @transform_1(%arg0: i32) -> (i32, i32) {
    %c0_i32 = arith.constant 0 : i32
    %c0_i32_0 = arith.constant 0 : i32
    %c0_i32_1 = arith.constant 0 : i32
    return %c0_i32, %c0_i32_0 : i32, i32
  }
  func.func @transform_2(%arg0: i32) -> (i32, i32) {
    %c0_i32 = arith.constant 0 : i32
    %c0_i32_0 = arith.constant 0 : i32
    %c0_i32_1 = arith.constant 0 : i32
    return %c0_i32, %c0_i32_0 : i32, i32
  }
  func.func @transform_3(%arg0: i32) -> (i32, i32) {
    %c0_i32 = arith.constant 0 : i32
    %c0_i32_0 = arith.constant 0 : i32
    return %arg0, %c0_i32 : i32, i32
  }
}

module attributes {stable_mosaic.version = 11 : i64} {
  func.func @_bn_silu_kernel(%arg0: i32, %arg1: memref<256x128xf32, #tpu.memory_space<vmem>>, %arg2: memref<2x2x128xf32, #tpu.memory_space<vmem>>, %arg3: memref<1x128xf32, #tpu.memory_space<vmem>>, %arg4: memref<1x128xf32, #tpu.memory_space<vmem>>, %arg5: memref<256x128xf32, #tpu.memory_space<vmem>>) attributes {dimension_semantics = [#tpu.dimension_semantics<parallel>], iteration_bounds = array<i64: 2>, scalar_prefetch = 0 : i64, scratch_operands = 0 : i64, tpu.core_type = #tpu.core_type<tc>, window_params = [{transform_indices = @transform_0, window_bounds = array<i64: 256, 128>}, {pipeline_mode = #tpu.pipeline_mode<synchronous>, transform_indices = @transform_1, window_bounds = array<i64: 2, 2, 128>}, {pipeline_mode = #tpu.pipeline_mode<synchronous>, transform_indices = @transform_2, window_bounds = array<i64: 1, 128>}, {pipeline_mode = #tpu.pipeline_mode<synchronous>, transform_indices = @transform_3, window_bounds = array<i64: 1, 128>}, {transform_indices = @transform_4, window_bounds = array<i64: 256, 128>}]} {
    %c0 = arith.constant 0 : index
    %c0_0 = arith.constant 0 : index
    %c0_1 = arith.constant 0 : index
    %0 = vector.load %arg2[%c0, %c0_0, %c0_1] : memref<2x2x128xf32, #tpu.memory_space<vmem>>, vector<2x2x128xf32>
    %cst = arith.constant dense<0.000000e+00> : vector<2x128xf32>
    %1 = vector.multi_reduction <add>, %0, %cst [0] : vector<2x2x128xf32> to vector<2x128xf32>
    %2 = vector.extract_strided_slice %1 {offsets = [0, 0], sizes = [1, 128], strides = [1, 1]} : vector<2x128xf32> to vector<1x128xf32>
    %cst_2 = arith.constant 0.001953125 : f32
    %3 = vector.broadcast %cst_2 : f32 to vector<1x128xf32>
    %4 = arith.mulf %2, %3 : vector<1x128xf32>
    %5 = vector.extract_strided_slice %1 {offsets = [1, 0], sizes = [1, 128], strides = [1, 1]} : vector<2x128xf32> to vector<1x128xf32>
    %cst_3 = arith.constant 0.001953125 : f32
    %6 = vector.broadcast %cst_3 : f32 to vector<1x128xf32>
    %7 = arith.mulf %5, %6 : vector<1x128xf32>
    %8 = arith.mulf %4, %4 : vector<1x128xf32>
    %9 = arith.subf %7, %8 : vector<1x128xf32>
    %cst_4 = arith.constant 0.000000e+00 : f32
    %10 = vector.broadcast %cst_4 : f32 to vector<1x128xf32>
    %11 = arith.maximumf %9, %10 : vector<1x128xf32>
    %cst_5 = arith.constant 9.99999974E-6 : f32
    %12 = vector.broadcast %cst_5 : f32 to vector<1x128xf32>
    %13 = arith.addf %11, %12 : vector<1x128xf32>
    %14 = math.rsqrt %13 : vector<1x128xf32>
    %c0_6 = arith.constant 0 : index
    %c0_7 = arith.constant 0 : index
    %15 = vector.load %arg1[%c0_6, %c0_7] : memref<256x128xf32, #tpu.memory_space<vmem>>, vector<256x128xf32>
    %16 = vector.broadcast %4 : vector<1x128xf32> to vector<256x128xf32>
    %17 = arith.subf %15, %16 : vector<256x128xf32>
    %c0_8 = arith.constant 0 : index
    %c0_9 = arith.constant 0 : index
    %18 = vector.load %arg3[%c0_8, %c0_9] : memref<1x128xf32, #tpu.memory_space<vmem>>, vector<1x128xf32>
    %19 = arith.mulf %14, %18 : vector<1x128xf32>
    %20 = vector.broadcast %19 : vector<1x128xf32> to vector<256x128xf32>
    %21 = arith.mulf %17, %20 : vector<256x128xf32>
    %c0_10 = arith.constant 0 : index
    %c0_11 = arith.constant 0 : index
    %22 = vector.load %arg4[%c0_10, %c0_11] : memref<1x128xf32, #tpu.memory_space<vmem>>, vector<1x128xf32>
    %23 = vector.broadcast %22 : vector<1x128xf32> to vector<256x128xf32>
    %24 = arith.addf %21, %23 : vector<256x128xf32>
    %25 = arith.negf %24 : vector<256x128xf32>
    %26 = math.exp %25 : vector<256x128xf32>
    %cst_12 = arith.constant 1.000000e+00 : f32
    %27 = vector.broadcast %cst_12 : f32 to vector<256x128xf32>
    %28 = arith.addf %27, %26 : vector<256x128xf32>
    %29 = arith.divf %27, %28 : vector<256x128xf32>
    %30 = arith.mulf %24, %29 : vector<256x128xf32>
    %c0_13 = arith.constant 0 : index
    %c0_14 = arith.constant 0 : index
    %31 = vector.load %arg5[%c0_13, %c0_14] : memref<256x128xf32, #tpu.memory_space<vmem>>, vector<256x128xf32>
    tpu.vector_store %arg5[%c0_13, %c0_14], %30 {strides = array<i32>} : memref<256x128xf32, #tpu.memory_space<vmem>>, vector<256x128xf32>,
    return
  }
  func.func @transform_0(%arg0: i32) -> (i32, i32) {
    %c0_i32 = arith.constant 0 : i32
    %c0_i32_0 = arith.constant 0 : i32
    return %arg0, %c0_i32 : i32, i32
  }
  func.func @transform_1(%arg0: i32) -> (i32, i32, i32) {
    %c0_i32 = arith.constant 0 : i32
    %c0_i32_0 = arith.constant 0 : i32
    %c0_i32_1 = arith.constant 0 : i32
    %c0_i32_2 = arith.constant 0 : i32
    return %c0_i32, %c0_i32_0, %c0_i32_1 : i32, i32, i32
  }
  func.func @transform_2(%arg0: i32) -> (i32, i32) {
    %c0_i32 = arith.constant 0 : i32
    %c0_i32_0 = arith.constant 0 : i32
    %c0_i32_1 = arith.constant 0 : i32
    return %c0_i32, %c0_i32_0 : i32, i32
  }
  func.func @transform_3(%arg0: i32) -> (i32, i32) {
    %c0_i32 = arith.constant 0 : i32
    %c0_i32_0 = arith.constant 0 : i32
    %c0_i32_1 = arith.constant 0 : i32
    return %c0_i32, %c0_i32_0 : i32, i32
  }
  func.func @transform_4(%arg0: i32) -> (i32, i32) {
    %c0_i32 = arith.constant 0 : i32
    %c0_i32_0 = arith.constant 0 : i32
    return %arg0, %c0_i32 : i32, i32
  }
}

module attributes {stable_mosaic.version = 11 : i64} {
  func.func @_conv_stats_kernel(%arg0: i32, %arg1: memref<256x128xbf16, #tpu.memory_space<vmem>>, %arg2: memref<128x128xbf16, #tpu.memory_space<vmem>>, %arg3: memref<256x128xf32, #tpu.memory_space<vmem>>, %arg4: memref<1x2x128xf32, #tpu.memory_space<vmem>>) attributes {dimension_semantics = [#tpu.dimension_semantics<parallel>], iteration_bounds = array<i64: 2>, scalar_prefetch = 0 : i64, scratch_operands = 0 : i64, tpu.core_type = #tpu.core_type<tc>, window_params = [{transform_indices = @transform_0, window_bounds = array<i64: 256, 128>}, {pipeline_mode = #tpu.pipeline_mode<synchronous>, transform_indices = @transform_1, window_bounds = array<i64: 128, 128>}, {transform_indices = @transform_2, window_bounds = array<i64: 256, 128>}, {transform_indices = @transform_3, window_bounds = array<i64: 1, 2, 128>}]} {
    %c0 = arith.constant 0 : index
    %c0_0 = arith.constant 0 : index
    %0 = vector.load %arg1[%c0, %c0_0] : memref<256x128xbf16, #tpu.memory_space<vmem>>, vector<256x128xbf16>
    %c0_1 = arith.constant 0 : index
    %c0_2 = arith.constant 0 : index
    %1 = vector.load %arg2[%c0_1, %c0_2] : memref<128x128xbf16, #tpu.memory_space<vmem>>, vector<128x128xbf16>
    %cst = arith.constant dense<0.000000e+00> : vector<256x128xf32>
    %2 = tpu.matmul %0, %1, %cst {dimension_numbers = #tpu.dot_dimension_numbers<[1], [0], [0], [1], [0, 0, 1, 1], [], []>} : vector<256x128xbf16>, vector<128x128xbf16>, vector<256x128xf32> -> vector<256x128xf32>
    %c0_3 = arith.constant 0 : index
    %c0_4 = arith.constant 0 : index
    %3 = vector.load %arg3[%c0_3, %c0_4] : memref<256x128xf32, #tpu.memory_space<vmem>>, vector<256x128xf32>
    tpu.vector_store %arg3[%c0_3, %c0_4], %2 {strides = array<i32>} : memref<256x128xf32, #tpu.memory_space<vmem>>, vector<256x128xf32>,
    %cst_5 = arith.constant dense<0.000000e+00> : vector<128xf32>
    %4 = vector.multi_reduction <add>, %2, %cst_5 [0] : vector<256x128xf32> to vector<128xf32>
    %5 = vector.shape_cast %4 : vector<128xf32> to vector<1x128xf32>
    %6 = arith.mulf %2, %2 : vector<256x128xf32>
    %cst_6 = arith.constant dense<0.000000e+00> : vector<128xf32>
    %7 = vector.multi_reduction <add>, %6, %cst_6 [0] : vector<256x128xf32> to vector<128xf32>
    %8 = vector.shape_cast %7 : vector<128xf32> to vector<1x128xf32>
    %9 = tpu.concatenate %5, %8 in 0 : vector<1x128xf32>, vector<1x128xf32> -> vector<2x128xf32>
    %10 = vector.shape_cast %9 : vector<2x128xf32> to vector<1x2x128xf32>
    %c0_7 = arith.constant 0 : index
    %c0_8 = arith.constant 0 : index
    %c0_9 = arith.constant 0 : index
    %11 = vector.load %arg4[%c0_7, %c0_8, %c0_9] : memref<1x2x128xf32, #tpu.memory_space<vmem>>, vector<1x2x128xf32>
    tpu.vector_store %arg4[%c0_7, %c0_8, %c0_9], %10 {strides = array<i32>} : memref<1x2x128xf32, #tpu.memory_space<vmem>>, vector<1x2x128xf32>,
    return
  }
  func.func @transform_0(%arg0: i32) -> (i32, i32) {
    %c0_i32 = arith.constant 0 : i32
    %c0_i32_0 = arith.constant 0 : i32
    return %arg0, %c0_i32 : i32, i32
  }
  func.func @transform_1(%arg0: i32) -> (i32, i32) {
    %c0_i32 = arith.constant 0 : i32
    %c0_i32_0 = arith.constant 0 : i32
    %c0_i32_1 = arith.constant 0 : i32
    return %c0_i32, %c0_i32_0 : i32, i32
  }
  func.func @transform_2(%arg0: i32) -> (i32, i32) {
    %c0_i32 = arith.constant 0 : i32
    %c0_i32_0 = arith.constant 0 : i32
    return %arg0, %c0_i32 : i32, i32
  }
  func.func @transform_3(%arg0: i32) -> (i32, i32, i32) {
    %c0_i32 = arith.constant 0 : i32
    %c0_i32_0 = arith.constant 0 : i32
    %c0_i32_1 = arith.constant 0 : i32
    return %arg0, %c0_i32, %c0_i32_0 : i32, i32, i32
  }
}

module attributes {stable_mosaic.version = 11 : i64} {
  func.func @_conv_stats_kernel(%arg0: i32, %arg1: memref<64x256xbf16, #tpu.memory_space<vmem>>, %arg2: memref<256x128xbf16, #tpu.memory_space<vmem>>, %arg3: memref<64x128xf32, #tpu.memory_space<vmem>>, %arg4: memref<1x2x128xf32, #tpu.memory_space<vmem>>) attributes {dimension_semantics = [#tpu.dimension_semantics<parallel>], iteration_bounds = array<i64: 2>, scalar_prefetch = 0 : i64, scratch_operands = 0 : i64, tpu.core_type = #tpu.core_type<tc>, window_params = [{transform_indices = @transform_0, window_bounds = array<i64: 64, 256>}, {pipeline_mode = #tpu.pipeline_mode<synchronous>, transform_indices = @transform_1, window_bounds = array<i64: 256, 128>}, {transform_indices = @transform_2, window_bounds = array<i64: 64, 128>}, {transform_indices = @transform_3, window_bounds = array<i64: 1, 2, 128>}]} {
    %c0 = arith.constant 0 : index
    %c0_0 = arith.constant 0 : index
    %0 = vector.load %arg1[%c0, %c0_0] : memref<64x256xbf16, #tpu.memory_space<vmem>>, vector<64x256xbf16>
    %c0_1 = arith.constant 0 : index
    %c0_2 = arith.constant 0 : index
    %1 = vector.load %arg2[%c0_1, %c0_2] : memref<256x128xbf16, #tpu.memory_space<vmem>>, vector<256x128xbf16>
    %cst = arith.constant dense<0.000000e+00> : vector<64x128xf32>
    %2 = tpu.matmul %0, %1, %cst {dimension_numbers = #tpu.dot_dimension_numbers<[1], [0], [0], [1], [0, 0, 1, 1], [], []>} : vector<64x256xbf16>, vector<256x128xbf16>, vector<64x128xf32> -> vector<64x128xf32>
    %c0_3 = arith.constant 0 : index
    %c0_4 = arith.constant 0 : index
    %3 = vector.load %arg3[%c0_3, %c0_4] : memref<64x128xf32, #tpu.memory_space<vmem>>, vector<64x128xf32>
    tpu.vector_store %arg3[%c0_3, %c0_4], %2 {strides = array<i32>} : memref<64x128xf32, #tpu.memory_space<vmem>>, vector<64x128xf32>,
    %cst_5 = arith.constant dense<0.000000e+00> : vector<128xf32>
    %4 = vector.multi_reduction <add>, %2, %cst_5 [0] : vector<64x128xf32> to vector<128xf32>
    %5 = vector.shape_cast %4 : vector<128xf32> to vector<1x128xf32>
    %6 = arith.mulf %2, %2 : vector<64x128xf32>
    %cst_6 = arith.constant dense<0.000000e+00> : vector<128xf32>
    %7 = vector.multi_reduction <add>, %6, %cst_6 [0] : vector<64x128xf32> to vector<128xf32>
    %8 = vector.shape_cast %7 : vector<128xf32> to vector<1x128xf32>
    %9 = tpu.concatenate %5, %8 in 0 : vector<1x128xf32>, vector<1x128xf32> -> vector<2x128xf32>
    %10 = vector.shape_cast %9 : vector<2x128xf32> to vector<1x2x128xf32>
    %c0_7 = arith.constant 0 : index
    %c0_8 = arith.constant 0 : index
    %c0_9 = arith.constant 0 : index
    %11 = vector.load %arg4[%c0_7, %c0_8, %c0_9] : memref<1x2x128xf32, #tpu.memory_space<vmem>>, vector<1x2x128xf32>
    tpu.vector_store %arg4[%c0_7, %c0_8, %c0_9], %10 {strides = array<i32>} : memref<1x2x128xf32, #tpu.memory_space<vmem>>, vector<1x2x128xf32>,
    return
  }
  func.func @transform_0(%arg0: i32) -> (i32, i32) {
    %c0_i32 = arith.constant 0 : i32
    %c0_i32_0 = arith.constant 0 : i32
    return %arg0, %c0_i32 : i32, i32
  }
  func.func @transform_1(%arg0: i32) -> (i32, i32) {
    %c0_i32 = arith.constant 0 : i32
    %c0_i32_0 = arith.constant 0 : i32
    %c0_i32_1 = arith.constant 0 : i32
    return %c0_i32, %c0_i32_0 : i32, i32
  }
  func.func @transform_2(%arg0: i32) -> (i32, i32) {
    %c0_i32 = arith.constant 0 : i32
    %c0_i32_0 = arith.constant 0 : i32
    return %arg0, %c0_i32 : i32, i32
  }
  func.func @transform_3(%arg0: i32) -> (i32, i32, i32) {
    %c0_i32 = arith.constant 0 : i32
    %c0_i32_0 = arith.constant 0 : i32
    %c0_i32_1 = arith.constant 0 : i32
    return %arg0, %c0_i32, %c0_i32_0 : i32, i32, i32
  }
}

module attributes {stable_mosaic.version = 11 : i64} {
  func.func @_bn_silu_kernel(%arg0: i32, %arg1: memref<64x128xf32, #tpu.memory_space<vmem>>, %arg2: memref<2x2x128xf32, #tpu.memory_space<vmem>>, %arg3: memref<1x128xf32, #tpu.memory_space<vmem>>, %arg4: memref<1x128xf32, #tpu.memory_space<vmem>>, %arg5: memref<64x128xf32, #tpu.memory_space<vmem>>) attributes {dimension_semantics = [#tpu.dimension_semantics<parallel>], iteration_bounds = array<i64: 2>, scalar_prefetch = 0 : i64, scratch_operands = 0 : i64, tpu.core_type = #tpu.core_type<tc>, window_params = [{transform_indices = @transform_0, window_bounds = array<i64: 64, 128>}, {pipeline_mode = #tpu.pipeline_mode<synchronous>, transform_indices = @transform_1, window_bounds = array<i64: 2, 2, 128>}, {pipeline_mode = #tpu.pipeline_mode<synchronous>, transform_indices = @transform_2, window_bounds = array<i64: 1, 128>}, {pipeline_mode = #tpu.pipeline_mode<synchronous>, transform_indices = @transform_3, window_bounds = array<i64: 1, 128>}, {transform_indices = @transform_4, window_bounds = array<i64: 64, 128>}]} {
    %c0 = arith.constant 0 : index
    %c0_0 = arith.constant 0 : index
    %c0_1 = arith.constant 0 : index
    %0 = vector.load %arg2[%c0, %c0_0, %c0_1] : memref<2x2x128xf32, #tpu.memory_space<vmem>>, vector<2x2x128xf32>
    %cst = arith.constant dense<0.000000e+00> : vector<2x128xf32>
    %1 = vector.multi_reduction <add>, %0, %cst [0] : vector<2x2x128xf32> to vector<2x128xf32>
    %2 = vector.extract_strided_slice %1 {offsets = [0, 0], sizes = [1, 128], strides = [1, 1]} : vector<2x128xf32> to vector<1x128xf32>
    %cst_2 = arith.constant 7.812500e-03 : f32
    %3 = vector.broadcast %cst_2 : f32 to vector<1x128xf32>
    %4 = arith.mulf %2, %3 : vector<1x128xf32>
    %5 = vector.extract_strided_slice %1 {offsets = [1, 0], sizes = [1, 128], strides = [1, 1]} : vector<2x128xf32> to vector<1x128xf32>
    %cst_3 = arith.constant 7.812500e-03 : f32
    %6 = vector.broadcast %cst_3 : f32 to vector<1x128xf32>
    %7 = arith.mulf %5, %6 : vector<1x128xf32>
    %8 = arith.mulf %4, %4 : vector<1x128xf32>
    %9 = arith.subf %7, %8 : vector<1x128xf32>
    %cst_4 = arith.constant 0.000000e+00 : f32
    %10 = vector.broadcast %cst_4 : f32 to vector<1x128xf32>
    %11 = arith.maximumf %9, %10 : vector<1x128xf32>
    %cst_5 = arith.constant 9.99999974E-6 : f32
    %12 = vector.broadcast %cst_5 : f32 to vector<1x128xf32>
    %13 = arith.addf %11, %12 : vector<1x128xf32>
    %14 = math.rsqrt %13 : vector<1x128xf32>
    %c0_6 = arith.constant 0 : index
    %c0_7 = arith.constant 0 : index
    %15 = vector.load %arg1[%c0_6, %c0_7] : memref<64x128xf32, #tpu.memory_space<vmem>>, vector<64x128xf32>
    %16 = vector.broadcast %4 : vector<1x128xf32> to vector<64x128xf32>
    %17 = arith.subf %15, %16 : vector<64x128xf32>
    %c0_8 = arith.constant 0 : index
    %c0_9 = arith.constant 0 : index
    %18 = vector.load %arg3[%c0_8, %c0_9] : memref<1x128xf32, #tpu.memory_space<vmem>>, vector<1x128xf32>
    %19 = arith.mulf %14, %18 : vector<1x128xf32>
    %20 = vector.broadcast %19 : vector<1x128xf32> to vector<64x128xf32>
    %21 = arith.mulf %17, %20 : vector<64x128xf32>
    %c0_10 = arith.constant 0 : index
    %c0_11 = arith.constant 0 : index
    %22 = vector.load %arg4[%c0_10, %c0_11] : memref<1x128xf32, #tpu.memory_space<vmem>>, vector<1x128xf32>
    %23 = vector.broadcast %22 : vector<1x128xf32> to vector<64x128xf32>
    %24 = arith.addf %21, %23 : vector<64x128xf32>
    %25 = arith.negf %24 : vector<64x128xf32>
    %26 = math.exp %25 : vector<64x128xf32>
    %cst_12 = arith.constant 1.000000e+00 : f32
    %27 = vector.broadcast %cst_12 : f32 to vector<64x128xf32>
    %28 = arith.addf %27, %26 : vector<64x128xf32>
    %29 = arith.divf %27, %28 : vector<64x128xf32>
    %30 = arith.mulf %24, %29 : vector<64x128xf32>
    %c0_13 = arith.constant 0 : index
    %c0_14 = arith.constant 0 : index
    %31 = vector.load %arg5[%c0_13, %c0_14] : memref<64x128xf32, #tpu.memory_space<vmem>>, vector<64x128xf32>
    tpu.vector_store %arg5[%c0_13, %c0_14], %30 {strides = array<i32>} : memref<64x128xf32, #tpu.memory_space<vmem>>, vector<64x128xf32>,
    return
  }
  func.func @transform_0(%arg0: i32) -> (i32, i32) {
    %c0_i32 = arith.constant 0 : i32
    %c0_i32_0 = arith.constant 0 : i32
    return %arg0, %c0_i32 : i32, i32
  }
  func.func @transform_1(%arg0: i32) -> (i32, i32, i32) {
    %c0_i32 = arith.constant 0 : i32
    %c0_i32_0 = arith.constant 0 : i32
    %c0_i32_1 = arith.constant 0 : i32
    %c0_i32_2 = arith.constant 0 : i32
    return %c0_i32, %c0_i32_0, %c0_i32_1 : i32, i32, i32
  }
  func.func @transform_2(%arg0: i32) -> (i32, i32) {
    %c0_i32 = arith.constant 0 : i32
    %c0_i32_0 = arith.constant 0 : i32
    %c0_i32_1 = arith.constant 0 : i32
    return %c0_i32, %c0_i32_0 : i32, i32
  }
  func.func @transform_3(%arg0: i32) -> (i32, i32) {
    %c0_i32 = arith.constant 0 : i32
    %c0_i32_0 = arith.constant 0 : i32
    %c0_i32_1 = arith.constant 0 : i32
    return %c0_i32, %c0_i32_0 : i32, i32
  }
  func.func @transform_4(%arg0: i32) -> (i32, i32) {
    %c0_i32 = arith.constant 0 : i32
    %c0_i32_0 = arith.constant 0 : i32
    return %arg0, %c0_i32 : i32, i32
  }
}

module attributes {stable_mosaic.version = 11 : i64} {
  func.func @_conv_stats_kernel(%arg0: i32, %arg1: memref<16x384xbf16, #tpu.memory_space<vmem>>, %arg2: memref<384x128xbf16, #tpu.memory_space<vmem>>, %arg3: memref<16x128xf32, #tpu.memory_space<vmem>>, %arg4: memref<1x2x128xf32, #tpu.memory_space<vmem>>) attributes {dimension_semantics = [#tpu.dimension_semantics<parallel>], iteration_bounds = array<i64: 2>, scalar_prefetch = 0 : i64, scratch_operands = 0 : i64, tpu.core_type = #tpu.core_type<tc>, window_params = [{transform_indices = @transform_0, window_bounds = array<i64: 16, 384>}, {pipeline_mode = #tpu.pipeline_mode<synchronous>, transform_indices = @transform_1, window_bounds = array<i64: 384, 128>}, {transform_indices = @transform_2, window_bounds = array<i64: 16, 128>}, {transform_indices = @transform_3, window_bounds = array<i64: 1, 2, 128>}]} {
    %c0 = arith.constant 0 : index
    %c0_0 = arith.constant 0 : index
    %0 = vector.load %arg1[%c0, %c0_0] : memref<16x384xbf16, #tpu.memory_space<vmem>>, vector<16x384xbf16>
    %c0_1 = arith.constant 0 : index
    %c0_2 = arith.constant 0 : index
    %1 = vector.load %arg2[%c0_1, %c0_2] : memref<384x128xbf16, #tpu.memory_space<vmem>>, vector<384x128xbf16>
    %cst = arith.constant dense<0.000000e+00> : vector<16x128xf32>
    %2 = tpu.matmul %0, %1, %cst {dimension_numbers = #tpu.dot_dimension_numbers<[1], [0], [0], [1], [0, 0, 1, 1], [], []>} : vector<16x384xbf16>, vector<384x128xbf16>, vector<16x128xf32> -> vector<16x128xf32>
    %c0_3 = arith.constant 0 : index
    %c0_4 = arith.constant 0 : index
    %3 = vector.load %arg3[%c0_3, %c0_4] : memref<16x128xf32, #tpu.memory_space<vmem>>, vector<16x128xf32>
    tpu.vector_store %arg3[%c0_3, %c0_4], %2 {strides = array<i32>} : memref<16x128xf32, #tpu.memory_space<vmem>>, vector<16x128xf32>,
    %cst_5 = arith.constant dense<0.000000e+00> : vector<128xf32>
    %4 = vector.multi_reduction <add>, %2, %cst_5 [0] : vector<16x128xf32> to vector<128xf32>
    %5 = vector.shape_cast %4 : vector<128xf32> to vector<1x128xf32>
    %6 = arith.mulf %2, %2 : vector<16x128xf32>
    %cst_6 = arith.constant dense<0.000000e+00> : vector<128xf32>
    %7 = vector.multi_reduction <add>, %6, %cst_6 [0] : vector<16x128xf32> to vector<128xf32>
    %8 = vector.shape_cast %7 : vector<128xf32> to vector<1x128xf32>
    %9 = tpu.concatenate %5, %8 in 0 : vector<1x128xf32>, vector<1x128xf32> -> vector<2x128xf32>
    %10 = vector.shape_cast %9 : vector<2x128xf32> to vector<1x2x128xf32>
    %c0_7 = arith.constant 0 : index
    %c0_8 = arith.constant 0 : index
    %c0_9 = arith.constant 0 : index
    %11 = vector.load %arg4[%c0_7, %c0_8, %c0_9] : memref<1x2x128xf32, #tpu.memory_space<vmem>>, vector<1x2x128xf32>
    tpu.vector_store %arg4[%c0_7, %c0_8, %c0_9], %10 {strides = array<i32>} : memref<1x2x128xf32, #tpu.memory_space<vmem>>, vector<1x2x128xf32>,
    return
  }
  func.func @transform_0(%arg0: i32) -> (i32, i32) {
    %c0_i32 = arith.constant 0 : i32
    %c0_i32_0 = arith.constant 0 : i32
    return %arg0, %c0_i32 : i32, i32
  }
  func.func @transform_1(%arg0: i32) -> (i32, i32) {
    %c0_i32 = arith.constant 0 : i32
    %c0_i32_0 = arith.constant 0 : i32
    %c0_i32_1 = arith.constant 0 : i32
    return %c0_i32, %c0_i32_0 : i32, i32
  }
  func.func @transform_2(%arg0: i32) -> (i32, i32) {
    %c0_i32 = arith.constant 0 : i32
    %c0_i32_0 = arith.constant 0 : i32
    return %arg0, %c0_i32 : i32, i32
  }
  func.func @transform_3(%arg0: i32) -> (i32, i32, i32) {
    %c0_i32 = arith.constant 0 : i32
    %c0_i32_0 = arith.constant 0 : i32
    %c0_i32_1 = arith.constant 0 : i32
    return %arg0, %c0_i32, %c0_i32_0 : i32, i32, i32
  }
}

module attributes {stable_mosaic.version = 11 : i64} {
  func.func @_bn_silu_kernel(%arg0: i32, %arg1: memref<16x128xf32, #tpu.memory_space<vmem>>, %arg2: memref<2x2x128xf32, #tpu.memory_space<vmem>>, %arg3: memref<1x128xf32, #tpu.memory_space<vmem>>, %arg4: memref<1x128xf32, #tpu.memory_space<vmem>>, %arg5: memref<16x128xf32, #tpu.memory_space<vmem>>) attributes {dimension_semantics = [#tpu.dimension_semantics<parallel>], iteration_bounds = array<i64: 2>, scalar_prefetch = 0 : i64, scratch_operands = 0 : i64, tpu.core_type = #tpu.core_type<tc>, window_params = [{transform_indices = @transform_0, window_bounds = array<i64: 16, 128>}, {pipeline_mode = #tpu.pipeline_mode<synchronous>, transform_indices = @transform_1, window_bounds = array<i64: 2, 2, 128>}, {pipeline_mode = #tpu.pipeline_mode<synchronous>, transform_indices = @transform_2, window_bounds = array<i64: 1, 128>}, {pipeline_mode = #tpu.pipeline_mode<synchronous>, transform_indices = @transform_3, window_bounds = array<i64: 1, 128>}, {transform_indices = @transform_4, window_bounds = array<i64: 16, 128>}]} {
    %c0 = arith.constant 0 : index
    %c0_0 = arith.constant 0 : index
    %c0_1 = arith.constant 0 : index
    %0 = vector.load %arg2[%c0, %c0_0, %c0_1] : memref<2x2x128xf32, #tpu.memory_space<vmem>>, vector<2x2x128xf32>
    %cst = arith.constant dense<0.000000e+00> : vector<2x128xf32>
    %1 = vector.multi_reduction <add>, %0, %cst [0] : vector<2x2x128xf32> to vector<2x128xf32>
    %2 = vector.extract_strided_slice %1 {offsets = [0, 0], sizes = [1, 128], strides = [1, 1]} : vector<2x128xf32> to vector<1x128xf32>
    %cst_2 = arith.constant 3.125000e-02 : f32
    %3 = vector.broadcast %cst_2 : f32 to vector<1x128xf32>
    %4 = arith.mulf %2, %3 : vector<1x128xf32>
    %5 = vector.extract_strided_slice %1 {offsets = [1, 0], sizes = [1, 128], strides = [1, 1]} : vector<2x128xf32> to vector<1x128xf32>
    %cst_3 = arith.constant 3.125000e-02 : f32
    %6 = vector.broadcast %cst_3 : f32 to vector<1x128xf32>
    %7 = arith.mulf %5, %6 : vector<1x128xf32>
    %8 = arith.mulf %4, %4 : vector<1x128xf32>
    %9 = arith.subf %7, %8 : vector<1x128xf32>
    %cst_4 = arith.constant 0.000000e+00 : f32
    %10 = vector.broadcast %cst_4 : f32 to vector<1x128xf32>
    %11 = arith.maximumf %9, %10 : vector<1x128xf32>
    %cst_5 = arith.constant 9.99999974E-6 : f32
    %12 = vector.broadcast %cst_5 : f32 to vector<1x128xf32>
    %13 = arith.addf %11, %12 : vector<1x128xf32>
    %14 = math.rsqrt %13 : vector<1x128xf32>
    %c0_6 = arith.constant 0 : index
    %c0_7 = arith.constant 0 : index
    %15 = vector.load %arg1[%c0_6, %c0_7] : memref<16x128xf32, #tpu.memory_space<vmem>>, vector<16x128xf32>
    %16 = vector.broadcast %4 : vector<1x128xf32> to vector<16x128xf32>
    %17 = arith.subf %15, %16 : vector<16x128xf32>
    %c0_8 = arith.constant 0 : index
    %c0_9 = arith.constant 0 : index
    %18 = vector.load %arg3[%c0_8, %c0_9] : memref<1x128xf32, #tpu.memory_space<vmem>>, vector<1x128xf32>
    %19 = arith.mulf %14, %18 : vector<1x128xf32>
    %20 = vector.broadcast %19 : vector<1x128xf32> to vector<16x128xf32>
    %21 = arith.mulf %17, %20 : vector<16x128xf32>
    %c0_10 = arith.constant 0 : index
    %c0_11 = arith.constant 0 : index
    %22 = vector.load %arg4[%c0_10, %c0_11] : memref<1x128xf32, #tpu.memory_space<vmem>>, vector<1x128xf32>
    %23 = vector.broadcast %22 : vector<1x128xf32> to vector<16x128xf32>
    %24 = arith.addf %21, %23 : vector<16x128xf32>
    %25 = arith.negf %24 : vector<16x128xf32>
    %26 = math.exp %25 : vector<16x128xf32>
    %cst_12 = arith.constant 1.000000e+00 : f32
    %27 = vector.broadcast %cst_12 : f32 to vector<16x128xf32>
    %28 = arith.addf %27, %26 : vector<16x128xf32>
    %29 = arith.divf %27, %28 : vector<16x128xf32>
    %30 = arith.mulf %24, %29 : vector<16x128xf32>
    %c0_13 = arith.constant 0 : index
    %c0_14 = arith.constant 0 : index
    %31 = vector.load %arg5[%c0_13, %c0_14] : memref<16x128xf32, #tpu.memory_space<vmem>>, vector<16x128xf32>
    tpu.vector_store %arg5[%c0_13, %c0_14], %30 {strides = array<i32>} : memref<16x128xf32, #tpu.memory_space<vmem>>, vector<16x128xf32>,
    return
  }
  func.func @transform_0(%arg0: i32) -> (i32, i32) {
    %c0_i32 = arith.constant 0 : i32
    %c0_i32_0 = arith.constant 0 : i32
    return %arg0, %c0_i32 : i32, i32
  }
  func.func @transform_1(%arg0: i32) -> (i32, i32, i32) {
    %c0_i32 = arith.constant 0 : i32
    %c0_i32_0 = arith.constant 0 : i32
    %c0_i32_1 = arith.constant 0 : i32
    %c0_i32_2 = arith.constant 0 : i32
    return %c0_i32, %c0_i32_0, %c0_i32_1 : i32, i32, i32
  }
  func.func @transform_2(%arg0: i32) -> (i32, i32) {
    %c0_i32 = arith.constant 0 : i32
    %c0_i32_0 = arith.constant 0 : i32
    %c0_i32_1 = arith.constant 0 : i32
    return %c0_i32, %c0_i32_0 : i32, i32
  }
  func.func @transform_3(%arg0: i32) -> (i32, i32) {
    %c0_i32 = arith.constant 0 : i32
    %c0_i32_0 = arith.constant 0 : i32
    %c0_i32_1 = arith.constant 0 : i32
    return %c0_i32, %c0_i32_0 : i32, i32
  }
  func.func @transform_4(%arg0: i32) -> (i32, i32) {
    %c0_i32 = arith.constant 0 : i32
    %c0_i32_0 = arith.constant 0 : i32
    return %arg0, %c0_i32 : i32, i32
  }
}

module attributes {stable_mosaic.version = 11 : i64} {
  func.func @_conv_stats_kernel(%arg0: i32, %arg1: memref<8x640xbf16, #tpu.memory_space<vmem>>, %arg2: memref<640x128xbf16, #tpu.memory_space<vmem>>, %arg3: memref<8x128xf32, #tpu.memory_space<vmem>>, %arg4: memref<1x2x128xf32, #tpu.memory_space<vmem>>) attributes {dimension_semantics = [#tpu.dimension_semantics<parallel>], iteration_bounds = array<i64: 1>, scalar_prefetch = 0 : i64, scratch_operands = 0 : i64, tpu.core_type = #tpu.core_type<tc>, window_params = [{transform_indices = @transform_0, window_bounds = array<i64: 8, 640>}, {pipeline_mode = #tpu.pipeline_mode<synchronous>, transform_indices = @transform_1, window_bounds = array<i64: 640, 128>}, {transform_indices = @transform_2, window_bounds = array<i64: 8, 128>}, {transform_indices = @transform_3, window_bounds = array<i64: 1, 2, 128>}]} {
    %c0 = arith.constant 0 : index
    %c0_0 = arith.constant 0 : index
    %0 = vector.load %arg1[%c0, %c0_0] : memref<8x640xbf16, #tpu.memory_space<vmem>>, vector<8x640xbf16>
    %c0_1 = arith.constant 0 : index
    %c0_2 = arith.constant 0 : index
    %1 = vector.load %arg2[%c0_1, %c0_2] : memref<640x128xbf16, #tpu.memory_space<vmem>>, vector<640x128xbf16>
    %cst = arith.constant dense<0.000000e+00> : vector<8x128xf32>
    %2 = tpu.matmul %0, %1, %cst {dimension_numbers = #tpu.dot_dimension_numbers<[1], [0], [0], [1], [0, 0, 1, 1], [], []>} : vector<8x640xbf16>, vector<640x128xbf16>, vector<8x128xf32> -> vector<8x128xf32>
    %c0_3 = arith.constant 0 : index
    %c0_4 = arith.constant 0 : index
    %3 = vector.load %arg3[%c0_3, %c0_4] : memref<8x128xf32, #tpu.memory_space<vmem>>, vector<8x128xf32>
    tpu.vector_store %arg3[%c0_3, %c0_4], %2 {strides = array<i32>} : memref<8x128xf32, #tpu.memory_space<vmem>>, vector<8x128xf32>,
    %cst_5 = arith.constant dense<0.000000e+00> : vector<128xf32>
    %4 = vector.multi_reduction <add>, %2, %cst_5 [0] : vector<8x128xf32> to vector<128xf32>
    %5 = vector.shape_cast %4 : vector<128xf32> to vector<1x128xf32>
    %6 = arith.mulf %2, %2 : vector<8x128xf32>
    %cst_6 = arith.constant dense<0.000000e+00> : vector<128xf32>
    %7 = vector.multi_reduction <add>, %6, %cst_6 [0] : vector<8x128xf32> to vector<128xf32>
    %8 = vector.shape_cast %7 : vector<128xf32> to vector<1x128xf32>
    %9 = tpu.concatenate %5, %8 in 0 : vector<1x128xf32>, vector<1x128xf32> -> vector<2x128xf32>
    %10 = vector.shape_cast %9 : vector<2x128xf32> to vector<1x2x128xf32>
    %c0_7 = arith.constant 0 : index
    %c0_8 = arith.constant 0 : index
    %c0_9 = arith.constant 0 : index
    %11 = vector.load %arg4[%c0_7, %c0_8, %c0_9] : memref<1x2x128xf32, #tpu.memory_space<vmem>>, vector<1x2x128xf32>
    tpu.vector_store %arg4[%c0_7, %c0_8, %c0_9], %10 {strides = array<i32>} : memref<1x2x128xf32, #tpu.memory_space<vmem>>, vector<1x2x128xf32>,
    return
  }
  func.func @transform_0(%arg0: i32) -> (i32, i32) {
    %c0_i32 = arith.constant 0 : i32
    %c0_i32_0 = arith.constant 0 : i32
    return %arg0, %c0_i32 : i32, i32
  }
  func.func @transform_1(%arg0: i32) -> (i32, i32) {
    %c0_i32 = arith.constant 0 : i32
    %c0_i32_0 = arith.constant 0 : i32
    %c0_i32_1 = arith.constant 0 : i32
    return %c0_i32, %c0_i32_0 : i32, i32
  }
  func.func @transform_2(%arg0: i32) -> (i32, i32) {
    %c0_i32 = arith.constant 0 : i32
    %c0_i32_0 = arith.constant 0 : i32
    return %arg0, %c0_i32 : i32, i32
  }
  func.func @transform_3(%arg0: i32) -> (i32, i32, i32) {
    %c0_i32 = arith.constant 0 : i32
    %c0_i32_0 = arith.constant 0 : i32
    %c0_i32_1 = arith.constant 0 : i32
    return %arg0, %c0_i32, %c0_i32_0 : i32, i32, i32
  }
}

module attributes {stable_mosaic.version = 11 : i64} {
  func.func @_bn_silu_kernel(%arg0: i32, %arg1: memref<8x128xf32, #tpu.memory_space<vmem>>, %arg2: memref<1x2x128xf32, #tpu.memory_space<vmem>>, %arg3: memref<1x128xf32, #tpu.memory_space<vmem>>, %arg4: memref<1x128xf32, #tpu.memory_space<vmem>>, %arg5: memref<8x128xf32, #tpu.memory_space<vmem>>) attributes {dimension_semantics = [#tpu.dimension_semantics<parallel>], iteration_bounds = array<i64: 1>, scalar_prefetch = 0 : i64, scratch_operands = 0 : i64, tpu.core_type = #tpu.core_type<tc>, window_params = [{transform_indices = @transform_0, window_bounds = array<i64: 8, 128>}, {pipeline_mode = #tpu.pipeline_mode<synchronous>, transform_indices = @transform_1, window_bounds = array<i64: 1, 2, 128>}, {pipeline_mode = #tpu.pipeline_mode<synchronous>, transform_indices = @transform_2, window_bounds = array<i64: 1, 128>}, {pipeline_mode = #tpu.pipeline_mode<synchronous>, transform_indices = @transform_3, window_bounds = array<i64: 1, 128>}, {transform_indices = @transform_4, window_bounds = array<i64: 8, 128>}]} {
    %c0 = arith.constant 0 : index
    %c0_0 = arith.constant 0 : index
    %c0_1 = arith.constant 0 : index
    %0 = vector.load %arg2[%c0, %c0_0, %c0_1] : memref<1x2x128xf32, #tpu.memory_space<vmem>>, vector<1x2x128xf32>
    %cst = arith.constant dense<0.000000e+00> : vector<2x128xf32>
    %1 = vector.multi_reduction <add>, %0, %cst [0] : vector<1x2x128xf32> to vector<2x128xf32>
    %2 = vector.extract_strided_slice %1 {offsets = [0, 0], sizes = [1, 128], strides = [1, 1]} : vector<2x128xf32> to vector<1x128xf32>
    %cst_2 = arith.constant 1.250000e-01 : f32
    %3 = vector.broadcast %cst_2 : f32 to vector<1x128xf32>
    %4 = arith.mulf %2, %3 : vector<1x128xf32>
    %5 = vector.extract_strided_slice %1 {offsets = [1, 0], sizes = [1, 128], strides = [1, 1]} : vector<2x128xf32> to vector<1x128xf32>
    %cst_3 = arith.constant 1.250000e-01 : f32
    %6 = vector.broadcast %cst_3 : f32 to vector<1x128xf32>
    %7 = arith.mulf %5, %6 : vector<1x128xf32>
    %8 = arith.mulf %4, %4 : vector<1x128xf32>
    %9 = arith.subf %7, %8 : vector<1x128xf32>
    %cst_4 = arith.constant 0.000000e+00 : f32
    %10 = vector.broadcast %cst_4 : f32 to vector<1x128xf32>
    %11 = arith.maximumf %9, %10 : vector<1x128xf32>
    %cst_5 = arith.constant 9.99999974E-6 : f32
    %12 = vector.broadcast %cst_5 : f32 to vector<1x128xf32>
    %13 = arith.addf %11, %12 : vector<1x128xf32>
    %14 = math.rsqrt %13 : vector<1x128xf32>
    %c0_6 = arith.constant 0 : index
    %c0_7 = arith.constant 0 : index
    %15 = vector.load %arg1[%c0_6, %c0_7] : memref<8x128xf32, #tpu.memory_space<vmem>>, vector<8x128xf32>
    %16 = vector.broadcast %4 : vector<1x128xf32> to vector<8x128xf32>
    %17 = arith.subf %15, %16 : vector<8x128xf32>
    %c0_8 = arith.constant 0 : index
    %c0_9 = arith.constant 0 : index
    %18 = vector.load %arg3[%c0_8, %c0_9] : memref<1x128xf32, #tpu.memory_space<vmem>>, vector<1x128xf32>
    %19 = arith.mulf %14, %18 : vector<1x128xf32>
    %20 = vector.broadcast %19 : vector<1x128xf32> to vector<8x128xf32>
    %21 = arith.mulf %17, %20 : vector<8x128xf32>
    %c0_10 = arith.constant 0 : index
    %c0_11 = arith.constant 0 : index
    %22 = vector.load %arg4[%c0_10, %c0_11] : memref<1x128xf32, #tpu.memory_space<vmem>>, vector<1x128xf32>
    %23 = vector.broadcast %22 : vector<1x128xf32> to vector<8x128xf32>
    %24 = arith.addf %21, %23 : vector<8x128xf32>
    %25 = arith.negf %24 : vector<8x128xf32>
    %26 = math.exp %25 : vector<8x128xf32>
    %cst_12 = arith.constant 1.000000e+00 : f32
    %27 = vector.broadcast %cst_12 : f32 to vector<8x128xf32>
    %28 = arith.addf %27, %26 : vector<8x128xf32>
    %29 = arith.divf %27, %28 : vector<8x128xf32>
    %30 = arith.mulf %24, %29 : vector<8x128xf32>
    %c0_13 = arith.constant 0 : index
    %c0_14 = arith.constant 0 : index
    %31 = vector.load %arg5[%c0_13, %c0_14] : memref<8x128xf32, #tpu.memory_space<vmem>>, vector<8x128xf32>
    tpu.vector_store %arg5[%c0_13, %c0_14], %30 {strides = array<i32>} : memref<8x128xf32, #tpu.memory_space<vmem>>, vector<8x128xf32>,
    return
  }
  func.func @transform_0(%arg0: i32) -> (i32, i32) {
    %c0_i32 = arith.constant 0 : i32
    %c0_i32_0 = arith.constant 0 : i32
    return %arg0, %c0_i32 : i32, i32
  }
  func.func @transform_1(%arg0: i32) -> (i32, i32, i32) {
    %c0_i32 = arith.constant 0 : i32
    %c0_i32_0 = arith.constant 0 : i32
    %c0_i32_1 = arith.constant 0 : i32
    %c0_i32_2 = arith.constant 0 : i32
    return %c0_i32, %c0_i32_0, %c0_i32_1 : i32, i32, i32
  }
  func.func @transform_2(%arg0: i32) -> (i32, i32) {
    %c0_i32 = arith.constant 0 : i32
    %c0_i32_0 = arith.constant 0 : i32
    %c0_i32_1 = arith.constant 0 : i32
    return %c0_i32, %c0_i32_0 : i32, i32
  }
  func.func @transform_3(%arg0: i32) -> (i32, i32) {
    %c0_i32 = arith.constant 0 : i32
    %c0_i32_0 = arith.constant 0 : i32
    %c0_i32_1 = arith.constant 0 : i32
    return %c0_i32, %c0_i32_0 : i32, i32
  }
  func.func @transform_4(%arg0: i32) -> (i32, i32) {
    %c0_i32 = arith.constant 0 : i32
    %c0_i32_0 = arith.constant 0 : i32
    return %arg0, %c0_i32 : i32, i32
  }
}

module attributes {stable_mosaic.version = 11 : i64} {
  func.func @_conv_bias_kernel(%arg0: i32, %arg1: memref<8x640xbf16, #tpu.memory_space<vmem>>, %arg2: memref<640x128xbf16, #tpu.memory_space<vmem>>, %arg3: memref<1x128xf32, #tpu.memory_space<vmem>>, %arg4: memref<8x128xf32, #tpu.memory_space<vmem>>) attributes {dimension_semantics = [#tpu.dimension_semantics<parallel>], iteration_bounds = array<i64: 1>, scalar_prefetch = 0 : i64, scratch_operands = 0 : i64, tpu.core_type = #tpu.core_type<tc>, window_params = [{transform_indices = @transform_0, window_bounds = array<i64: 8, 640>}, {pipeline_mode = #tpu.pipeline_mode<synchronous>, transform_indices = @transform_1, window_bounds = array<i64: 640, 128>}, {pipeline_mode = #tpu.pipeline_mode<synchronous>, transform_indices = @transform_2, window_bounds = array<i64: 1, 128>}, {transform_indices = @transform_3, window_bounds = array<i64: 8, 128>}]} {
    %c0 = arith.constant 0 : index
    %c0_0 = arith.constant 0 : index
    %0 = vector.load %arg1[%c0, %c0_0] : memref<8x640xbf16, #tpu.memory_space<vmem>>, vector<8x640xbf16>
    %c0_1 = arith.constant 0 : index
    %c0_2 = arith.constant 0 : index
    %1 = vector.load %arg2[%c0_1, %c0_2] : memref<640x128xbf16, #tpu.memory_space<vmem>>, vector<640x128xbf16>
    %cst = arith.constant dense<0.000000e+00> : vector<8x128xf32>
    %2 = tpu.matmul %0, %1, %cst {dimension_numbers = #tpu.dot_dimension_numbers<[1], [0], [0], [1], [0, 0, 1, 1], [], []>} : vector<8x640xbf16>, vector<640x128xbf16>, vector<8x128xf32> -> vector<8x128xf32>
    %c0_3 = arith.constant 0 : index
    %c0_4 = arith.constant 0 : index
    %3 = vector.load %arg3[%c0_3, %c0_4] : memref<1x128xf32, #tpu.memory_space<vmem>>, vector<1x128xf32>
    %4 = vector.broadcast %3 : vector<1x128xf32> to vector<8x128xf32>
    %5 = arith.addf %2, %4 : vector<8x128xf32>
    %c0_5 = arith.constant 0 : index
    %c0_6 = arith.constant 0 : index
    %6 = vector.load %arg4[%c0_5, %c0_6] : memref<8x128xf32, #tpu.memory_space<vmem>>, vector<8x128xf32>
    tpu.vector_store %arg4[%c0_5, %c0_6], %5 {strides = array<i32>} : memref<8x128xf32, #tpu.memory_space<vmem>>, vector<8x128xf32>,
    return
  }
  func.func @transform_0(%arg0: i32) -> (i32, i32) {
    %c0_i32 = arith.constant 0 : i32
    %c0_i32_0 = arith.constant 0 : i32
    return %arg0, %c0_i32 : i32, i32
  }
  func.func @transform_1(%arg0: i32) -> (i32, i32) {
    %c0_i32 = arith.constant 0 : i32
    %c0_i32_0 = arith.constant 0 : i32
    %c0_i32_1 = arith.constant 0 : i32
    return %c0_i32, %c0_i32_0 : i32, i32
  }
  func.func @transform_2(%arg0: i32) -> (i32, i32) {
    %c0_i32 = arith.constant 0 : i32
    %c0_i32_0 = arith.constant 0 : i32
    %c0_i32_1 = arith.constant 0 : i32
    return %c0_i32, %c0_i32_0 : i32, i32
  }
  func.func @transform_3(%arg0: i32) -> (i32, i32) {
    %c0_i32 = arith.constant 0 : i32
    %c0_i32_0 = arith.constant 0 : i32
    return %arg0, %c0_i32 : i32, i32
  }
}

</mosaic_0001>

<bundles_post_ra>
// kernel: encoder_forward_pallas.14
= control target key start
LH: loop header
LB: loop body
LE: loop exit
PB: predicated region body
PF: predicated region fallthrough
CT: control target
= control target key end

     0   :  { %s1428_s12 = smov 0   ;;  %s1733_s0 = inlined_call_operand.vmem [shape: bf16[512,256], index: 0, kind: input, shape index: {}]   ;;  %s1734_s1 = inlined_call_operand.vmem [shape: bf16[256,128], index: 1, kind: input, shape index: {}]   ;;  %s1735_s2 = inlined_call_operand.vmem [shape: f32[1,128], index: 2, kind: input, shape index: {}]   ;;  %s1736_s3 = inlined_call_operand.vmem [shape: f32[512,128], index: 3, kind: output, shape index: {}]  }
   0x1 LB: > { %s978_s13 = sadd.s32 4294967295, %s1406_s12   ;;  %p982_p0 = scmp.ge.s32.totalorder %s1406_s12, 1  ;;  %s1406_s12 = sphi %s1428_s12, %s13_s12  }
   0x2   : > { %p139_p1 = scmp.lt.s32.totalorder %s1406_s12, 3 }
   0x4   : > { %p140_p2 = pnand %p982_p0, %p139_p1 }
   0x5   : > { %v1208_v0 = vld [vmem:[%s1734_s1 + $0x40] sm:$0xff] (!%p140_p2)   ;;  %s983_s16 = sshll.u32 (!%p140_p2), %s978_s13, 5  ;;  %v1210_v2 = vld [vmem:[%s1734_s1 + $0x48] sm:$0xff] (!%p140_p2)   ;;  %v1212_v4 = vld [vmem:[%s1734_s1 + $0x50] sm:$0xff] (!%p140_p2)  }
   0x6   : > { %143 = sbr.rel (%p140_p2) target bundleno = 350 (0x15e), region = 32  ;;  %v1209_v1 = vld [vmem:[%s1734_s1] sm:$0xff] (!%p140_p2)   ;;  %1072 = vmatprep.subr.bf16.mxu0 (!%p140_p2), %v1208_v0  ;;  %1184 = vmatprep.subr.bf16.mxu1 (!%p140_p2), %v1208_v0  ;;  %v1211_v3 = vld [vmem:[%s1734_s1 + $0x8] sm:$0xff] (!%p140_p2)   ;;  %p165_p3 = scmp.lt.s32.totalorder (!%p140_p2), %s983_s16, 63  ;;  %v1213_v5 = vld [vmem:[%s1734_s1 + $0x10] sm:$0xff] (!%p140_p2)  }
   0x7   : > { %1073 = vmatpush3.bf16.msra.mxu0 (!%p140_p2), %v1209_v1  ;;  %1192 = vmatpush3.bf16.msra.mxu1 (!%p140_p2), %v1209_v1  ;;  %v1214_v6 = vld [vmem:[%s1734_s1 + $0x58] sm:$0xff] (!%p140_p2)   ;;  %v1216_v8 = vld [vmem:[%s1734_s1 + $0x60] sm:$0xff] (!%p140_p2)   ;;  %v1218_v10 = vld [vmem:[%s1734_s1 + $0x68] sm:$0xff] (!%p140_p2)  }
   0x8   : > { %1074 = vmatprep.subr.bf16.mxu0 (!%p140_p2), %v1210_v2  ;;  %1185 = vmatprep.subr.bf16.mxu1 (!%p140_p2), %v1210_v2  ;;  %v1215_v7 = vld [vmem:[%s1734_s1 + $0x18] sm:$0xff] (!%p140_p2)   ;;  %v1217_v9 = vld [vmem:[%s1734_s1 + $0x20] sm:$0xff] (!%p140_p2)   ;;  %v1219_v13 = vld [vmem:[%s1734_s1 + $0x28] sm:$0xff] (!%p140_p2)  }
   0x9   : > { %v1220_v14 = vld [vmem:[%s1734_s1 + $0x70] sm:$0xff] (!%p140_p2)   ;;  %v1222_v16 = vld [vmem:[%s1734_s1 + $0x78] sm:$0xff] (!%p140_p2)   ;;  %v1529_v50 = vld [vmem:[%s1735_s2] ss:$0 sm:$0xff] (!%p140_p2) }
   0xa   : > { %v1221_v15 = vld [vmem:[%s1734_s1 + $0x30] sm:$0xff] (!%p140_p2)   ;;  %v1223_v17 = vld [vmem:[%s1734_s1 + $0x38] sm:$0xff] (!%p140_p2)  }
   0xb   : > { %1075 = vmatpush3.bf16.msra.mxu0 (!%p140_p2), %v1211_v3  ;;  %1193 = vmatpush3.bf16.msra.mxu1 (!%p140_p2), %v1211_v3 }
   0xc   : > { %1076 = vmatprep.subr.bf16.mxu0 (!%p140_p2), %v1212_v4  ;;  %1186 = vmatprep.subr.bf16.mxu1 (!%p140_p2), %v1212_v4 }
   0xd   : > { %s1738_s16 = smov (!%p165_p3, %s983_s16), 63 }
   0xe   : > { %s1071_s4 = sshll.u32 %s1738_s16, 3 }
   0xf   : > { %1077 = vmatpush3.bf16.msra.mxu0 %v1213_v5  ;;  %1194 = vmatpush3.bf16.msra.mxu1 %v1213_v5  ;;  %s1471_s9 = scalar_lea.vmem %s1733_s0, %s1071_s4  ;;  %s1592_s30 = scalar_lea.vmem %s1736_s3, %s1071_s4 }
  0x10   : > { %1078 = vmatprep.subr.bf16.mxu0 %v1214_v6  ;;  %1187 = vmatprep.subr.bf16.mxu1 %v1214_v6  ;;  %v1226_v11 = vld [vmem:[%s1471_s9 + $0x4] ss:$8 sps:$4 sm:$0xff]   ;;  %v1224_v18 = vld [vmem:[%s1471_s9] ss:$8 sps:$4 sm:$0xff]   ;;  %v1230_v20 = vld [vmem:[%s1471_s9 + $0x14] ss:$8 sps:$4 sm:$0xff]  }
  0x11   : > { %v1229_v12 = vld [vmem:[%s1471_s9 + $0x84] ss:$8 sps:$4 sm:$0xff]   ;;  %537 = vmatprep.mubr.bf16.mxu0 %v1226_v11  ;;  %v1227_v19 = vld [vmem:[%s1471_s9 + $0x80] ss:$8 sps:$4 sm:$0xff]   ;;  %v1232_v21 = vld [vmem:[%s1471_s9 + $0x94] ss:$8 sps:$4 sm:$0xff]  }
  0x12   : > { %601 = vmatprep.mubr.bf16.mxu1 %v1229_v12  ;;  %v1234_v22 = vld [vmem:[%s1471_s9 + $0x10] ss:$8 sps:$4 sm:$0xff]   ;;  %v1236_v24 = vld [vmem:[%s1471_s9 + $0x24] ss:$8 sps:$4 sm:$0xff]   ;;  %v1240_v26 = vld [vmem:[%s1471_s9 + $0x20] ss:$8 sps:$4 sm:$0xff]  }
  0x13   : > { %1079 = vmatpush3.bf16.msra.mxu0 %v1215_v7  ;;  %1195 = vmatpush3.bf16.msra.mxu1 %v1215_v7  ;;  %v1235_v23 = vld [vmem:[%s1471_s9 + $0x90] ss:$8 sps:$4 sm:$0xff]   ;;  %v1238_v25 = vld [vmem:[%s1471_s9 + $0xa4] ss:$8 sps:$4 sm:$0xff]   ;;  %v1241_v27 = vld [vmem:[%s1471_s9 + $0xa0] ss:$8 sps:$4 sm:$0xff]  }
  0x14   : > { %1080 = vmatprep.subr.bf16.mxu0 %v1216_v8  ;;  %1188 = vmatprep.subr.bf16.mxu1 %v1216_v8  ;;  %v1242_v28 = vld [vmem:[%s1471_s9 + $0x34] ss:$8 sps:$4 sm:$0xff]   ;;  %v1246_v30 = vld [vmem:[%s1471_s9 + $0x30] ss:$8 sps:$4 sm:$0xff]   ;;  %v1248_v32 = vld [vmem:[%s1471_s9 + $0x44] ss:$8 sps:$4 sm:$0xff]  }
  0x15   : > { %v1244_v29 = vld [vmem:[%s1471_s9 + $0xb4] ss:$8 sps:$4 sm:$0xff]   ;;  %v1247_v31 = vld [vmem:[%s1471_s9 + $0xb0] ss:$8 sps:$4 sm:$0xff]   ;;  %v1250_v33 = vld [vmem:[%s1471_s9 + $0xc4] ss:$8 sps:$4 sm:$0xff]  }
  0x16   : > { %v1252_v34 = vld [vmem:[%s1471_s9 + $0x40] ss:$8 sps:$4 sm:$0xff]   ;;  %v1254_v36 = vld [vmem:[%s1471_s9 + $0x54] ss:$8 sps:$4 sm:$0xff]   ;;  %v1258_v38 = vld [vmem:[%s1471_s9 + $0x50] ss:$8 sps:$4 sm:$0xff]  }
  0x17   : > { %1081 = vmatpush3.bf16.msra.mxu0 %v1217_v9  ;;  %1196 = vmatpush3.bf16.msra.mxu1 %v1217_v9  ;;  %v1253_v35 = vld [vmem:[%s1471_s9 + $0xc0] ss:$8 sps:$4 sm:$0xff]   ;;  %v1256_v37 = vld [vmem:[%s1471_s9 + $0xd4] ss:$8 sps:$4 sm:$0xff]   ;;  %v1259_v39 = vld [vmem:[%s1471_s9 + $0xd0] ss:$8 sps:$4 sm:$0xff]  }
  0x18   : > { %1082 = vmatprep.subr.bf16.mxu0 %v1218_v10  ;;  %1189 = vmatprep.subr.bf16.mxu1 %v1218_v10  ;;  %v1260_v40 = vld [vmem:[%s1471_s9 + $0x64] ss:$8 sps:$4 sm:$0xff]   ;;  %v1264_v42 = vld [vmem:[%s1471_s9 + $0x60] ss:$8 sps:$4 sm:$0xff]   ;;  %v1266_v44 = vld [vmem:[%s1471_s9 + $0x74] ss:$8 sps:$4 sm:$0xff]  }
  0x19   : > { %v1262_v41 = vld [vmem:[%s1471_s9 + $0xe4] ss:$8 sps:$4 sm:$0xff]   ;;  %v1265_v43 = vld [vmem:[%s1471_s9 + $0xe0] ss:$8 sps:$4 sm:$0xff]   ;;  %v1268_v45 = vld [vmem:[%s1471_s9 + $0xf4] ss:$8 sps:$4 sm:$0xff]  }
  0x1a   : > { %v1270_v46 = vld [vmem:[%s1471_s9 + $0x70] ss:$8 sps:$4 sm:$0xff]  }
  0x1b   : > { %1083 = vmatpush3.bf16.msra.mxu0 %v1219_v13  ;;  %1197 = vmatpush3.bf16.msra.mxu1 %v1219_v13  ;;  %v1271_v47 = vld [vmem:[%s1471_s9 + $0xf0] ss:$8 sps:$4 sm:$0xff]  }
  0x1c   : > { %1084 = vmatprep.subr.bf16.mxu0 %v1220_v14  ;;  %1190 = vmatprep.subr.bf16.mxu1 %v1220_v14 }
  0x1f   : > { %1085 = vmatpush3.bf16.msra.mxu0 %v1221_v15  ;;  %1198 = vmatpush3.bf16.msra.mxu1 %v1221_v15 }
  0x20   : > { %1086 = vmatprep.subr.bf16.mxu0 %v1222_v16  ;;  %1191 = vmatprep.subr.bf16.mxu1 %v1222_v16 }
  0x23   : > { %1087 = vmatpush3.bf16.msra.mxu0 %v1223_v17  ;;  %1199 = vmatpush3.bf16.msra.mxu1 %v1223_v17 }
  0x26   : > { %538 = vmatmul.mubr.bf16.vlgmr.msra.gmra.mrb[0].mxu0 %v1224_v18  ;;  %602 = vmatmul.mubr.bf16.vlgmr.msra.gmra.mrb[0].mxu1 %v1227_v19 }
  0x27   : > { %545 = vmatprep.mubr.bf16.mxu0 %v1230_v20  ;;  %609 = vmatprep.mubr.bf16.mxu1 %v1232_v21 }
  0x2e   : > { %546 = vmatmul.mubr.bf16.gmra.mrb[4].mxu0 %v1234_v22  ;;  %610 = vmatmul.mubr.bf16.gmra.mrb[4].mxu1 %v1235_v23 }
  0x2f   : > { %553 = vmatprep.mubr.bf16.mxu0 %v1236_v24  ;;  %617 = vmatprep.mubr.bf16.mxu1 %v1238_v25 }
  0x36   : > { %554 = vmatmul.mubr.bf16.gmra.mrb[8].mxu0 %v1240_v26  ;;  %618 = vmatmul.mubr.bf16.gmra.mrb[8].mxu1 %v1241_v27 }
  0x37   : > { %561 = vmatprep.mubr.bf16.mxu0 %v1242_v28  ;;  %625 = vmatprep.mubr.bf16.mxu1 %v1244_v29 }
  0x3e   : > { %562 = vmatmul.mubr.bf16.gmra.mrb[12].mxu0 %v1246_v30  ;;  %626 = vmatmul.mubr.bf16.gmra.mrb[12].mxu1 %v1247_v31 }
  0x3f   : > { %569 = vmatprep.mubr.bf16.mxu0 %v1248_v32  ;;  %633 = vmatprep.mubr.bf16.mxu1 %v1250_v33 }
  0x46   : > { %570 = vmatmul.mubr.bf16.gmra.mrb[16].mxu0 %v1252_v34  ;;  %634 = vmatmul.mubr.bf16.gmra.mrb[16].mxu1 %v1253_v35 }
  0x47   : > { %577 = vmatprep.mubr.bf16.mxu0 %v1254_v36  ;;  %641 = vmatprep.mubr.bf16.mxu1 %v1256_v37 }
  0x4e   : > { %578 = vmatmul.mubr.bf16.gmra.mrb[20].mxu0 %v1258_v38  ;;  %642 = vmatmul.mubr.bf16.gmra.mrb[20].mxu1 %v1259_v39 }
  0x4f   : > { %585 = vmatprep.mubr.bf16.mxu0 %v1260_v40  ;;  %649 = vmatprep.mubr.bf16.mxu1 %v1262_v41 }
  0x56   : > { %586 = vmatmul.mubr.bf16.gmra.mrb[24].mxu0 %v1264_v42  ;;  %650 = vmatmul.mubr.bf16.gmra.mrb[24].mxu1 %v1265_v43 }
  0x57   : > { %593 = vmatprep.mubr.bf16.mxu0 %v1266_v44  ;;  %657 = vmatprep.mubr.bf16.mxu1 %v1268_v45 }
  0x5e   : > { %594 = vmatmul.mubr.bf16.gmra.mrb[28].mxu0 %v1270_v46  ;;  %658 = vmatmul.mubr.bf16.gmra.mrb[28].mxu1 %v1271_v47 }
  0xf9   : > { %v1088_v48 = vpop.f32.mrb[0].mxu0  ;;  %v1136_v49 = vpop.f32.mrb[0].mxu1 }
  0xfa   : > { %v1089_v51 = vpop.f32.mrb[1].mxu0  ;;  %v1137_v52 = vpop.f32.mrb[1].mxu1 }
  0xfb   : > { %v1090_v53 = vadd.f32 %v1089_v51, %v1088_v48  ;;  %v1138_v54 = vadd.f32 %v1137_v52, %v1136_v49  ;;  %v1091_v55 = vpop.f32.mrb[2].mxu0  ;;  %v1139_v56 = vpop.f32.mrb[2].mxu1 }
  0xfc   : > { %v1092_v57 = vpop.f32.mrb[3].mxu0  ;;  %v1140_v58 = vpop.f32.mrb[3].mxu1 }
  0xfd   : > { %v1532_v59 = vadd.f32 %v1090_v53, %v1529_v50  ;;  %v1535_v60 = vadd.f32 %v1138_v54, %v1529_v50  ;;  %v1093_v61 = vadd.f32 %v1092_v57, %v1091_v55  ;;  %v1141_v62 = vadd.f32 %v1140_v58, %v1139_v56 }
  0xff   : > { %v1037_v63 = vmul.f32 -1.442695, %v1532_v59  ;;  %v1053_v0 = vmul.f32 -1.442695, %v1535_v60  ;;  %v1540_v1 = vadd.f32 %v1093_v61, %v1529_v50  ;;  %v1543_v2 = vadd.f32 %v1141_v62, %v1529_v50 }
 0x101   : > { %1272 = vpow2.f32 %v1037_v63  ;;  %v1038_v3 = vmul.f32 -1.442695, %v1540_v1  ;;  %v1054_v4 = vmul.f32 -1.442695, %v1543_v2  ;;  %v1094_v5 = vpop.f32.mrb[4].mxu0  ;;  %v1142_v6 = vpop.f32.mrb[4].mxu1 }
 0x102   : > { %1274 = vpow2.f32 %v1053_v0  ;;  %v1095_v7 = vpop.f32.mrb[5].mxu0  ;;  %v1143_v8 = vpop.f32.mrb[5].mxu1 }
 0x103   : > { %1276 = vpow2.f32 %v1038_v3  ;;  %v1096_v9 = vadd.f32 %v1095_v7, %v1094_v5  ;;  %v1144_v10 = vadd.f32 %v1143_v8, %v1142_v6  ;;  %v1097_v11 = vpop.f32.mrb[6].mxu0  ;;  %v1145_v12 = vpop.f32.mrb[6].mxu1 }
 0x104   : > { %1278 = vpow2.f32 %v1054_v4  ;;  %v1098_v13 = vpop.f32.mrb[7].mxu0  ;;  %v1146_v14 = vpop.f32.mrb[7].mxu1 }
 0x105   : > { %v1548_v15 = vadd.f32 %v1096_v9, %v1529_v50  ;;  %v1551_v16 = vadd.f32 %v1144_v10, %v1529_v50  ;;  %v1099_v17 = vadd.f32 %v1098_v13, %v1097_v11  ;;  %v1147_v18 = vadd.f32 %v1146_v14, %v1145_v12 }
 0x107   : > { %v1039_v19 = vmul.f32 -1.442695, %v1548_v15  ;;  %v1055_v20 = vmul.f32 -1.442695, %v1551_v16  ;;  %v1556_v21 = vadd.f32 %v1099_v17, %v1529_v50  ;;  %v1559_v22 = vadd.f32 %v1147_v18, %v1529_v50 }
 0x109   : > { %1280 = vpow2.f32 %v1039_v19  ;;  %v1040_v23 = vmul.f32 -1.442695, %v1556_v21  ;;  %v1056_v24 = vmul.f32 -1.442695, %v1559_v22  ;;  %v1100_v25 = vpop.f32.mrb[8].mxu0  ;;  %v1148_v26 = vpop.f32.mrb[8].mxu1 }
 0x10a   : > { %1282 = vpow2.f32 %v1055_v20  ;;  %v1101_v27 = vpop.f32.mrb[9].mxu0  ;;  %v1149_v28 = vpop.f32.mrb[9].mxu1 }
 0x10b   : > { %v1273_v29 = vpop.eup %1272  ;;  %1284 = vpow2.f32 %v1040_v23  ;;  %v1102_v30 = vadd.f32 %v1101_v27, %v1100_v25  ;;  %v1150_v31 = vadd.f32 %v1149_v28, %v1148_v26  ;;  %v1103_v32 = vpop.f32.mrb[10].mxu0 }
 0x10c   : > { %v1151_v33 = vpop.f32.mrb[10].mxu1  ;;  %v1275_v34 = vpop.eup %1274  ;;  %v762_v35 = vadd.f32 1.0, %v1273_v29  ;;  %1286 = vpow2.f32 %v1056_v24 }
 0x10d   : > { %v1104_v36 = vpop.f32.mrb[11].mxu0  ;;  %v1152_v37 = vpop.f32.mrb[11].mxu1  ;;  %v778_v39 = vadd.f32 1.0, %v1275_v34  ;;  %v1564_v40 = vadd.f32 %v1102_v30, %v1529_v50  ;;  %v1567_v41 = vadd.f32 %v1150_v31, %v1529_v50 }
 0x10e   : > { %v1277_v38 = vpop.eup %1276  ;;  %v1105_v42 = vadd.f32 %v1104_v36, %v1103_v32  ;;  %1288 = vrcp.f32 %v762_v35  ;;  %v1153_v45 = vadd.f32 %v1152_v37, %v1151_v33 }
 0x10f   : > { %v1279_v43 = vpop.eup %1278  ;;  %v763_v44 = vadd.f32 1.0, %v1277_v38  ;;  %1290 = vrcp.f32 %v778_v39  ;;  %v1041_v47 = vmul.f32 -1.442695, %v1564_v40  ;;  %v1057_v48 = vmul.f32 -1.442695, %v1567_v41 }
 0x110   : > { %v779_v46 = vadd.f32 1.0, %v1279_v43  ;;  %v1572_v49 = vadd.f32 %v1105_v42, %v1529_v50  ;;  %v1575_v51 = vadd.f32 %v1153_v45, %v1529_v50 }
 0x111   : > { %1292 = vrcp.f32 %v763_v44  ;;  %v1106_v52 = vpop.f32.mrb[12].mxu0  ;;  %v1154_v53 = vpop.f32.mrb[12].mxu1 }
 0x112   : > { %1294 = vrcp.f32 %v779_v46  ;;  %v1042_v54 = vmul.f32 -1.442695, %v1572_v49  ;;  %v1058_v55 = vmul.f32 -1.442695, %v1575_v51  ;;  %v1107_v56 = vpop.f32.mrb[13].mxu0  ;;  %v1155_v57 = vpop.f32.mrb[13].mxu1 }
 0x113   : > { %1296 = vpow2.f32 %v1041_v47  ;;  %v1281_v58 = vpop.eup %1280  ;;  %v1108_v61 = vadd.f32 %v1107_v56, %v1106_v52  ;;  %v1156_v62 = vadd.f32 %v1155_v57, %v1154_v53  ;;  %v1109_v63 = vpop.f32.mrb[14].mxu0 }
 0x114   : > { %1298 = vpow2.f32 %v1057_v48  ;;  %v1157_v0 = vpop.f32.mrb[14].mxu1  ;;  %v1283_v3 = vpop.eup %1282  ;;  %v764_v4 = vadd.f32 1.0, %v1281_v58 }
 0x115   : > { %1300 = vpow2.f32 %v1042_v54  ;;  %v1110_v5 = vpop.f32.mrb[15].mxu0  ;;  %v1158_v6 = vpop.f32.mrb[15].mxu1  ;;  %v780_v8 = vadd.f32 1.0, %v1283_v3  ;;  %v1580_v9 = vadd.f32 %v1108_v61, %v1529_v50  ;;  %v1583_v10 = vadd.f32 %v1156_v62, %v1529_v50 }
 0x116   : > { %v1285_v7 = vpop.eup %1284  ;;  %1302 = vpow2.f32 %v1058_v55  ;;  %v1111_v13 = vadd.f32 %v1110_v5, %v1109_v63  ;;  %v1159_v14 = vadd.f32 %v1158_v6, %v1157_v0 }
 0x117   : > { %v1287_v11 = vpop.eup %1286  ;;  %1304 = vrcp.f32 %v764_v4  ;;  %v765_v12 = vadd.f32 1.0, %v1285_v7  ;;  %v1043_v18 = vmul.f32 -1.442695, %v1580_v9  ;;  %v1059_v19 = vmul.f32 -1.442695, %v1583_v10 }
 0x118   : > { %1306 = vrcp.f32 %v780_v8  ;;  %v781_v17 = vadd.f32 1.0, %v1287_v11  ;;  %v1289_v20 = vpop.eup %1288  ;;  %v1595_v23 = vadd.f32 %v1111_v13, %v1529_v50  ;;  %v1598_v24 = vadd.f32 %v1159_v14, %v1529_v50 }
 0x119   : > { %1308 = vrcp.f32 %v765_v12  ;;  %v1291_v25 = vpop.eup %1290  ;;  %v858_v26 = vmul.f32 %v1289_v20, %v1532_v59  ;;  %v1112_v27 = vpop.f32.mrb[16].mxu0 }
 0x11a   : > { %1310 = vrcp.f32 %v781_v17  ;;  %v1160_v28 = vpop.f32.mrb[16].mxu1  ;;  %v874_v30 = vmul.f32 %v1291_v25, %v1535_v60  ;;  %v1044_v31 = vmul.f32 -1.442695, %v1595_v23  ;;  %v1060_v32 = vmul.f32 -1.442695, %v1598_v24  ;;  %v1113_v33 = vpop.f32.mrb[17].mxu0 }
 0x11b   : > { %v1293_v29 = vpop.eup %1292  ;;  %1312 = vpow2.f32 %v1043_v18  ;;  %v1161_v34 = vpop.f32.mrb[17].mxu1  ;;  %890 = vst [vmem:[%s1592_s30] sm:$0xff] %v858_v26  ;;  %v1114_v59 = vadd.f32 %v1113_v33, %v1112_v27 }
 0x11c   : > { %v1295_v35 = vpop.eup %1294  ;;  %v859_v36 = vmul.f32 %v1293_v29, %v1540_v1  ;;  %1314 = vpow2.f32 %v1059_v19  ;;  %v1162_v37 = vadd.f32 %v1161_v34, %v1160_v28  ;;  %v1115_v38 = vpop.f32.mrb[18].mxu0  ;;  %906 = vst [vmem:[%s1592_s30 + $0x80] sm:$0xff] %v874_v30 }
 0x11d   : > { %v1163_v39 = vpop.f32.mrb[18].mxu1  ;;  %v1297_v42 = vpop.eup %1296  ;;  %v875_v60 = vmul.f32 %v1295_v35, %v1543_v2  ;;  %1316 = vpow2.f32 %v1044_v31  ;;  %v1610_v47 = vadd.f32 %v1114_v59, %v1529_v50 }
 0x11e   : > { %v1116_v43 = vpop.f32.mrb[19].mxu0  ;;  %v1164_v44 = vpop.f32.mrb[19].mxu1  ;;  %891 = vst [vmem:[%s1592_s30 + $0x8] sm:$0xff] %v859_v36  ;;  %v766_v46 = vadd.f32 1.0, %v1297_v42  ;;  %1318 = vpow2.f32 %v1060_v32  ;;  %v1613_v1 = vadd.f32 %v1162_v37, %v1529_v50 }
 0x11f   : > { %v1299_v45 = vpop.eup %1298  ;;  %907 = vst [vmem:[%s1592_s30 + $0x88] sm:$0xff] %v875_v60  ;;  %v1117_v53 = vadd.f32 %v1116_v43, %v1115_v38  ;;  %v1165_v54 = vadd.f32 %v1164_v44, %v1163_v39  ;;  %v1045_v56 = vmul.f32 -1.442695, %v1610_v47 }
 0x120   : > { %v1301_v48 = vpop.eup %1300  ;;  %v782_v52 = vadd.f32 1.0, %v1299_v45  ;;  %1320 = vrcp.f32 %v766_v46  ;;  %v1061_v57 = vmul.f32 -1.442695, %v1613_v1 }
 0x121   : > { %v1303_v55 = vpop.eup %1302  ;;  %v767_v2 = vadd.f32 1.0, %v1301_v48  ;;  %v1619_v62 = vadd.f32 %v1117_v53, %v1529_v50  ;;  %v1622_v63 = vadd.f32 %v1165_v54, %v1529_v50  ;;  %v1118_v4 = vpop.f32.mrb[20].mxu0 }
 0x122   : > { %v1305_v58 = vpop.eup %1304  ;;  %1322 = vrcp.f32 %v782_v52  ;;  %v783_v61 = vadd.f32 1.0, %v1303_v55  ;;  %v1166_v5 = vpop.f32.mrb[20].mxu1 }
 0x123   : > { %v1307_v0 = vpop.eup %1306  ;;  %v860_v3 = vmul.f32 %v1305_v58, %v1548_v15  ;;  %1324 = vrcp.f32 %v767_v2  ;;  %v1046_v8 = vmul.f32 -1.442695, %v1619_v62  ;;  %v1062_v11 = vmul.f32 -1.442695, %v1622_v63  ;;  %v1119_v12 = vpop.f32.mrb[21].mxu0 }
 0x124   : > { %v1309_v6 = vpop.eup %1308  ;;  %v876_v7 = vmul.f32 %v1307_v0, %v1551_v16  ;;  %1326 = vrcp.f32 %v783_v61  ;;  %v1167_v13 = vpop.f32.mrb[21].mxu1  ;;  %v1120_v15 = vadd.f32 %v1119_v12, %v1118_v4 }
 0x125   : > { %v1311_v14 = vpop.eup %1310  ;;  %892 = vst [vmem:[%s1592_s30 + $0x10] sm:$0xff] %v860_v3  ;;  %v861_v17 = vmul.f32 %v1309_v6, %v1556_v21  ;;  %1328 = vpow2.f32 %v1045_v56  ;;  %v1168_v18 = vadd.f32 %v1167_v13, %v1166_v5  ;;  %v1121_v19 = vpop.f32.mrb[22].mxu0 }
 0x126   : > { %v1169_v20 = vpop.f32.mrb[22].mxu1  ;;  %v1313_v25 = vpop.eup %1312  ;;  %908 = vst [vmem:[%s1592_s30 + $0x90] sm:$0xff] %v876_v7  ;;  %v877_v16 = vmul.f32 %v1311_v14, %v1559_v22  ;;  %1330 = vpow2.f32 %v1061_v57  ;;  %v1634_v30 = vadd.f32 %v1120_v15, %v1529_v50 }
 0x127   : > { %v1122_v26 = vpop.f32.mrb[23].mxu0  ;;  %v1170_v27 = vpop.f32.mrb[23].mxu1  ;;  %893 = vst [vmem:[%s1592_s30 + $0x18] sm:$0xff] %v861_v17  ;;  %v768_v29 = vadd.f32 1.0, %v1313_v25  ;;  %1332 = vpow2.f32 %v1046_v8  ;;  %v1637_v21 = vadd.f32 %v1168_v18, %v1529_v50 }
 0x128   : > { %v1315_v28 = vpop.eup %1314  ;;  %909 = vst [vmem:[%s1592_s30 + $0x98] sm:$0xff] %v877_v16  ;;  %1334 = vpow2.f32 %v1062_v11  ;;  %v1123_v33 = vadd.f32 %v1122_v26, %v1121_v19  ;;  %v1171_v34 = vadd.f32 %v1170_v27, %v1169_v20  ;;  %v1047_v36 = vmul.f32 -1.442695, %v1634_v30 }
 0x129   : > { %v1317_v31 = vpop.eup %1316  ;;  %v784_v32 = vadd.f32 1.0, %v1315_v28  ;;  %1336 = vrcp.f32 %v768_v29  ;;  %v1063_v59 = vmul.f32 -1.442695, %v1637_v21  ;;  %v1124_v60 = vpop.f32.mrb[24].mxu0 }
 0x12a   : > { %v1319_v22 = vpop.eup %1318  ;;  %v769_v35 = vadd.f32 1.0, %v1317_v31  ;;  %v1643_v38 = vadd.f32 %v1123_v33, %v1529_v50  ;;  %v1646_v39 = vadd.f32 %v1171_v34, %v1529_v50  ;;  %v1172_v43 = vpop.f32.mrb[24].mxu1 }
 0x12b   : > { %1338 = vrcp.f32 %v784_v32  ;;  %v785_v37 = vadd.f32 1.0, %v1319_v22  ;;  %v1321_v42 = vpop.eup %1320  ;;  %v1125_v52 = vpop.f32.mrb[25].mxu0 }
 0x12c   : > { %1340 = vrcp.f32 %v769_v35  ;;  %v1323_v44 = vpop.eup %1322  ;;  %v862_v45 = vmul.f32 %v1321_v42, %v1564_v40  ;;  %v1048_v46 = vmul.f32 -1.442695, %v1643_v38  ;;  %v1064_v48 = vmul.f32 -1.442695, %v1646_v39  ;;  %v1173_v53 = vpop.f32.mrb[25].mxu1 }
 0x12d   : > { %1342 = vrcp.f32 %v785_v37  ;;  %v1325_v54 = vpop.eup %1324  ;;  %v878_v55 = vmul.f32 %v1323_v44, %v1567_v41  ;;  %v1126_v2 = vadd.f32 %v1125_v52, %v1124_v60  ;;  %v1174_v56 = vadd.f32 %v1173_v53, %v1172_v43  ;;  %v1127_v57 = vpop.f32.mrb[26].mxu0 }
 0x12e   : > { %1344 = vpow2.f32 %v1047_v36  ;;  %v1175_v58 = vpop.f32.mrb[26].mxu1  ;;  %v1327_v61 = vpop.eup %1326  ;;  %894 = vst [vmem:[%s1592_s30 + $0x20] sm:$0xff] %v862_v45  ;;  %v863_v40 = vmul.f32 %v1325_v54, %v1572_v49 }
 0x12f   : > { %1346 = vpow2.f32 %v1063_v59  ;;  %v1128_v0 = vpop.f32.mrb[27].mxu0  ;;  %v1176_v3 = vpop.f32.mrb[27].mxu1  ;;  %910 = vst [vmem:[%s1592_s30 + $0xa0] sm:$0xff] %v878_v55  ;;  %v879_v5 = vmul.f32 %v1327_v61, %v1575_v51  ;;  %v1657_v41 = vadd.f32 %v1126_v2, %v1529_v50  ;;  %v1660_v6 = vadd.f32 %v1174_v56, %v1529_v50 }
 0x130   : > { %v1329_v4 = vpop.eup %1328  ;;  %1348 = vpow2.f32 %v1048_v46  ;;  %895 = vst [vmem:[%s1592_s30 + $0x28] sm:$0xff] %v863_v40  ;;  %v1129_v49 = vadd.f32 %v1128_v0, %v1127_v57  ;;  %v1177_v11 = vadd.f32 %v1176_v3, %v1175_v58 }
 0x131   : > { %v1331_v7 = vpop.eup %1330  ;;  %v770_v8 = vadd.f32 1.0, %v1329_v4  ;;  %1350 = vpow2.f32 %v1064_v48  ;;  %911 = vst [vmem:[%s1592_s30 + $0xa8] sm:$0xff] %v879_v5  ;;  %v1049_v14 = vmul.f32 -1.442695, %v1657_v41  ;;  %v1065_v25 = vmul.f32 -1.442695, %v1660_v6 }
 0x132   : > { %v1333_v12 = vpop.eup %1332  ;;  %v786_v13 = vadd.f32 1.0, %v1331_v7  ;;  %v1666_v15 = vadd.f32 %v1129_v49, %v1529_v50  ;;  %v1669_v18 = vadd.f32 %v1177_v11, %v1529_v50  ;;  %v1130_v16 = vpop.f32.mrb[28].mxu0 }
 0x133   : > { %v1335_v17 = vpop.eup %1334  ;;  %1352 = vrcp.f32 %v770_v8  ;;  %v771_v51 = vadd.f32 1.0, %v1333_v12  ;;  %v1178_v26 = vpop.f32.mrb[28].mxu1 }
 0x134   : > { %v1337_v19 = vpop.eup %1336  ;;  %1354 = vrcp.f32 %v786_v13  ;;  %v787_v20 = vadd.f32 1.0, %v1335_v17  ;;  %v1050_v29 = vmul.f32 -1.442695, %v1666_v15  ;;  %v1066_v31 = vmul.f32 -1.442695, %v1669_v18  ;;  %v1131_v32 = vpop.f32.mrb[29].mxu0 }
 0x135   : > { %v1339_v27 = vpop.eup %1338  ;;  %v864_v28 = vmul.f32 %v1337_v19, %v1580_v9  ;;  %1356 = vrcp.f32 %v771_v51  ;;  %v1179_v33 = vpop.f32.mrb[29].mxu1  ;;  %v1132_v35 = vadd.f32 %v1131_v32, %v1130_v16 }
 0x136   : > { %v1341_v34 = vpop.eup %1340  ;;  %v880_v22 = vmul.f32 %v1339_v27, %v1583_v10  ;;  %1358 = vrcp.f32 %v787_v20  ;;  %v1180_v36 = vadd.f32 %v1179_v33, %v1178_v26  ;;  %v1133_v59 = vpop.f32.mrb[30].mxu0 }
 0x137   : > { %v1181_v37 = vpop.f32.mrb[30].mxu1  ;;  %v1343_v42 = vpop.eup %1342  ;;  %896 = vst [vmem:[%s1592_s30 + $0x30] sm:$0xff] %v864_v28  ;;  %v865_v9 = vmul.f32 %v1341_v34, %v1595_v23  ;;  %1360 = vpow2.f32 %v1049_v14  ;;  %v1681_v10 = vadd.f32 %v1132_v35, %v1529_v50 }
 0x138   : > { %v1134_v60 = vpop.f32.mrb[31].mxu0  ;;  %v1182_v43 = vpop.f32.mrb[31].mxu1  ;;  %912 = vst [vmem:[%s1592_s30 + $0xb0] sm:$0xff] %v880_v22  ;;  %v881_v45 = vmul.f32 %v1343_v42, %v1598_v24  ;;  %1362 = vpow2.f32 %v1065_v25  ;;  %v1684_v46 = vadd.f32 %v1180_v36, %v1529_v50 }
 0x139   : > { %v1345_v44 = vpop.eup %1344  ;;  %897 = vst [vmem:[%s1592_s30 + $0x38] sm:$0xff] %v865_v9  ;;  %1364 = vpow2.f32 %v1050_v29  ;;  %v1135_v23 = vadd.f32 %v1134_v60, %v1133_v59  ;;  %v1183_v53 = vadd.f32 %v1182_v43, %v1181_v37  ;;  %v1051_v2 = vmul.f32 -1.442695, %v1681_v10 }
 0x13a   : > { %v1347_v48 = vpop.eup %1346  ;;  %v772_v52 = vadd.f32 1.0, %v1345_v44  ;;  %913 = vst [vmem:[%s1592_s30 + $0xb8] sm:$0xff] %v881_v45  ;;  %1366 = vpow2.f32 %v1066_v31  ;;  %v1067_v40 = vmul.f32 -1.442695, %v1684_v46 }
 0x13b   : > { %v1349_v54 = vpop.eup %1348  ;;  %v788_v55 = vadd.f32 1.0, %v1347_v48  ;;  %v1690_v57 = vadd.f32 %v1135_v23, %v1529_v50  ;;  %v1693_v58 = vadd.f32 %v1183_v53, %v1529_v50 }
 0x13c   : > { %v1351_v24 = vpop.eup %1350  ;;  %1368 = vrcp.f32 %v772_v52  ;;  %v773_v56 = vadd.f32 1.0, %v1349_v54 }
 0x13d   : > { %1370 = vrcp.f32 %v788_v55  ;;  %v789_v61 = vadd.f32 1.0, %v1351_v24  ;;  %v1353_v0 = vpop.eup %1352  ;;  %v1052_v3 = vmul.f32 -1.442695, %v1690_v57  ;;  %v1068_v7 = vmul.f32 -1.442695, %v1693_v58 }
 0x13e   : > { %1372 = vrcp.f32 %v773_v56  ;;  %v1355_v4 = vpop.eup %1354  ;;  %v866_v5 = vmul.f32 %v1353_v0, %v1610_v47 }
 0x13f   : > { %1374 = vrcp.f32 %v789_v61  ;;  %v1357_v8 = vpop.eup %1356  ;;  %v882_v50 = vmul.f32 %v1355_v4, %v1613_v1 }
 0x140   : > { %1376 = vpow2.f32 %v1051_v2  ;;  %v1359_v49 = vpop.eup %1358  ;;  %898 = vst [vmem:[%s1592_s30 + $0x40] sm:$0xff] %v866_v5  ;;  %v867_v11 = vmul.f32 %v1357_v8, %v1619_v62 }
 0x141   : > { %1378 = vpow2.f32 %v1067_v40  ;;  %v1361_v12 = vpop.eup %1360  ;;  %914 = vst [vmem:[%s1592_s30 + $0xc0] sm:$0xff] %v882_v50  ;;  %v883_v13 = vmul.f32 %v1359_v49, %v1622_v63 }
 0x142   : > { %1380 = vpow2.f32 %v1052_v3  ;;  %v1363_v14 = vpop.eup %1362  ;;  %899 = vst [vmem:[%s1592_s30 + $0x48] sm:$0xff] %v867_v11  ;;  %v774_v47 = vadd.f32 1.0, %v1361_v12 }
 0x143   : > { %1382 = vpow2.f32 %v1068_v7  ;;  %v1365_v17 = vpop.eup %1364  ;;  %915 = vst [vmem:[%s1592_s30 + $0xc8] sm:$0xff] %v883_v13  ;;  %v790_v51 = vadd.f32 1.0, %v1363_v14 }
 0x144   : > { %v1367_v1 = vpop.eup %1366  ;;  %1384 = vrcp.f32 %v774_v47  ;;  %v775_v19 = vadd.f32 1.0, %v1365_v17 }
 0x145   : > { %1386 = vrcp.f32 %v790_v51  ;;  %v791_v62 = vadd.f32 1.0, %v1367_v1 }
 0x146   : > { %v1369_v20 = vpop.eup %1368  ;;  %1388 = vrcp.f32 %v775_v19 }
 0x147   : > { %v1371_v25 = vpop.eup %1370  ;;  %v868_v63 = vmul.f32 %v1369_v20, %v1634_v30  ;;  %1390 = vrcp.f32 %v791_v62 }
 0x148   : > { %v1373_v16 = vpop.eup %1372  ;;  %v884_v26 = vmul.f32 %v1371_v25, %v1637_v21 }
 0x149   : > { %v1375_v27 = vpop.eup %1374  ;;  %900 = vst [vmem:[%s1592_s30 + $0x50] sm:$0xff] %v868_v63  ;;  %v869_v28 = vmul.f32 %v1373_v16, %v1643_v38 }
 0x14a   : > { %v1377_v29 = vpop.eup %1376  ;;  %916 = vst [vmem:[%s1592_s30 + $0xd0] sm:$0xff] %v884_v26  ;;  %v885_v31 = vmul.f32 %v1375_v27, %v1646_v39 }
 0x14b   : > { %v1379_v32 = vpop.eup %1378  ;;  %901 = vst [vmem:[%s1592_s30 + $0x58] sm:$0xff] %v869_v28  ;;  %v776_v33 = vadd.f32 1.0, %v1377_v29 }
 0x14c   : > { %v1381_v34 = vpop.eup %1380  ;;  %917 = vst [vmem:[%s1592_s30 + $0xd8] sm:$0xff] %v885_v31  ;;  %v792_v30 = vadd.f32 1.0, %v1379_v32 }
 0x14d   : > { %v1383_v22 = vpop.eup %1382  ;;  %1392 = vrcp.f32 %v776_v33  ;;  %v777_v21 = vadd.f32 1.0, %v1381_v34 }
 0x14e   : > { %1394 = vrcp.f32 %v792_v30  ;;  %v793_v35 = vadd.f32 1.0, %v1383_v22  ;;  %v1385_v38 = vpop.eup %1384 }
 0x14f   : > { %1396 = vrcp.f32 %v777_v21  ;;  %v1387_v36 = vpop.eup %1386  ;;  %v870_v39 = vmul.f32 %v1385_v38, %v1657_v41 }
 0x150   : > { %1398 = vrcp.f32 %v793_v35  ;;  %v1389_v59 = vpop.eup %1388  ;;  %v886_v37 = vmul.f32 %v1387_v36, %v1660_v6 }
 0x151   : > { %v1391_v42 = vpop.eup %1390  ;;  %902 = vst [vmem:[%s1592_s30 + $0x60] sm:$0xff] %v870_v39  ;;  %v871_v9 = vmul.f32 %v1389_v59, %v1666_v15 }
 0x152   : > { %918 = vst [vmem:[%s1592_s30 + $0xe0] sm:$0xff] %v886_v37  ;;  %v887_v60 = vmul.f32 %v1391_v42, %v1669_v18 }
 0x153   : > { %903 = vst [vmem:[%s1592_s30 + $0x68] sm:$0xff] %v871_v9 }
 0x154   : > { %919 = vst [vmem:[%s1592_s30 + $0xe8] sm:$0xff] %v887_v60 }
 0x157   : > { %v1393_v43 = vpop.eup %1392 }
 0x158   : > { %v1395_v44 = vpop.eup %1394  ;;  %v872_v41 = vmul.f32 %v1393_v43, %v1681_v10 }
 0x159   : > { %v1397_v45 = vpop.eup %1396  ;;  %v888_v48 = vmul.f32 %v1395_v44, %v1684_v46 }
 0x15a   : > { %v1399_v6 = vpop.eup %1398  ;;  %904 = vst [vmem:[%s1592_s30 + $0x70] sm:$0xff] %v872_v41  ;;  %v873_v52 = vmul.f32 %v1397_v45, %v1690_v57 }
 0x15b   : > { %920 = vst [vmem:[%s1592_s30 + $0xf0] sm:$0xff] %v888_v48  ;;  %v889_v15 = vmul.f32 %v1399_v6, %v1693_v58 }
 0x15c   : > { %905 = vst [vmem:[%s1592_s30 + $0x78] sm:$0xff] %v873_v52 }
 0x15d   : > { %921 = vst [vmem:[%s1592_s30 + $0xf8] sm:$0xff] %v889_v15 }
 0x15e PF: > { %s13_s12 = sadd.s32 1, %s1406_s12  }
 0x15f   : > { %p10_p4 = scmp.ge.s32.totalorder %s13_s12, 4  }
 0x161   :  { %12 = sbr.rel (!%p10_p4) target bundleno = 1 (0x1), region = 62 }

// kernel: encoder_forward_pallas.16
= control target key start
LH: loop header
LB: loop body
LE: loop exit
PB: predicated region body
PF: predicated region fallthrough
CT: control target
= control target key end

     0   :  { %s895_s15 = smov 0   ;;  %s1247_s0 = inlined_call_operand.vmem [shape: f32[512,128], index: 0, kind: input, shape index: {}]   ;;  %s1248_s1 = inlined_call_operand.vmem [shape: f32[2,2,128], index: 1, kind: input, shape index: {}]   ;;  %s1249_s2 = inlined_call_operand.vmem [shape: f32[1,128], index: 2, kind: input, shape index: {}]   ;;  %s1250_s3 = inlined_call_operand.vmem [shape: f32[1,128], index: 3, kind: input, shape index: {}]   ;;  %s1251_s4 = inlined_call_operand.vmem [shape: f32[512,128], index: 4, kind: output, shape index: {}]  }
   0x1 LB: > { %s679_s16 = sadd.s32 4294967295, %s868_s15   ;;  %p683_p0 = scmp.ge.s32.totalorder %s868_s15, 1  ;;  %s868_s15 = sphi %s895_s15, %s14_s15  }
   0x2   : > { %p163_p1 = scmp.lt.s32.totalorder %s868_s15, 3 }
   0x4   : > { %p164_p2 = pnand %p683_p0, %p163_p1 }
   0x5   : > { %v201_v0 = vld [vmem:[%s1248_s1] sm:$0x3] (!%p164_p2)  ;;  %v202_v1 = vld [vmem:[%s1248_s1 + $0x2] sm:$0x3] (!%p164_p2)  ;;  %vm203_vm0 = vcmask (!%p164_p2), 1041408   ;;  %s684_s21 = sshll.u32 (!%p164_p2), %s679_s16, 5  ;;  %v248_v9 = vlaneseq (!%p164_p2) }
   0x6   : > { %167 = sbr.rel (%p164_p2) target bundleno = 126 (0x7e), region = 36  ;;  %v204_v2 = vsel (!%p164_p2), %vm203_vm0, %v201_v0, 0.0  ;;  %v205_v3 = vsel (!%p164_p2), %vm203_vm0, %v202_v1, 0.0  ;;  %p190_p3 = scmp.lt.s32.totalorder (!%p164_p2), %s684_s21, 63  ;;  %v688_v16 = vld [vmem:[%s1249_s2] ss:$0 sm:$0xff] (!%p164_p2) }
   0x7   : > { %v206_v4 = vadd.f32 (!%p164_p2), %v205_v3, %v204_v2  ;;  %v249_v12 = vshrl.u32 (!%p164_p2), %v248_v9, 7  ;;  %v949_v40 = vld [vmem:[%s1250_s3] ss:$0 sm:$0xff] (!%p164_p2) }
   0x9   : > { %v207_v5 = vmul.f32 (!%p164_p2), 0.001953125, %v206_v4  ;;  %v250_v13 = vsub.s32 (!%p164_p2), 0, %v249_v12  ;;  %v294_v21 = vsub.s32 (!%p164_p2), 1, %v249_v12 }
   0xb   : > { %v208_v6 = vmul.f32 (!%p164_p2), %v207_v5, %v207_v5  ;;  %v919_v14 = vrot.slane (!%p164_p2), %v207_v5, %v250_v13 }
   0xd   : > { %v210_v7 = vrot.slane %v208_v6, 7  ;;  %s1253_s21 = smov (!%p190_p3, %s684_s21), 63 }
   0xe   : > { %s685_s22 = sshll.u32 %s1253_s21, 3 }
   0xf   : > { %v212_v8 = vsub.f32 %v207_v5, %v210_v7  ;;  %s917_s25 = scalar_lea.vmem %s1247_s0, %s685_s22  ;;  %s1104_s6 = scalar_lea.vmem %s1251_s4, %s685_s22 }
  0x10   : > { %v216_v15 = vld [vmem:[%s917_s25] sm:$0xff]  ;;  %v217_v17 = vld [vmem:[%s917_s25 + $0x8] sm:$0xff]  ;;  %v218_v18 = vld [vmem:[%s917_s25 + $0x10] sm:$0xff] }
  0x11   : > { %v213_v10 = vmax.f32 %v212_v8, 0.0  ;;  %v219_v19 = vld [vmem:[%s917_s25 + $0x18] sm:$0xff]  ;;  %v220_v20 = vld [vmem:[%s917_s25 + $0x20] sm:$0xff]  ;;  %v221_v22 = vld [vmem:[%s917_s25 + $0x28] sm:$0xff]  ;;  %v252_v26 = vsub.f32 %v216_v15, %v919_v14  ;;  %v253_v29 = vsub.f32 %v217_v17, %v919_v14  ;;  %v254_v30 = vsub.f32 %v218_v18, %v919_v14 }
  0x12   : > { %v222_v23 = vld [vmem:[%s917_s25 + $0x30] sm:$0xff]  ;;  %v223_v24 = vld [vmem:[%s917_s25 + $0x38] sm:$0xff]  ;;  %v224_v27 = vld [vmem:[%s917_s25 + $0x40] sm:$0xff]  ;;  %v255_v31 = vsub.f32 %v219_v19, %v919_v14  ;;  %v256_v35 = vsub.f32 %v220_v20, %v919_v14  ;;  %v257_v36 = vsub.f32 %v221_v22, %v919_v14 }
  0x13   : > { %v214_v11 = vadd.f32 1e-05, %v213_v10  ;;  %v225_v32 = vld [vmem:[%s917_s25 + $0x48] sm:$0xff]  ;;  %v226_v33 = vld [vmem:[%s917_s25 + $0x50] sm:$0xff]  ;;  %v227_v34 = vld [vmem:[%s917_s25 + $0x58] sm:$0xff]  ;;  %v258_v37 = vsub.f32 %v222_v23, %v919_v14  ;;  %v259_v38 = vsub.f32 %v223_v24, %v919_v14  ;;  %v260_v41 = vsub.f32 %v224_v27, %v919_v14 }
  0x14   : > { %v261_v42 = vsub.f32 %v225_v32, %v919_v14  ;;  %v262_v43 = vsub.f32 %v226_v33, %v919_v14  ;;  %v263_v44 = vsub.f32 %v227_v34, %v919_v14  ;;  %v228_v49 = vld [vmem:[%s917_s25 + $0x60] sm:$0xff]  ;;  %v229_v17 = vld [vmem:[%s917_s25 + $0x68] sm:$0xff]  ;;  %v230_v20 = vld [vmem:[%s917_s25 + $0x70] sm:$0xff] }
  0x15   : > { %732 = vrsqrt.f32 %v214_v11  ;;  %v264_v61 = vsub.f32 %v228_v49, %v919_v14  ;;  %v231_v22 = vld [vmem:[%s917_s25 + $0x78] sm:$0xff]  ;;  %v265_v24 = vsub.f32 %v229_v17, %v919_v14  ;;  %v1033_v33 = vld [vmem:[%s917_s25 + $0xa0] sm:$0xff] }
  0x16   : > { %v267_v32 = vsub.f32 %v231_v22, %v919_v14  ;;  %v1053_v49 = vld [vmem:[%s917_s25 + $0xc0] sm:$0xff] }
  0x1f   : > { %v733_v25 = vpop.eup %732 }
  0x20   : > { %v291_v28 = vmul.f32 %v733_v25, %v688_v16  ;;  %v232_v25 = vld [vmem:[%s917_s25 + $0x80] sm:$0xff] }
  0x21   : > { %v268_v34 = vsub.f32 %v232_v25, %v919_v14 }
  0x22   : > { %v944_v39 = vrot.slane %v291_v28, %v294_v21  ;;  %v266_v28 = vsub.f32 %v230_v20, %v919_v14 }
  0x24   : > { %v296_v45 = vmul.f32 %v944_v39, %v252_v26  ;;  %v297_v46 = vmul.f32 %v944_v39, %v253_v29  ;;  %v298_v47 = vmul.f32 %v944_v39, %v254_v30  ;;  %v299_v48 = vmul.f32 %v944_v39, %v255_v31  ;;  %v233_v26 = vld [vmem:[%s917_s25 + $0x88] sm:$0xff]  ;;  %v234_v29 = vld [vmem:[%s917_s25 + $0x90] sm:$0xff]  ;;  %v235_v30 = vld [vmem:[%s917_s25 + $0x98] sm:$0xff] }
  0x25   : > { %v300_v50 = vmul.f32 %v944_v39, %v256_v35  ;;  %v301_v51 = vmul.f32 %v944_v39, %v257_v36  ;;  %v302_v52 = vmul.f32 %v944_v39, %v258_v37  ;;  %v303_v53 = vmul.f32 %v944_v39, %v259_v38  ;;  %v1038_v36 = vld [vmem:[%s917_s25 + $0xa8] sm:$0xff] }
  0x26   : > { %v965_v54 = vadd.f32 %v949_v40, %v296_v45  ;;  %v968_v55 = vadd.f32 %v949_v40, %v297_v46  ;;  %v971_v56 = vadd.f32 %v949_v40, %v298_v47  ;;  %v974_v57 = vadd.f32 %v949_v40, %v299_v48 }
  0x27   : > { %v977_v58 = vadd.f32 %v949_v40, %v300_v50  ;;  %v980_v59 = vadd.f32 %v949_v40, %v301_v51  ;;  %v983_v60 = vadd.f32 %v949_v40, %v302_v52  ;;  %v304_v1 = vmul.f32 %v944_v39, %v260_v41 }
  0x28   : > { %v690_v62 = vmul.f32 -1.442695, %v965_v54  ;;  %v691_v63 = vmul.f32 -1.442695, %v968_v55  ;;  %v692_v0 = vmul.f32 -1.442695, %v971_v56  ;;  %v992_v3 = vadd.f32 %v949_v40, %v303_v53 }
  0x29   : > { %v693_v2 = vmul.f32 -1.442695, %v974_v57  ;;  %v305_v4 = vmul.f32 %v944_v39, %v261_v42  ;;  %v694_v5 = vmul.f32 -1.442695, %v977_v58  ;;  %v695_v6 = vmul.f32 -1.442695, %v980_v59 }
  0x2a   : > { %734 = vpow2.f32 %v690_v62  ;;  %v998_v7 = vadd.f32 %v949_v40, %v304_v1  ;;  %v306_v9 = vmul.f32 %v944_v39, %v262_v43  ;;  %v307_v10 = vmul.f32 %v944_v39, %v263_v44  ;;  %v1044_v43 = vld [vmem:[%s917_s25 + $0xb0] sm:$0xff]  ;;  %v1047_v44 = vld [vmem:[%s917_s25 + $0xb8] sm:$0xff] }
  0x2b   : > { %736 = vpow2.f32 %v691_v63  ;;  %v1001_v8 = vadd.f32 %v949_v40, %v305_v4  ;;  %v696_v11 = vmul.f32 -1.442695, %v983_v60  ;;  %v308_v12 = vmul.f32 %v944_v39, %v264_v61 }
  0x2c   : > { %738 = vpow2.f32 %v692_v0  ;;  %v697_v13 = vmul.f32 -1.442695, %v992_v3  ;;  %v1009_v15 = vadd.f32 %v949_v40, %v306_v9  ;;  %v1012_v16 = vadd.f32 %v949_v40, %v307_v10 }
  0x2d   : > { %740 = vpow2.f32 %v693_v2  ;;  %v698_v18 = vmul.f32 -1.442695, %v998_v7  ;;  %v1017_v19 = vadd.f32 %v949_v40, %v308_v12  ;;  %v699_v21 = vmul.f32 -1.442695, %v1001_v8 }
  0x2e   : > { %742 = vpow2.f32 %v694_v5  ;;  %v700_v23 = vmul.f32 -1.442695, %v1009_v15  ;;  %v701_v27 = vmul.f32 -1.442695, %v1012_v16  ;;  %v269_v35 = vsub.f32 %v233_v26, %v919_v14 }
  0x2f   : > { %744 = vpow2.f32 %v695_v6  ;;  %v702_v31 = vmul.f32 -1.442695, %v1017_v19  ;;  %v309_v38 = vmul.f32 %v944_v39, %v265_v24  ;;  %v270_v41 = vsub.f32 %v234_v29, %v919_v14  ;;  %v1068_v6 = vld [vmem:[%s917_s25 + $0xc8] sm:$0xff] }
  0x30   : > { %746 = vpow2.f32 %v696_v11  ;;  %v271_v42 = vsub.f32 %v235_v30, %v919_v14  ;;  %v310_v47 = vmul.f32 %v944_v39, %v266_v28  ;;  %v272_v48 = vsub.f32 %v1033_v33, %v919_v14 }
  0x31   : > { %748 = vpow2.f32 %v697_v13  ;;  %v311_v52 = vmul.f32 %v944_v39, %v267_v32  ;;  %v273_v53 = vsub.f32 %v1038_v36, %v919_v14  ;;  %v274_v63 = vsub.f32 %v1044_v43, %v919_v14 }
  0x32   : > { %750 = vpow2.f32 %v698_v18  ;;  %v275_v0 = vsub.f32 %v1047_v44, %v919_v14  ;;  %v1063_v4 = vadd.f32 %v949_v40, %v309_v38  ;;  %v276_v5 = vsub.f32 %v1053_v49, %v919_v14 }
  0x33   : > { %752 = vpow2.f32 %v699_v21  ;;  %v1071_v11 = vadd.f32 %v949_v40, %v310_v47  ;;  %v312_v12 = vmul.f32 %v944_v39, %v268_v34  ;;  %v1075_v18 = vadd.f32 %v949_v40, %v311_v52 }
  0x34   : > { %v735_v37 = vpop.eup %734  ;;  %754 = vpow2.f32 %v700_v23  ;;  %v313_v20 = vmul.f32 %v944_v39, %v269_v35  ;;  %v314_v23 = vmul.f32 %v944_v39, %v270_v41  ;;  %v277_v24 = vsub.f32 %v1068_v6, %v919_v14 }
  0x35   : > { %v737_v45 = vpop.eup %736  ;;  %v463_v46 = vadd.f32 1.0, %v735_v37  ;;  %756 = vpow2.f32 %v701_v27  ;;  %v703_v27 = vmul.f32 -1.442695, %v1063_v4  ;;  %v315_v28 = vmul.f32 %v944_v39, %v271_v42 }
  0x36   : > { %v739_v50 = vpop.eup %738  ;;  %v464_v51 = vadd.f32 1.0, %v737_v45  ;;  %758 = vpow2.f32 %v702_v31  ;;  %v704_v31 = vmul.f32 -1.442695, %v1071_v11  ;;  %v1085_v32 = vadd.f32 %v949_v40, %v312_v12 }
  0x37   : > { %v741_v61 = vpop.eup %740  ;;  %760 = vrcp.f32 %v463_v46  ;;  %v465_v62 = vadd.f32 1.0, %v739_v50  ;;  %v705_v35 = vmul.f32 -1.442695, %v1075_v18  ;;  %v1089_v36 = vadd.f32 %v949_v40, %v313_v20 }
  0x38   : > { %v743_v1 = vpop.eup %742  ;;  %762 = vrcp.f32 %v464_v51  ;;  %v466_v2 = vadd.f32 1.0, %v741_v61  ;;  %v1092_v41 = vadd.f32 %v949_v40, %v314_v23  ;;  %v316_v42 = vmul.f32 %v944_v39, %v272_v48 }
  0x39   : > { %v745_v9 = vpop.eup %744  ;;  %764 = vrcp.f32 %v465_v62  ;;  %v467_v10 = vadd.f32 1.0, %v743_v1  ;;  %v1096_v45 = vadd.f32 %v949_v40, %v315_v28  ;;  %v317_v46 = vmul.f32 %v944_v39, %v273_v53 }
  0x3a   : > { %v747_v13 = vpop.eup %746  ;;  %766 = vrcp.f32 %v466_v2  ;;  %v468_v17 = vadd.f32 1.0, %v745_v9  ;;  %v706_v48 = vmul.f32 -1.442695, %v1085_v32  ;;  %v318_v50 = vmul.f32 %v944_v39, %v274_v63 }
  0x3b   : > { %v749_v21 = vpop.eup %748  ;;  %768 = vrcp.f32 %v467_v10  ;;  %v469_v22 = vadd.f32 1.0, %v747_v13  ;;  %v707_v53 = vmul.f32 -1.442695, %v1089_v36  ;;  %v319_v61 = vmul.f32 %v944_v39, %v275_v0 }
  0x3c   : > { %v751_v25 = vpop.eup %750  ;;  %770 = vrcp.f32 %v468_v17  ;;  %v470_v26 = vadd.f32 1.0, %v749_v21  ;;  %v1113_v2 = vadd.f32 %v949_v40, %v316_v42  ;;  %v320_v6 = vmul.f32 %v944_v39, %v276_v5 }
  0x3d   : > { %v753_v29 = vpop.eup %752  ;;  %772 = vrcp.f32 %v469_v22  ;;  %v471_v30 = vadd.f32 1.0, %v751_v25  ;;  %v1119_v9 = vadd.f32 %v949_v40, %v317_v46  ;;  %v321_v0 = vmul.f32 %v944_v39, %v277_v24 }
  0x3e   : > { %v755_v33 = vpop.eup %754  ;;  %774 = vrcp.f32 %v470_v26  ;;  %v472_v34 = vadd.f32 1.0, %v753_v29  ;;  %v708_v12 = vmul.f32 -1.442695, %v1092_v41  ;;  %v1126_v5 = vadd.f32 %v949_v40, %v318_v50 }
  0x3f   : > { %v757_v37 = vpop.eup %756  ;;  %776 = vrcp.f32 %v471_v30  ;;  %v473_v38 = vadd.f32 1.0, %v755_v33  ;;  %v709_v17 = vmul.f32 -1.442695, %v1096_v45  ;;  %v1132_v20 = vadd.f32 %v949_v40, %v319_v61  ;;  %v247_v61 = vld [vmem:[%s917_s25 + $0xf8] sm:$0xff] }
  0x40   : > { %v759_v43 = vpop.eup %758  ;;  %778 = vrcp.f32 %v472_v34  ;;  %v474_v44 = vadd.f32 1.0, %v757_v37  ;;  %v710_v22 = vmul.f32 -1.442695, %v1113_v2  ;;  %v1138_v23 = vadd.f32 %v949_v40, %v320_v6  ;;  %v242_v34 = vld [vmem:[%s917_s25 + $0xd0] sm:$0xff] }
  0x41   : > { %v761_v47 = vpop.eup %760  ;;  %780 = vrcp.f32 %v473_v38  ;;  %v475_v49 = vadd.f32 1.0, %v759_v43  ;;  %v711_v25 = vmul.f32 -1.442695, %v1119_v9  ;;  %v1144_v26 = vadd.f32 %v949_v40, %v321_v0  ;;  %v243_v38 = vld [vmem:[%s917_s25 + $0xd8] sm:$0xff]  ;;  %v244_v43 = vld [vmem:[%s917_s25 + $0xe0] sm:$0xff] }
  0x42   : > { %v763_v51 = vpop.eup %762  ;;  %v559_v52 = vmul.f32 %v761_v47, %v965_v54  ;;  %782 = vrcp.f32 %v474_v44  ;;  %v712_v28 = vmul.f32 -1.442695, %v1126_v5  ;;  %v713_v30 = vmul.f32 -1.442695, %v1132_v20  ;;  %v245_v47 = vld [vmem:[%s917_s25 + $0xe8] sm:$0xff] }
  0x43   : > { %v765_v62 = vpop.eup %764  ;;  %v560_v1 = vmul.f32 %v763_v51, %v968_v55  ;;  %784 = vrcp.f32 %v475_v49  ;;  %v279_v50 = vsub.f32 %v243_v38, %v919_v14  ;;  %v246_v51 = vld [vmem:[%s917_s25 + $0xf0] sm:$0xff] }
  0x44   : > { %v767_v63 = vpop.eup %766  ;;  %591 = vst [vmem:[%s1104_s6] sm:$0xff] %v559_v52  ;;  %v561_v54 = vmul.f32 %v765_v62, %v971_v56  ;;  %786 = vpow2.f32 %v703_v27  ;;  %v282_v0 = vsub.f32 %v246_v51, %v919_v14 }
  0x45   : > { %v769_v10 = vpop.eup %768  ;;  %592 = vst [vmem:[%s1104_s6 + $0x8] sm:$0xff] %v560_v1  ;;  %v562_v55 = vmul.f32 %v767_v63, %v974_v57  ;;  %788 = vpow2.f32 %v704_v31  ;;  %v281_v1 = vsub.f32 %v245_v47, %v919_v14 }
  0x46   : > { %v771_v13 = vpop.eup %770  ;;  %593 = vst [vmem:[%s1104_s6 + $0x10] sm:$0xff] %v561_v54  ;;  %v563_v56 = vmul.f32 %v769_v10, %v977_v58  ;;  %790 = vpow2.f32 %v705_v35 }
  0x47   : > { %v773_v21 = vpop.eup %772  ;;  %594 = vst [vmem:[%s1104_s6 + $0x18] sm:$0xff] %v562_v55  ;;  %v564_v57 = vmul.f32 %v771_v13, %v980_v59  ;;  %792 = vpow2.f32 %v706_v48  ;;  %v283_v13 = vsub.f32 %v247_v61, %v919_v14 }
  0x48   : > { %v775_v24 = vpop.eup %774  ;;  %595 = vst [vmem:[%s1104_s6 + $0x20] sm:$0xff] %v563_v56  ;;  %v565_v58 = vmul.f32 %v773_v21, %v983_v60  ;;  %794 = vpow2.f32 %v707_v53  ;;  %v280_v53 = vsub.f32 %v244_v43, %v919_v14 }
  0x49   : > { %v777_v59 = vpop.eup %776  ;;  %596 = vst [vmem:[%s1104_s6 + $0x28] sm:$0xff] %v564_v57  ;;  %v566_v27 = vmul.f32 %v775_v24, %v992_v3  ;;  %796 = vpow2.f32 %v708_v12  ;;  %v714_v3 = vmul.f32 -1.442695, %v1138_v23  ;;  %v323_v12 = vmul.f32 %v944_v39, %v279_v50 }
  0x4a   : > { %v779_v29 = vpop.eup %778  ;;  %597 = vst [vmem:[%s1104_s6 + $0x30] sm:$0xff] %v565_v58  ;;  %v567_v60 = vmul.f32 %v777_v59, %v998_v7  ;;  %798 = vpow2.f32 %v709_v17  ;;  %v715_v7 = vmul.f32 -1.442695, %v1144_v26  ;;  %v324_v21 = vmul.f32 %v944_v39, %v280_v53 }
  0x4b   : > { %v781_v31 = vpop.eup %780  ;;  %598 = vst [vmem:[%s1104_s6 + $0x38] sm:$0xff] %v566_v27  ;;  %v568_v33 = vmul.f32 %v779_v29, %v1001_v8  ;;  %800 = vpow2.f32 %v710_v22  ;;  %v325_v24 = vmul.f32 %v944_v39, %v281_v1  ;;  %v326_v27 = vmul.f32 %v944_v39, %v282_v0 }
  0x4c   : > { %v783_v35 = vpop.eup %782  ;;  %599 = vst [vmem:[%s1104_s6 + $0x40] sm:$0xff] %v567_v60  ;;  %v569_v37 = vmul.f32 %v781_v31, %v1009_v15  ;;  %802 = vpow2.f32 %v711_v25  ;;  %v278_v15 = vsub.f32 %v242_v34, %v919_v14  ;;  %v1185_v29 = vadd.f32 %v949_v40, %v323_v12 }
  0x4d   : > { %v785_v42 = vpop.eup %784  ;;  %600 = vst [vmem:[%s1104_s6 + $0x48] sm:$0xff] %v568_v33  ;;  %v570_v8 = vmul.f32 %v783_v35, %v1012_v16  ;;  %804 = vpow2.f32 %v712_v28  ;;  %v327_v60 = vmul.f32 %v944_v39, %v283_v13  ;;  %v1189_v33 = vadd.f32 %v949_v40, %v324_v21 }
  0x4e   : > { %v787_v44 = vpop.eup %786  ;;  %601 = vst [vmem:[%s1104_s6 + $0x50] sm:$0xff] %v569_v37  ;;  %v571_v46 = vmul.f32 %v785_v42, %v1017_v19  ;;  %806 = vpow2.f32 %v713_v30  ;;  %v322_v54 = vmul.f32 %v944_v39, %v278_v15  ;;  %v1192_v35 = vadd.f32 %v949_v40, %v325_v24 }
  0x4f   : > { %v789_v49 = vpop.eup %788  ;;  %602 = vst [vmem:[%s1104_s6 + $0x58] sm:$0xff] %v570_v8  ;;  %v476_v48 = vadd.f32 1.0, %v787_v44  ;;  %808 = vpow2.f32 %v714_v3  ;;  %v1196_v39 = vadd.f32 %v949_v40, %v326_v27  ;;  %v717_v43 = vmul.f32 -1.442695, %v1185_v29 }
  0x50   : > { %v791_v16 = vpop.eup %790  ;;  %603 = vst [vmem:[%s1104_s6 + $0x60] sm:$0xff] %v571_v46  ;;  %v477_v52 = vadd.f32 1.0, %v789_v49  ;;  %810 = vpow2.f32 %v715_v7  ;;  %v1181_v59 = vadd.f32 %v949_v40, %v322_v54  ;;  %v1200_v44 = vadd.f32 %v949_v40, %v327_v60 }
  0x51   : > { %v793_v62 = vpop.eup %792  ;;  %812 = vrcp.f32 %v476_v48  ;;  %v478_v19 = vadd.f32 1.0, %v791_v16  ;;  %v718_v47 = vmul.f32 -1.442695, %v1189_v33  ;;  %v719_v50 = vmul.f32 -1.442695, %v1192_v35 }
  0x52   : > { %v795_v6 = vpop.eup %794  ;;  %814 = vrcp.f32 %v477_v52  ;;  %v479_v63 = vadd.f32 1.0, %v793_v62  ;;  %v716_v38 = vmul.f32 -1.442695, %v1181_v59  ;;  %v720_v40 = vmul.f32 -1.442695, %v1196_v39 }
  0x53   : > { %v797_v10 = vpop.eup %796  ;;  %816 = vrcp.f32 %v478_v19  ;;  %v480_v55 = vadd.f32 1.0, %v795_v6 }
  0x54   : > { %v799_v56 = vpop.eup %798  ;;  %818 = vrcp.f32 %v479_v63  ;;  %v481_v17 = vadd.f32 1.0, %v797_v10 }
  0x55   : > { %v801_v57 = vpop.eup %800  ;;  %820 = vrcp.f32 %v480_v55  ;;  %v482_v22 = vadd.f32 1.0, %v799_v56 }
  0x56   : > { %v803_v58 = vpop.eup %802  ;;  %822 = vrcp.f32 %v481_v17  ;;  %v483_v25 = vadd.f32 1.0, %v801_v57 }
  0x57   : > { %v805_v28 = vpop.eup %804  ;;  %824 = vrcp.f32 %v482_v22  ;;  %v484_v14 = vadd.f32 1.0, %v803_v58 }
  0x58   : > { %v807_v30 = vpop.eup %806  ;;  %826 = vrcp.f32 %v483_v25  ;;  %v485_v31 = vadd.f32 1.0, %v805_v28 }
  0x59   : > { %v809_v3 = vpop.eup %808  ;;  %828 = vrcp.f32 %v484_v14  ;;  %v486_v34 = vadd.f32 1.0, %v807_v30 }
  0x5a   : > { %v811_v37 = vpop.eup %810  ;;  %830 = vrcp.f32 %v485_v31  ;;  %v487_v7 = vadd.f32 1.0, %v809_v3 }
  0x5b   : > { %v813_v42 = vpop.eup %812  ;;  %832 = vrcp.f32 %v486_v34  ;;  %v488_v8 = vadd.f32 1.0, %v811_v37 }
  0x5c   : > { %v815_v46 = vpop.eup %814  ;;  %v572_v15 = vmul.f32 %v813_v42, %v1063_v4  ;;  %834 = vrcp.f32 %v487_v7 }
  0x5d   : > { %v817_v49 = vpop.eup %816  ;;  %v573_v48 = vmul.f32 %v815_v46, %v1071_v11  ;;  %836 = vrcp.f32 %v488_v8  ;;  %v721_v11 = vmul.f32 -1.442695, %v1200_v44 }
  0x5e   : > { %v819_v51 = vpop.eup %818  ;;  %604 = vst [vmem:[%s1104_s6 + $0x68] sm:$0xff] %v572_v15  ;;  %v574_v16 = vmul.f32 %v817_v49, %v1075_v18  ;;  %838 = vpow2.f32 %v716_v38 }
  0x5f   : > { %v821_v4 = vpop.eup %820  ;;  %605 = vst [vmem:[%s1104_s6 + $0x70] sm:$0xff] %v573_v48  ;;  %v575_v52 = vmul.f32 %v819_v51, %v1085_v32  ;;  %840 = vpow2.f32 %v717_v43 }
  0x60   : > { %v823_v53 = vpop.eup %822  ;;  %606 = vst [vmem:[%s1104_s6 + $0x78] sm:$0xff] %v574_v16  ;;  %v576_v61 = vmul.f32 %v821_v4, %v1089_v36  ;;  %842 = vpow2.f32 %v718_v47 }
  0x61   : > { %v825_v62 = vpop.eup %824  ;;  %607 = vst [vmem:[%s1104_s6 + $0x80] sm:$0xff] %v575_v52  ;;  %v577_v18 = vmul.f32 %v823_v53, %v1092_v41  ;;  %844 = vpow2.f32 %v719_v50 }
  0x62   : > { %v827_v19 = vpop.eup %826  ;;  %608 = vst [vmem:[%s1104_s6 + $0x88] sm:$0xff] %v576_v61  ;;  %v578_v32 = vmul.f32 %v825_v62, %v1096_v45  ;;  %846 = vpow2.f32 %v720_v40 }
  0x63   : > { %v829_v1 = vpop.eup %828  ;;  %609 = vst [vmem:[%s1104_s6 + $0x90] sm:$0xff] %v577_v18  ;;  %v579_v6 = vmul.f32 %v827_v19, %v1113_v2  ;;  %848 = vpow2.f32 %v721_v11 }
  0x64   : > { %v831_v36 = vpop.eup %830  ;;  %610 = vst [vmem:[%s1104_s6 + $0x98] sm:$0xff] %v578_v32  ;;  %v580_v63 = vmul.f32 %v829_v1, %v1119_v9 }
  0x65   : > { %v833_v41 = vpop.eup %832  ;;  %611 = vst [vmem:[%s1104_s6 + $0xa0] sm:$0xff] %v579_v6  ;;  %v581_v54 = vmul.f32 %v831_v36, %v1126_v5 }
  0x66   : > { %v835_v0 = vpop.eup %834  ;;  %612 = vst [vmem:[%s1104_s6 + $0xa8] sm:$0xff] %v580_v63  ;;  %v582_v45 = vmul.f32 %v833_v41, %v1132_v20 }
  0x67   : > { %v837_v10 = vpop.eup %836  ;;  %613 = vst [vmem:[%s1104_s6 + $0xb0] sm:$0xff] %v581_v54  ;;  %v583_v55 = vmul.f32 %v835_v0, %v1138_v23 }
  0x68   : > { %v839_v2 = vpop.eup %838  ;;  %614 = vst [vmem:[%s1104_s6 + $0xb8] sm:$0xff] %v582_v45  ;;  %v584_v12 = vmul.f32 %v837_v10, %v1144_v26 }
  0x69   : > { %v841_v13 = vpop.eup %840  ;;  %615 = vst [vmem:[%s1104_s6 + $0xc0] sm:$0xff] %v583_v55  ;;  %v489_v9 = vadd.f32 1.0, %v839_v2 }
  0x6a   : > { %v843_v56 = vpop.eup %842  ;;  %616 = vst [vmem:[%s1104_s6 + $0xc8] sm:$0xff] %v584_v12  ;;  %v490_v17 = vadd.f32 1.0, %v841_v13 }
  0x6b   : > { %v845_v21 = vpop.eup %844  ;;  %850 = vrcp.f32 %v489_v9  ;;  %v491_v5 = vadd.f32 1.0, %v843_v56 }
  0x6c   : > { %v847_v57 = vpop.eup %846  ;;  %852 = vrcp.f32 %v490_v17  ;;  %v492_v20 = vadd.f32 1.0, %v845_v21 }
  0x6d   : > { %v849_v22 = vpop.eup %848  ;;  %854 = vrcp.f32 %v491_v5  ;;  %v493_v23 = vadd.f32 1.0, %v847_v57 }
  0x6e   : > { %856 = vrcp.f32 %v492_v20  ;;  %v494_v26 = vadd.f32 1.0, %v849_v22 }
  0x6f   : > { %858 = vrcp.f32 %v493_v23 }
  0x70   : > { %860 = vrcp.f32 %v494_v26 }
  0x75   : > { %v851_v24 = vpop.eup %850 }
  0x76   : > { %v853_v58 = vpop.eup %852  ;;  %v585_v25 = vmul.f32 %v851_v24, %v1181_v59 }
  0x77   : > { %v855_v27 = vpop.eup %854  ;;  %v586_v28 = vmul.f32 %v853_v58, %v1185_v29 }
  0x78   : > { %v857_v14 = vpop.eup %856  ;;  %617 = vst [vmem:[%s1104_s6 + $0xd0] sm:$0xff] %v585_v25  ;;  %v587_v60 = vmul.f32 %v855_v27, %v1189_v33 }
  0x79   : > { %v859_v30 = vpop.eup %858  ;;  %618 = vst [vmem:[%s1104_s6 + $0xd8] sm:$0xff] %v586_v28  ;;  %v588_v31 = vmul.f32 %v857_v14, %v1192_v35 }
  0x7a   : > { %v861_v3 = vpop.eup %860  ;;  %619 = vst [vmem:[%s1104_s6 + $0xe0] sm:$0xff] %v587_v60  ;;  %v589_v34 = vmul.f32 %v859_v30, %v1196_v39 }
  0x7b   : > { %620 = vst [vmem:[%s1104_s6 + $0xe8] sm:$0xff] %v588_v31  ;;  %v590_v37 = vmul.f32 %v861_v3, %v1200_v44 }
  0x7c   : > { %621 = vst [vmem:[%s1104_s6 + $0xf0] sm:$0xff] %v589_v34 }
  0x7d   : > { %622 = vst [vmem:[%s1104_s6 + $0xf8] sm:$0xff] %v590_v37 }
  0x7e PF: > { %s14_s15 = sadd.s32 1, %s868_s15  }
  0x7f   : > { %p11_p4 = scmp.ge.s32.totalorder %s14_s15, 4  }
  0x81   :  { %13 = sbr.rel (!%p11_p4) target bundleno = 1 (0x1), region = 66 }

// kernel: encoder_forward_pallas.15
= control target key start
LH: loop header
LB: loop body
LE: loop exit
PB: predicated region body
PF: predicated region fallthrough
CT: control target
= control target key end

     0   :  { %s951_s12 = smov 0   ;;  %s1134_s0 = inlined_call_operand.vmem [shape: bf16[512,128], index: 0, kind: input, shape index: {}]   ;;  %s1135_s1 = inlined_call_operand.vmem [shape: bf16[128,128], index: 1, kind: input, shape index: {}]   ;;  %s1136_s2 = inlined_call_operand.vmem [shape: f32[512,128], index: 2, kind: output, shape index: {0}]   ;;  %s1137_s3 = inlined_call_operand.vmem [shape: f32[2,2,128], index: 3, kind: output, shape index: {1}]  }
   0x1 LB: > { %s957_s13 = sadd.s32 4294967295, %s929_s12   ;;  %p771_p0 = scmp.ge.s32.totalorder %s929_s12, 1  ;;  %s929_s12 = sphi %s951_s12, %s14_s12  }
   0x2   : > { %p141_p1 = scmp.lt.s32.totalorder %s929_s12, 3 }
   0x4   : > { %p142_p2 = pnand %p771_p0, %p141_p1 }
   0x5   : > { %v899_v0 = vld [vmem:[%s1135_s1] sm:$0xff] (!%p142_p2)   ;;  %s772_s16 = sshll.u32 (!%p142_p2), %s957_s13, 5  ;;  %v900_v1 = vld [vmem:[%s1135_s1 + $0x8] sm:$0xff] (!%p142_p2)   ;;  %v901_v2 = vld [vmem:[%s1135_s1 + $0x10] sm:$0xff] (!%p142_p2)   ;;  %p181_p4 = scmp.lt.s32.totalorder (!%p142_p2), %s957_s13, 1  ;;  %vm677_vm0 = vcmask (!%p142_p2), 1040384  }
   0x6   : > { %145 = sbr.rel (%p142_p2) target bundleno = 331 (0x14b), region = 28  ;;  %p170_p3 = scmp.lt.s32.totalorder (!%p142_p2), %s772_s16, 63  ;;  %827 = vmatprep.subr.bf16.mxu0 (!%p142_p2), %v899_v0  ;;  %875 = vmatprep.subr.bf16.mxu1 (!%p142_p2), %v899_v0  ;;  %v902_v3 = vld [vmem:[%s1135_s1 + $0x18] sm:$0xff] (!%p142_p2)   ;;  %v903_v5 = vld [vmem:[%s1135_s1 + $0x20] sm:$0xff] (!%p142_p2)   ;;  %v904_v6 = vld [vmem:[%s1135_s1 + $0x28] sm:$0xff] (!%p142_p2)  }
   0x7   : > { %828 = vmatpush3.bf16.msra.mxu0 (!%p142_p2), %v899_v0  ;;  %883 = vmatpush3.bf16.msra.mxu1 (!%p142_p2), %v899_v0  ;;  %v905_v8 = vld [vmem:[%s1135_s1 + $0x30] sm:$0xff] (!%p142_p2)   ;;  %v906_v9 = vld [vmem:[%s1135_s1 + $0x38] sm:$0xff] (!%p142_p2)  }
   0x8   : > { %829 = vmatprep.subr.bf16.mxu0 (!%p142_p2), %v900_v1  ;;  %876 = vmatprep.subr.bf16.mxu1 (!%p142_p2), %v900_v1 }
   0xb   : > { %830 = vmatpush3.bf16.msra.mxu0 (!%p142_p2), %v900_v1  ;;  %884 = vmatpush3.bf16.msra.mxu1 (!%p142_p2), %v900_v1 }
   0xc   : > { %831 = vmatprep.subr.bf16.mxu0 (!%p142_p2), %v901_v2  ;;  %877 = vmatprep.subr.bf16.mxu1 (!%p142_p2), %v901_v2 }
   0xd   : > { %s1139_s16 = smov (!%p170_p3, %s772_s16), 63  ;;  %s1141_s13 = smov (!%p181_p4, %s957_s13), 1 }
   0xe   : > { %s773_s21 = sshll.u32 %s1139_s16, 2  ;;  %s775_s8 = sshll.u32 %s1139_s16, 3 }
   0xf   : > { %s977_s24 = scalar_lea.vmem %s1134_s0, %s773_s21  ;;  %832 = vmatpush3.bf16.msra.mxu0 %v901_v2  ;;  %885 = vmatpush3.bf16.msra.mxu1 %v901_v2  ;;  %s1014_s11 = scalar_lea.vmem %s1136_s2, %s775_s8 }
  0x10   : > { %v907_v4 = vld [vmem:[%s977_s24] sm:$0xff]   ;;  %833 = vmatprep.subr.bf16.mxu0 %v902_v3  ;;  %878 = vmatprep.subr.bf16.mxu1 %v902_v3  ;;  %v908_v10 = vld [vmem:[%s977_s24 + $0x8] sm:$0xff]   ;;  %v909_v12 = vld [vmem:[%s977_s24 + $0x10] sm:$0xff]   ;;  %s776_s14 = sshll.u32 %s1141_s13, 1 }
  0x11   : > { %843 = vmatprep.mubr.bf16.mxu0 %v907_v4  ;;  %v915_v7 = vld [vmem:[%s977_s24 + $0x40] sm:$0xff]   ;;  %v916_v11 = vld [vmem:[%s977_s24 + $0x48] sm:$0xff]   ;;  %v917_v13 = vld [vmem:[%s977_s24 + $0x50] sm:$0xff]   ;;  %s184_s17 = scalar_lea.vmem %s1137_s3, %s776_s14 }
  0x12   : > { %859 = vmatprep.mubr.bf16.mxu1 %v915_v7  ;;  %v910_v14 = vld [vmem:[%s977_s24 + $0x18] sm:$0xff]   ;;  %v911_v16 = vld [vmem:[%s977_s24 + $0x20] sm:$0xff]   ;;  %v912_v18 = vld [vmem:[%s977_s24 + $0x28] sm:$0xff]  }
  0x13   : > { %834 = vmatpush3.bf16.msra.mxu0 %v902_v3  ;;  %886 = vmatpush3.bf16.msra.mxu1 %v902_v3  ;;  %v918_v15 = vld [vmem:[%s977_s24 + $0x58] sm:$0xff]   ;;  %v919_v17 = vld [vmem:[%s977_s24 + $0x60] sm:$0xff]   ;;  %v920_v19 = vld [vmem:[%s977_s24 + $0x68] sm:$0xff]  }
  0x14   : > { %835 = vmatprep.subr.bf16.mxu0 %v903_v5  ;;  %879 = vmatprep.subr.bf16.mxu1 %v903_v5  ;;  %v913_v20 = vld [vmem:[%s977_s24 + $0x30] sm:$0xff]   ;;  %v914_v22 = vld [vmem:[%s977_s24 + $0x38] sm:$0xff]  }
  0x15   : > { %v921_v21 = vld [vmem:[%s977_s24 + $0x70] sm:$0xff]   ;;  %v922_v23 = vld [vmem:[%s977_s24 + $0x78] sm:$0xff]  }
  0x17   : > { %836 = vmatpush3.bf16.msra.mxu0 %v903_v5  ;;  %887 = vmatpush3.bf16.msra.mxu1 %v903_v5 }
  0x18   : > { %837 = vmatprep.subr.bf16.mxu0 %v904_v6  ;;  %880 = vmatprep.subr.bf16.mxu1 %v904_v6 }
  0x1b   : > { %838 = vmatpush3.bf16.msra.mxu0 %v904_v6  ;;  %888 = vmatpush3.bf16.msra.mxu1 %v904_v6 }
  0x1c   : > { %839 = vmatprep.subr.bf16.mxu0 %v905_v8  ;;  %881 = vmatprep.subr.bf16.mxu1 %v905_v8 }
  0x1f   : > { %840 = vmatpush3.bf16.msra.mxu0 %v905_v8  ;;  %889 = vmatpush3.bf16.msra.mxu1 %v905_v8 }
  0x20   : > { %841 = vmatprep.subr.bf16.mxu0 %v906_v9  ;;  %882 = vmatprep.subr.bf16.mxu1 %v906_v9 }
  0x23   : > { %842 = vmatpush3.bf16.msra.mxu0 %v906_v9  ;;  %890 = vmatpush3.bf16.msra.mxu1 %v906_v9 }
  0x26   : > { %844 = vmatmul.mubr.bf16.vlgmr.msra.gmra.mrb[0].mxu0 %v908_v10  ;;  %860 = vmatmul.mubr.bf16.vlgmr.msra.gmra.mrb[0].mxu1 %v916_v11 }
  0x27   : > { %847 = vmatprep.mubr.bf16.mxu0 %v909_v12  ;;  %863 = vmatprep.mubr.bf16.mxu1 %v917_v13 }
  0x2e   : > { %848 = vmatmul.mubr.bf16.gmra.mrb[4].mxu0 %v910_v14  ;;  %864 = vmatmul.mubr.bf16.gmra.mrb[4].mxu1 %v918_v15 }
  0x2f   : > { %851 = vmatprep.mubr.bf16.mxu0 %v911_v16  ;;  %867 = vmatprep.mubr.bf16.mxu1 %v919_v17 }
  0x36   : > { %852 = vmatmul.mubr.bf16.gmra.mrb[8].mxu0 %v912_v18  ;;  %868 = vmatmul.mubr.bf16.gmra.mrb[8].mxu1 %v920_v19 }
  0x37   : > { %855 = vmatprep.mubr.bf16.mxu0 %v913_v20  ;;  %871 = vmatprep.mubr.bf16.mxu1 %v921_v21 }
  0x3e   : > { %856 = vmatmul.mubr.bf16.gmra.mrb[12].mxu0 %v914_v22  ;;  %872 = vmatmul.mubr.bf16.gmra.mrb[12].mxu1 %v922_v23 }
  0xf9   : > { %v845_v24 = vpop.f32.mrb[0].mxu0  ;;  %v1016_v25 = vpop.f32.mrb[0].mxu1 }
  0xfa   : > { %541 = vst [vmem:[%s1014_s11 + $0x10] sm:$0xff] %v845_v24  ;;  %v412_v26 = vpop.f32.mrb[1].mxu0  ;;  %557 = vst [vmem:[%s1014_s11 + $0x90] sm:$0xff] %v1016_v25  ;;  %v1021_v27 = vpop.f32.mrb[1].mxu1  ;;  %v610_v35 = vmul.f32 %v845_v24, %v845_v24 }
  0xfb   : > { %539 = vst [vmem:[%s1014_s11] sm:$0xff] %v412_v26  ;;  %v846_v28 = vpop.f32.mrb[2].mxu0  ;;  %555 = vst [vmem:[%s1014_s11 + $0x80] sm:$0xff] %v1021_v27  ;;  %v1026_v29 = vpop.f32.mrb[2].mxu1  ;;  %v608_v32 = vmul.f32 %v412_v26, %v412_v26 }
  0xfc   : > { %542 = vst [vmem:[%s1014_s11 + $0x18] sm:$0xff] %v846_v28  ;;  %v415_v30 = vpop.f32.mrb[3].mxu0  ;;  %558 = vst [vmem:[%s1014_s11 + $0x98] sm:$0xff] %v1026_v29  ;;  %v1031_v31 = vpop.f32.mrb[3].mxu1  ;;  %v611_v38 = vmul.f32 %v846_v28, %v846_v28 }
  0xfd   : > { %540 = vst [vmem:[%s1014_s11 + $0x8] sm:$0xff] %v415_v30  ;;  %v571_v33 = vadd.f32 %v415_v30, %v412_v26  ;;  %v609_v34 = vmul.f32 %v415_v30, %v415_v30  ;;  %556 = vst [vmem:[%s1014_s11 + $0x88] sm:$0xff] %v1031_v31 }
  0xff   : > { %v572_v36 = vadd.f32 %v845_v24, %v571_v33  ;;  %v640_v37 = vadd.f32 %v609_v34, %v608_v32 }
 0x101   : > { %v641_v39 = vadd.f32 %v640_v37, %v610_v35  ;;  %v849_v40 = vpop.f32.mrb[4].mxu0  ;;  %v573_v41 = vadd.f32 %v846_v28, %v572_v36  ;;  %v1036_v42 = vpop.f32.mrb[4].mxu1 }
 0x102   : > { %545 = vst [vmem:[%s1014_s11 + $0x30] sm:$0xff] %v849_v40  ;;  %v428_v43 = vpop.f32.mrb[5].mxu0  ;;  %561 = vst [vmem:[%s1014_s11 + $0xb0] sm:$0xff] %v1036_v42  ;;  %v1041_v44 = vpop.f32.mrb[5].mxu1  ;;  %v614_v55 = vmul.f32 %v849_v40, %v849_v40 }
 0x103   : > { %543 = vst [vmem:[%s1014_s11 + $0x20] sm:$0xff] %v428_v43  ;;  %v574_v45 = vadd.f32 %v573_v41, %v428_v43  ;;  %v612_v46 = vmul.f32 %v428_v43, %v428_v43  ;;  %v642_v47 = vadd.f32 %v641_v39, %v611_v38  ;;  %v850_v48 = vpop.f32.mrb[6].mxu0  ;;  %559 = vst [vmem:[%s1014_s11 + $0xa0] sm:$0xff] %v1041_v44  ;;  %v1046_v49 = vpop.f32.mrb[6].mxu1 }
 0x104   : > { %546 = vst [vmem:[%s1014_s11 + $0x38] sm:$0xff] %v850_v48  ;;  %v431_v50 = vpop.f32.mrb[7].mxu0  ;;  %562 = vst [vmem:[%s1014_s11 + $0xb8] sm:$0xff] %v1046_v49  ;;  %v1051_v51 = vpop.f32.mrb[7].mxu1  ;;  %v615_v58 = vmul.f32 %v850_v48, %v850_v48  ;;  %v624_v41 = vmul.f32 %v1021_v27, %v1021_v27 }
 0x105   : > { %v643_v52 = vadd.f32 %v642_v47, %v612_v46  ;;  %544 = vst [vmem:[%s1014_s11 + $0x28] sm:$0xff] %v431_v50  ;;  %v575_v53 = vadd.f32 %v574_v45, %v431_v50  ;;  %v613_v54 = vmul.f32 %v431_v50, %v431_v50  ;;  %560 = vst [vmem:[%s1014_s11 + $0xa8] sm:$0xff] %v1051_v51 }
 0x106   : > { %v626_v50 = vmul.f32 %v1016_v25, %v1016_v25 }
 0x107   : > { %v576_v56 = vadd.f32 %v849_v40, %v575_v53  ;;  %v644_v57 = vadd.f32 %v643_v52, %v613_v54  ;;  %v627_v54 = vmul.f32 %v1026_v29, %v1026_v29 }
 0x109   : > { %v645_v59 = vadd.f32 %v644_v57, %v614_v55  ;;  %v853_v60 = vpop.f32.mrb[8].mxu0  ;;  %v577_v61 = vadd.f32 %v850_v48, %v576_v56  ;;  %v1056_v62 = vpop.f32.mrb[8].mxu1  ;;  %v625_v48 = vmul.f32 %v1031_v31, %v1031_v31 }
 0x10a   : > { %549 = vst [vmem:[%s1014_s11 + $0x50] sm:$0xff] %v853_v60  ;;  %v444_v63 = vpop.f32.mrb[9].mxu0  ;;  %565 = vst [vmem:[%s1014_s11 + $0xd0] sm:$0xff] %v1056_v62  ;;  %v1061_v0 = vpop.f32.mrb[9].mxu1  ;;  %v618_v11 = vmul.f32 %v853_v60, %v853_v60 }
 0x10b   : > { %547 = vst [vmem:[%s1014_s11 + $0x40] sm:$0xff] %v444_v63  ;;  %v578_v1 = vadd.f32 %v577_v61, %v444_v63  ;;  %v616_v2 = vmul.f32 %v444_v63, %v444_v63  ;;  %v646_v3 = vadd.f32 %v645_v59, %v615_v58  ;;  %v854_v4 = vpop.f32.mrb[10].mxu0  ;;  %563 = vst [vmem:[%s1014_s11 + $0xc0] sm:$0xff] %v1061_v0  ;;  %v1066_v5 = vpop.f32.mrb[10].mxu1 }
 0x10c   : > { %550 = vst [vmem:[%s1014_s11 + $0x58] sm:$0xff] %v854_v4  ;;  %v447_v6 = vpop.f32.mrb[11].mxu0  ;;  %566 = vst [vmem:[%s1014_s11 + $0xd8] sm:$0xff] %v1066_v5  ;;  %v1071_v7 = vpop.f32.mrb[11].mxu1  ;;  %v619_v14 = vmul.f32 %v854_v4, %v854_v4 }
 0x10d   : > { %v647_v8 = vadd.f32 %v646_v3, %v616_v2  ;;  %548 = vst [vmem:[%s1014_s11 + $0x48] sm:$0xff] %v447_v6  ;;  %v579_v9 = vadd.f32 %v578_v1, %v447_v6  ;;  %v617_v10 = vmul.f32 %v447_v6, %v447_v6  ;;  %564 = vst [vmem:[%s1014_s11 + $0xc8] sm:$0xff] %v1071_v7 }
 0x10f   : > { %v580_v12 = vadd.f32 %v853_v60, %v579_v9  ;;  %v648_v13 = vadd.f32 %v647_v8, %v617_v10  ;;  %v629_v60 = vmul.f32 %v1051_v51, %v1051_v51  ;;  %v633_v8 = vmul.f32 %v1071_v7, %v1071_v7 }
 0x111   : > { %v649_v15 = vadd.f32 %v648_v13, %v618_v11  ;;  %v857_v16 = vpop.f32.mrb[12].mxu0  ;;  %v581_v17 = vadd.f32 %v854_v4, %v580_v12  ;;  %v1076_v18 = vpop.f32.mrb[12].mxu1 }
 0x112   : > { %553 = vst [vmem:[%s1014_s11 + $0x70] sm:$0xff] %v857_v16  ;;  %v460_v19 = vpop.f32.mrb[13].mxu0  ;;  %569 = vst [vmem:[%s1014_s11 + $0xf0] sm:$0xff] %v1076_v18  ;;  %v524_v20 = vpop.f32.mrb[13].mxu1  ;;  %v622_v35 = vmul.f32 %v857_v16, %v857_v16 }
 0x113   : > { %551 = vst [vmem:[%s1014_s11 + $0x60] sm:$0xff] %v460_v19  ;;  %v582_v21 = vadd.f32 %v581_v17, %v460_v19  ;;  %v620_v22 = vmul.f32 %v460_v19, %v460_v19  ;;  %v650_v23 = vadd.f32 %v649_v15, %v619_v14  ;;  %v858_v24 = vpop.f32.mrb[14].mxu0  ;;  %567 = vst [vmem:[%s1014_s11 + $0xe0] sm:$0xff] %v524_v20  ;;  %v874_v26 = vpop.f32.mrb[14].mxu1 }
 0x114   : > { %554 = vst [vmem:[%s1014_s11 + $0x78] sm:$0xff] %v858_v24  ;;  %v463_v28 = vpop.f32.mrb[15].mxu0  ;;  %570 = vst [vmem:[%s1014_s11 + $0xf8] sm:$0xff] %v874_v26  ;;  %v527_v30 = vpop.f32.mrb[15].mxu1  ;;  %v623_v38 = vmul.f32 %v858_v24, %v858_v24  ;;  %v636_v12 = vmul.f32 %v524_v20, %v524_v20  ;;  %v638_v17 = vmul.f32 %v1076_v18, %v1076_v18 }
 0x115   : > { %v651_v32 = vadd.f32 %v650_v23, %v620_v22  ;;  %552 = vst [vmem:[%s1014_s11 + $0x68] sm:$0xff] %v463_v28  ;;  %v583_v33 = vadd.f32 %v582_v21, %v463_v28  ;;  %v621_v34 = vmul.f32 %v463_v28, %v463_v28  ;;  %568 = vst [vmem:[%s1014_s11 + $0xe8] sm:$0xff] %v527_v30 }
 0x116   : > { %v639_v21 = vmul.f32 %v874_v26, %v874_v26 }
 0x117   : > { %v584_v36 = vadd.f32 %v857_v16, %v583_v33  ;;  %v652_v37 = vadd.f32 %v651_v32, %v621_v34 }
 0x119   : > { %v653_v39 = vadd.f32 %v652_v37, %v622_v35  ;;  %v585_v40 = vadd.f32 %v858_v24, %v584_v36 }
 0x11b   : > { %v586_v43 = vadd.f32 %v585_v40, %v1021_v27  ;;  %v654_v45 = vadd.f32 %v653_v39, %v623_v38  ;;  %v628_v27 = vmul.f32 %v1041_v44, %v1041_v44 }
 0x11d   : > { %v655_v46 = vadd.f32 %v654_v45, %v624_v41  ;;  %v587_v47 = vadd.f32 %v586_v43, %v1031_v31 }
 0x11f   : > { %v588_v52 = vadd.f32 %v1016_v25, %v587_v47  ;;  %v656_v53 = vadd.f32 %v655_v46, %v625_v48  ;;  %v630_v25 = vmul.f32 %v1036_v42, %v1036_v42 }
 0x121   : > { %v657_v55 = vadd.f32 %v656_v53, %v626_v50  ;;  %v589_v56 = vadd.f32 %v1026_v29, %v588_v52  ;;  %v631_v29 = vmul.f32 %v1046_v49, %v1046_v49 }
 0x123   : > { %v590_v57 = vadd.f32 %v589_v56, %v1041_v44  ;;  %v658_v58 = vadd.f32 %v657_v55, %v627_v54  ;;  %v632_v44 = vmul.f32 %v1061_v0, %v1061_v0 }
 0x125   : > { %v659_v59 = vadd.f32 %v658_v58, %v628_v27  ;;  %v591_v31 = vadd.f32 %v590_v57, %v1051_v51 }
 0x127   : > { %v592_v61 = vadd.f32 %v1036_v42, %v591_v31  ;;  %v660_v63 = vadd.f32 %v659_v59, %v629_v60  ;;  %v634_v42 = vmul.f32 %v1056_v62, %v1056_v62 }
 0x129   : > { %v661_v1 = vadd.f32 %v660_v63, %v630_v25  ;;  %v593_v2 = vadd.f32 %v1046_v49, %v592_v61  ;;  %v635_v49 = vmul.f32 %v1066_v5, %v1066_v5 }
 0x12b   : > { %v594_v3 = vadd.f32 %v593_v2, %v1061_v0  ;;  %v662_v4 = vadd.f32 %v661_v1, %v631_v29 }
 0x12d   : > { %v663_v6 = vadd.f32 %v662_v4, %v632_v44  ;;  %v595_v51 = vadd.f32 %v594_v3, %v1071_v7  ;;  %v637_v7 = vmul.f32 %v527_v30, %v527_v30 }
 0x12f   : > { %v596_v9 = vadd.f32 %v1056_v62, %v595_v51  ;;  %v664_v10 = vadd.f32 %v663_v6, %v633_v8 }
 0x131   : > { %v665_v11 = vadd.f32 %v664_v10, %v634_v42  ;;  %v597_v0 = vadd.f32 %v1066_v5, %v596_v9 }
 0x133   : > { %v598_v13 = vadd.f32 %v597_v0, %v524_v20  ;;  %v666_v14 = vadd.f32 %v665_v11, %v635_v49 }
 0x135   : > { %v667_v15 = vadd.f32 %v666_v14, %v636_v12  ;;  %v599_v16 = vadd.f32 %v598_v13, %v527_v30 }
 0x137   : > { %v600_v62 = vadd.f32 %v1076_v18, %v599_v16  ;;  %v668_v19 = vadd.f32 %v667_v15, %v637_v7 }
 0x139   : > { %v601_v22 = vadd.f32 %v874_v26, %v600_v62  ;;  %v669_v23 = vadd.f32 %v668_v19, %v638_v17 }
 0x13b   : > { %v602_v24 = vrot.slane %v601_v22, 4  ;;  %v670_v28 = vadd.f32 %v669_v23, %v639_v21 }
 0x13d   : > { %v603_v5 = vadd.f32 %v602_v24, %v601_v22  ;;  %v671_v32 = vrot.slane %v670_v28, 4 }
 0x13f   : > { %v604_v20 = vrot.slane %v603_v5, 2  ;;  %v672_v33 = vadd.f32 %v671_v32, %v670_v28 }
 0x141   : > { %v605_v34 = vadd.f32 %v604_v20, %v603_v5  ;;  %v673_v35 = vrot.slane %v672_v33, 2 }
 0x143   : > { %v606_v30 = vrot.slane %v605_v34, 1  ;;  %v674_v36 = vadd.f32 %v673_v35, %v672_v33 }
 0x145   : > { %v675_v37 = vrot.slane %v674_v36, 1  ;;  %v607_v18 = vadd.f32 %v606_v30, %v605_v34 }
 0x147   : > { %v676_v26 = vadd.f32 %v675_v37, %v674_v36 }
 0x149   : > { %v678_v38 = vsel %vm677_vm0, %v607_v18, %v676_v26 }
 0x14a   : > { %679 = vst [vmem:[%s184_s17] sm:$0x3] %v678_v38 }
 0x14b PF: > { %s14_s12 = sadd.s32 1, %s929_s12  }
 0x14c   : > { %p11_p5 = scmp.ge.s32.totalorder %s14_s12, 4  }
 0x14e   :  { %13 = sbr.rel (!%p11_p5) target bundleno = 1 (0x1), region = 70 }

// kernel: encoder_forward_pallas.18
= control target key start
LH: loop header
LB: loop body
LE: loop exit
PB: predicated region body
PF: predicated region fallthrough
CT: control target
= control target key end

     0   :  { %s487_s15 = smov 0   ;;  %s523_s0 = inlined_call_operand.vmem [shape: f32[128,128], index: 0, kind: input, shape index: {}]   ;;  %s524_s1 = inlined_call_operand.vmem [shape: f32[2,2,128], index: 1, kind: input, shape index: {}]   ;;  %s525_s2 = inlined_call_operand.vmem [shape: f32[1,128], index: 2, kind: input, shape index: {}]   ;;  %s526_s3 = inlined_call_operand.vmem [shape: f32[1,128], index: 3, kind: input, shape index: {}]   ;;  %s527_s4 = inlined_call_operand.vmem [shape: f32[128,128], index: 4, kind: output, shape index: {}]  }
   0x1 LB: > { %s391_s16 = sadd.s32 4294967295, %s460_s15   ;;  %p395_p0 = scmp.ge.s32.totalorder %s460_s15, 1  ;;  %s460_s15 = sphi %s487_s15, %s14_s15  }
   0x2   : > { %p163_p1 = scmp.lt.s32.totalorder %s460_s15, 3 }
   0x4   : > { %p164_p2 = pnand %p395_p0, %p163_p1 }
   0x5   : > { %v201_v0 = vld [vmem:[%s524_s1] sm:$0x3] (!%p164_p2)  ;;  %v202_v1 = vld [vmem:[%s524_s1 + $0x2] sm:$0x3] (!%p164_p2)  ;;  %vm203_vm0 = vcmask (!%p164_p2), 1041408   ;;  %s396_s21 = sshll.u32 (!%p164_p2), %s391_s16, 3  ;;  %v224_v9 = vlaneseq (!%p164_p2) }
   0x6   : > { %167 = sbr.rel (%p164_p2) target bundleno = 76 (0x4c), region = 36  ;;  %v204_v2 = vsel (!%p164_p2), %vm203_vm0, %v201_v0, 0.0  ;;  %v205_v3 = vsel (!%p164_p2), %vm203_vm0, %v202_v1, 0.0  ;;  %p190_p3 = scmp.lt.s32.totalorder (!%p164_p2), %s396_s21, 15  ;;  %v400_v16 = vld [vmem:[%s525_s2] ss:$0 sm:$0xff] (!%p164_p2) }
   0x7   : > { %v206_v4 = vadd.f32 (!%p164_p2), %v205_v3, %v204_v2  ;;  %v225_v12 = vshrl.u32 (!%p164_p2), %v224_v9, 7  ;;  %v401_v36 = vld [vmem:[%s526_s3] ss:$0 sm:$0xff] (!%p164_p2) }
   0x9   : > { %v207_v5 = vmul.f32 (!%p164_p2), 0.0078125, %v206_v4  ;;  %v226_v13 = vsub.s32 (!%p164_p2), 0, %v225_v12  ;;  %v246_v21 = vsub.s32 (!%p164_p2), 1, %v225_v12 }
   0xb   : > { %v208_v6 = vmul.f32 (!%p164_p2), %v207_v5, %v207_v5  ;;  %v227_v14 = vrot.slane (!%p164_p2), %v207_v5, %v226_v13 }
   0xd   : > { %v210_v7 = vrot.slane %v208_v6, 7  ;;  %s529_s21 = smov (!%p190_p3, %s396_s21), 15 }
   0xe   : > { %s397_s22 = sshll.u32 %s529_s21, 3 }
   0xf   : > { %v212_v8 = vsub.f32 %v207_v5, %v210_v7  ;;  %s193_s25 = scalar_lea.vmem %s523_s0, %s397_s22  ;;  %s199_s6 = scalar_lea.vmem %s527_s4, %s397_s22 }
  0x10   : > { %v216_v15 = vld [vmem:[%s193_s25] sm:$0xff]  ;;  %v217_v17 = vld [vmem:[%s193_s25 + $0x8] sm:$0xff]  ;;  %v218_v18 = vld [vmem:[%s193_s25 + $0x10] sm:$0xff] }
  0x11   : > { %v213_v10 = vmax.f32 %v212_v8, 0.0  ;;  %v219_v19 = vld [vmem:[%s193_s25 + $0x18] sm:$0xff]  ;;  %v220_v20 = vld [vmem:[%s193_s25 + $0x20] sm:$0xff]  ;;  %v221_v22 = vld [vmem:[%s193_s25 + $0x28] sm:$0xff]  ;;  %v228_v26 = vsub.f32 %v216_v15, %v227_v14  ;;  %v229_v28 = vsub.f32 %v217_v17, %v227_v14  ;;  %v230_v29 = vsub.f32 %v218_v18, %v227_v14 }
  0x12   : > { %v222_v23 = vld [vmem:[%s193_s25 + $0x30] sm:$0xff]  ;;  %v223_v24 = vld [vmem:[%s193_s25 + $0x38] sm:$0xff]  ;;  %v231_v30 = vsub.f32 %v219_v19, %v227_v14  ;;  %v232_v31 = vsub.f32 %v220_v20, %v227_v14  ;;  %v233_v32 = vsub.f32 %v221_v22, %v227_v14 }
  0x13   : > { %v214_v11 = vadd.f32 1e-05, %v213_v10  ;;  %v234_v33 = vsub.f32 %v222_v23, %v227_v14  ;;  %v235_v34 = vsub.f32 %v223_v24, %v227_v14 }
  0x15   : > { %420 = vrsqrt.f32 %v214_v11 }
  0x1f   : > { %v421_v25 = vpop.eup %420 }
  0x20   : > { %v243_v27 = vmul.f32 %v421_v25, %v400_v16 }
  0x22   : > { %v247_v35 = vrot.slane %v243_v27, %v246_v21 }
  0x24   : > { %v248_v37 = vmul.f32 %v247_v35, %v228_v26  ;;  %v249_v38 = vmul.f32 %v247_v35, %v229_v28  ;;  %v250_v39 = vmul.f32 %v247_v35, %v230_v29  ;;  %v251_v40 = vmul.f32 %v247_v35, %v231_v30 }
  0x25   : > { %v252_v41 = vmul.f32 %v247_v35, %v232_v31  ;;  %v253_v42 = vmul.f32 %v247_v35, %v233_v32  ;;  %v254_v43 = vmul.f32 %v247_v35, %v234_v33  ;;  %v255_v44 = vmul.f32 %v247_v35, %v235_v34 }
  0x26   : > { %v263_v45 = vadd.f32 %v401_v36, %v248_v37  ;;  %v264_v46 = vadd.f32 %v401_v36, %v249_v38  ;;  %v265_v47 = vadd.f32 %v401_v36, %v250_v39  ;;  %v266_v48 = vadd.f32 %v401_v36, %v251_v40 }
  0x27   : > { %v267_v49 = vadd.f32 %v401_v36, %v252_v41  ;;  %v268_v50 = vadd.f32 %v401_v36, %v253_v42  ;;  %v269_v54 = vadd.f32 %v401_v36, %v254_v43  ;;  %v270_v56 = vadd.f32 %v401_v36, %v255_v44 }
  0x28   : > { %v402_v51 = vmul.f32 -1.442695, %v263_v45  ;;  %v403_v52 = vmul.f32 -1.442695, %v264_v46  ;;  %v404_v53 = vmul.f32 -1.442695, %v265_v47 }
  0x29   : > { %v405_v55 = vmul.f32 -1.442695, %v266_v48  ;;  %v406_v57 = vmul.f32 -1.442695, %v267_v49  ;;  %v407_v58 = vmul.f32 -1.442695, %v268_v50 }
  0x2a   : > { %422 = vpow2.f32 %v402_v51  ;;  %v408_v59 = vmul.f32 -1.442695, %v269_v54  ;;  %v409_v60 = vmul.f32 -1.442695, %v270_v56 }
  0x2b   : > { %424 = vpow2.f32 %v403_v52 }
  0x2c   : > { %426 = vpow2.f32 %v404_v53 }
  0x2d   : > { %428 = vpow2.f32 %v405_v55 }
  0x2e   : > { %430 = vpow2.f32 %v406_v57 }
  0x2f   : > { %432 = vpow2.f32 %v407_v58 }
  0x30   : > { %434 = vpow2.f32 %v408_v59 }
  0x31   : > { %436 = vpow2.f32 %v409_v60 }
  0x34   : > { %v423_v61 = vpop.eup %422 }
  0x35   : > { %v425_v62 = vpop.eup %424  ;;  %v295_v63 = vadd.f32 1.0, %v423_v61 }
  0x36   : > { %v427_v0 = vpop.eup %426  ;;  %v296_v1 = vadd.f32 1.0, %v425_v62 }
  0x37   : > { %v429_v2 = vpop.eup %428  ;;  %438 = vrcp.f32 %v295_v63  ;;  %v297_v3 = vadd.f32 1.0, %v427_v0 }
  0x38   : > { %v431_v4 = vpop.eup %430  ;;  %440 = vrcp.f32 %v296_v1  ;;  %v298_v5 = vadd.f32 1.0, %v429_v2 }
  0x39   : > { %v433_v6 = vpop.eup %432  ;;  %442 = vrcp.f32 %v297_v3  ;;  %v299_v7 = vadd.f32 1.0, %v431_v4 }
  0x3a   : > { %v435_v8 = vpop.eup %434  ;;  %444 = vrcp.f32 %v298_v5  ;;  %v300_v9 = vadd.f32 1.0, %v433_v6 }
  0x3b   : > { %v437_v10 = vpop.eup %436  ;;  %446 = vrcp.f32 %v299_v7  ;;  %v301_v11 = vadd.f32 1.0, %v435_v8 }
  0x3c   : > { %448 = vrcp.f32 %v300_v9  ;;  %v302_v12 = vadd.f32 1.0, %v437_v10 }
  0x3d   : > { %450 = vrcp.f32 %v301_v11 }
  0x3e   : > { %452 = vrcp.f32 %v302_v12 }
  0x41   : > { %v439_v13 = vpop.eup %438 }
  0x42   : > { %v441_v14 = vpop.eup %440  ;;  %v319_v15 = vmul.f32 %v439_v13, %v263_v45 }
  0x43   : > { %v443_v16 = vpop.eup %442  ;;  %v320_v17 = vmul.f32 %v441_v14, %v264_v46 }
  0x44   : > { %v445_v18 = vpop.eup %444  ;;  %327 = vst [vmem:[%s199_s6] sm:$0xff] %v319_v15  ;;  %v321_v19 = vmul.f32 %v443_v16, %v265_v47 }
  0x45   : > { %v447_v20 = vpop.eup %446  ;;  %328 = vst [vmem:[%s199_s6 + $0x8] sm:$0xff] %v320_v17  ;;  %v322_v21 = vmul.f32 %v445_v18, %v266_v48 }
  0x46   : > { %v449_v22 = vpop.eup %448  ;;  %329 = vst [vmem:[%s199_s6 + $0x10] sm:$0xff] %v321_v19  ;;  %v323_v23 = vmul.f32 %v447_v20, %v267_v49 }
  0x47   : > { %v451_v24 = vpop.eup %450  ;;  %330 = vst [vmem:[%s199_s6 + $0x18] sm:$0xff] %v322_v21  ;;  %v324_v25 = vmul.f32 %v449_v22, %v268_v50 }
  0x48   : > { %v453_v26 = vpop.eup %452  ;;  %331 = vst [vmem:[%s199_s6 + $0x20] sm:$0xff] %v323_v23  ;;  %v325_v27 = vmul.f32 %v451_v24, %v269_v54 }
  0x49   : > { %332 = vst [vmem:[%s199_s6 + $0x28] sm:$0xff] %v324_v25  ;;  %v326_v28 = vmul.f32 %v453_v26, %v270_v56 }
  0x4a   : > { %333 = vst [vmem:[%s199_s6 + $0x30] sm:$0xff] %v325_v27 }
  0x4b   : > { %334 = vst [vmem:[%s199_s6 + $0x38] sm:$0xff] %v326_v28 }
  0x4c PF: > { %s14_s15 = sadd.s32 1, %s460_s15  }
  0x4d   : > { %p11_p4 = scmp.ge.s32.totalorder %s14_s15, 4  }
  0x4f   :  { %13 = sbr.rel (!%p11_p4) target bundleno = 1 (0x1), region = 66 }

// kernel: encoder_forward_pallas.17
= control target key start
LH: loop header
LB: loop body
LE: loop exit
PB: predicated region body
PF: predicated region fallthrough
CT: control target
= control target key end

     0   :  { %s720_s12 = smov 0   ;;  %s820_s0 = inlined_call_operand.vmem [shape: bf16[128,256], index: 0, kind: input, shape index: {}]   ;;  %s821_s1 = inlined_call_operand.vmem [shape: bf16[256,128], index: 1, kind: input, shape index: {}]   ;;  %s822_s2 = inlined_call_operand.vmem [shape: f32[128,128], index: 2, kind: output, shape index: {0}]   ;;  %s823_s3 = inlined_call_operand.vmem [shape: f32[2,2,128], index: 3, kind: output, shape index: {1}]  }
   0x1 LB: > { %s726_s13 = sadd.s32 4294967295, %s698_s12   ;;  %p566_p0 = scmp.ge.s32.totalorder %s698_s12, 1  ;;  %s698_s12 = sphi %s720_s12, %s14_s12  }
   0x2   : > { %p142_p1 = scmp.lt.s32.totalorder %s698_s12, 3 }
   0x4   : > { %p143_p2 = pnand %p566_p0, %p142_p1 }
   0x5   : > { %v664_v0 = vld [vmem:[%s821_s1 + $0x40] sm:$0xff] (!%p143_p2)   ;;  %s567_s16 = sshll.u32 (!%p143_p2), %s726_s13, 3  ;;  %v666_v2 = vld [vmem:[%s821_s1 + $0x48] sm:$0xff] (!%p143_p2)   ;;  %v668_v4 = vld [vmem:[%s821_s1 + $0x50] sm:$0xff] (!%p143_p2)   ;;  %p184_p4 = scmp.lt.s32.totalorder (!%p143_p2), %s726_s13, 1  ;;  %vm472_vm0 = vcmask (!%p143_p2), 1040384  }
   0x6   : > { %146 = sbr.rel (%p143_p2) target bundleno = 289 (0x121), region = 28  ;;  %v665_v1 = vld [vmem:[%s821_s1] sm:$0xff] (!%p143_p2)   ;;  %600 = vmatprep.subr.bf16.mxu0 (!%p143_p2), %v664_v0  ;;  %640 = vmatprep.subr.bf16.mxu1 (!%p143_p2), %v664_v0  ;;  %v667_v3 = vld [vmem:[%s821_s1 + $0x8] sm:$0xff] (!%p143_p2)   ;;  %p172_p3 = scmp.lt.s32.totalorder (!%p143_p2), %s567_s16, 15  ;;  %v669_v5 = vld [vmem:[%s821_s1 + $0x10] sm:$0xff] (!%p143_p2)  }
   0x7   : > { %601 = vmatpush3.bf16.msra.mxu0 (!%p143_p2), %v665_v1  ;;  %648 = vmatpush3.bf16.msra.mxu1 (!%p143_p2), %v665_v1  ;;  %v670_v6 = vld [vmem:[%s821_s1 + $0x58] sm:$0xff] (!%p143_p2)   ;;  %v672_v8 = vld [vmem:[%s821_s1 + $0x60] sm:$0xff] (!%p143_p2)   ;;  %v674_v10 = vld [vmem:[%s821_s1 + $0x68] sm:$0xff] (!%p143_p2)  }
   0x8   : > { %602 = vmatprep.subr.bf16.mxu0 (!%p143_p2), %v666_v2  ;;  %641 = vmatprep.subr.bf16.mxu1 (!%p143_p2), %v666_v2  ;;  %v671_v7 = vld [vmem:[%s821_s1 + $0x18] sm:$0xff] (!%p143_p2)   ;;  %v673_v9 = vld [vmem:[%s821_s1 + $0x20] sm:$0xff] (!%p143_p2)   ;;  %v675_v13 = vld [vmem:[%s821_s1 + $0x28] sm:$0xff] (!%p143_p2)  }
   0x9   : > { %v676_v14 = vld [vmem:[%s821_s1 + $0x70] sm:$0xff] (!%p143_p2)   ;;  %v678_v16 = vld [vmem:[%s821_s1 + $0x78] sm:$0xff] (!%p143_p2)  }
   0xa   : > { %v677_v15 = vld [vmem:[%s821_s1 + $0x30] sm:$0xff] (!%p143_p2)   ;;  %v679_v17 = vld [vmem:[%s821_s1 + $0x38] sm:$0xff] (!%p143_p2)  }
   0xb   : > { %603 = vmatpush3.bf16.msra.mxu0 (!%p143_p2), %v667_v3  ;;  %649 = vmatpush3.bf16.msra.mxu1 (!%p143_p2), %v667_v3 }
   0xc   : > { %604 = vmatprep.subr.bf16.mxu0 (!%p143_p2), %v668_v4  ;;  %642 = vmatprep.subr.bf16.mxu1 (!%p143_p2), %v668_v4 }
   0xd   : > { %s825_s16 = smov (!%p172_p3, %s567_s16), 15  ;;  %s827_s13 = smov (!%p184_p4, %s726_s13), 1 }
   0xe   : > { %s599_s4 = sshll.u32 %s825_s16, 3  ;;  %s572_s16 = sshll.u32 %s827_s13, 1 }
   0xf   : > { %605 = vmatpush3.bf16.msra.mxu0 %v669_v5  ;;  %650 = vmatpush3.bf16.msra.mxu1 %v669_v5  ;;  %s766_s9 = scalar_lea.vmem %s820_s0, %s599_s4  ;;  %s802_s29 = scalar_lea.vmem %s822_s2, %s599_s4 }
  0x10   : > { %606 = vmatprep.subr.bf16.mxu0 %v670_v6  ;;  %643 = vmatprep.subr.bf16.mxu1 %v670_v6  ;;  %v682_v11 = vld [vmem:[%s766_s9 + $0x4] ss:$8 sps:$4 sm:$0xff]   ;;  %v680_v18 = vld [vmem:[%s766_s9] ss:$8 sps:$4 sm:$0xff]   ;;  %v686_v20 = vld [vmem:[%s766_s9 + $0x14] ss:$8 sps:$4 sm:$0xff]   ;;  %s187_s5 = scalar_lea.vmem %s823_s3, %s572_s16 }
  0x11   : > { %v685_v12 = vld [vmem:[%s766_s9 + $0x24] ss:$8 sps:$4 sm:$0xff]   ;;  %397 = vmatprep.mubr.bf16.mxu0 %v682_v11  ;;  %v683_v19 = vld [vmem:[%s766_s9 + $0x20] ss:$8 sps:$4 sm:$0xff]   ;;  %v689_v21 = vld [vmem:[%s766_s9 + $0x34] ss:$8 sps:$4 sm:$0xff]  }
  0x12   : > { %413 = vmatprep.mubr.bf16.mxu1 %v685_v12  ;;  %v688_v22 = vld [vmem:[%s766_s9 + $0x10] ss:$8 sps:$4 sm:$0xff]  }
  0x13   : > { %607 = vmatpush3.bf16.msra.mxu0 %v671_v7  ;;  %651 = vmatpush3.bf16.msra.mxu1 %v671_v7  ;;  %v691_v23 = vld [vmem:[%s766_s9 + $0x30] ss:$8 sps:$4 sm:$0xff]  }
  0x14   : > { %608 = vmatprep.subr.bf16.mxu0 %v672_v8  ;;  %644 = vmatprep.subr.bf16.mxu1 %v672_v8 }
  0x17   : > { %609 = vmatpush3.bf16.msra.mxu0 %v673_v9  ;;  %652 = vmatpush3.bf16.msra.mxu1 %v673_v9 }
  0x18   : > { %610 = vmatprep.subr.bf16.mxu0 %v674_v10  ;;  %645 = vmatprep.subr.bf16.mxu1 %v674_v10 }
  0x1b   : > { %611 = vmatpush3.bf16.msra.mxu0 %v675_v13  ;;  %653 = vmatpush3.bf16.msra.mxu1 %v675_v13 }
  0x1c   : > { %612 = vmatprep.subr.bf16.mxu0 %v676_v14  ;;  %646 = vmatprep.subr.bf16.mxu1 %v676_v14 }
  0x1f   : > { %613 = vmatpush3.bf16.msra.mxu0 %v677_v15  ;;  %654 = vmatpush3.bf16.msra.mxu1 %v677_v15 }
  0x20   : > { %614 = vmatprep.subr.bf16.mxu0 %v678_v16  ;;  %647 = vmatprep.subr.bf16.mxu1 %v678_v16 }
  0x23   : > { %615 = vmatpush3.bf16.msra.mxu0 %v679_v17  ;;  %655 = vmatpush3.bf16.msra.mxu1 %v679_v17 }
  0x26   : > { %398 = vmatmul.mubr.bf16.vlgmr.msra.gmra.mrb[0].mxu0 %v680_v18  ;;  %414 = vmatmul.mubr.bf16.vlgmr.msra.gmra.mrb[0].mxu1 %v683_v19 }
  0x27   : > { %405 = vmatprep.mubr.bf16.mxu0 %v686_v20  ;;  %421 = vmatprep.mubr.bf16.mxu1 %v689_v21 }
  0x2e   : > { %406 = vmatmul.mubr.bf16.gmra.mrb[4].mxu0 %v688_v22  ;;  %422 = vmatmul.mubr.bf16.gmra.mrb[4].mxu1 %v691_v23 }
  0xf9   : > { %v616_v24 = vpop.f32.mrb[0].mxu0  ;;  %v628_v25 = vpop.f32.mrb[0].mxu1 }
  0xfa   : > { %v617_v26 = vpop.f32.mrb[1].mxu0  ;;  %v629_v27 = vpop.f32.mrb[1].mxu1 }
  0xfb   : > { %v618_v28 = vadd.f32 %v617_v26, %v616_v24  ;;  %v619_v29 = vpop.f32.mrb[2].mxu0  ;;  %v630_v30 = vadd.f32 %v629_v27, %v628_v25  ;;  %v631_v31 = vpop.f32.mrb[2].mxu1 }
  0xfc   : > { %v620_v32 = vpop.f32.mrb[3].mxu0  ;;  %v632_v33 = vpop.f32.mrb[3].mxu1 }
  0xfd   : > { %430 = vst [vmem:[%s802_s29] sm:$0xff] %v618_v28  ;;  %v621_v34 = vadd.f32 %v620_v32, %v619_v29  ;;  %434 = vst [vmem:[%s802_s29 + $0x20] sm:$0xff] %v630_v30  ;;  %v633_v35 = vadd.f32 %v632_v33, %v631_v31  ;;  %v451_v36 = vmul.f32 %v618_v28, %v618_v28 }
  0xfe   : > { %v455_v57 = vmul.f32 %v630_v30, %v630_v30 }
  0xff   : > { %431 = vst [vmem:[%s802_s29 + $0x8] sm:$0xff] %v621_v34  ;;  %v438_v37 = vadd.f32 %v621_v34, %v618_v28  ;;  %v452_v38 = vmul.f32 %v621_v34, %v621_v34  ;;  %435 = vst [vmem:[%s802_s29 + $0x28] sm:$0xff] %v633_v35  ;;  %v456_v60 = vmul.f32 %v633_v35, %v633_v35 }
 0x101   : > { %v459_v39 = vadd.f32 %v452_v38, %v451_v36  ;;  %v622_v40 = vpop.f32.mrb[4].mxu0  ;;  %v634_v41 = vpop.f32.mrb[4].mxu1 }
 0x102   : > { %v623_v42 = vpop.f32.mrb[5].mxu0  ;;  %v635_v43 = vpop.f32.mrb[5].mxu1 }
 0x103   : > { %v624_v44 = vadd.f32 %v623_v42, %v622_v40  ;;  %v625_v45 = vpop.f32.mrb[6].mxu0  ;;  %v636_v46 = vadd.f32 %v635_v43, %v634_v41  ;;  %v637_v47 = vpop.f32.mrb[6].mxu1 }
 0x104   : > { %v626_v48 = vpop.f32.mrb[7].mxu0  ;;  %v638_v49 = vpop.f32.mrb[7].mxu1 }
 0x105   : > { %432 = vst [vmem:[%s802_s29 + $0x10] sm:$0xff] %v624_v44  ;;  %v439_v50 = vadd.f32 %v624_v44, %v438_v37  ;;  %v453_v51 = vmul.f32 %v624_v44, %v624_v44  ;;  %v627_v52 = vadd.f32 %v626_v48, %v625_v45  ;;  %436 = vst [vmem:[%s802_s29 + $0x30] sm:$0xff] %v636_v46 }
 0x106   : > { %v639_v53 = vadd.f32 %v638_v49, %v637_v47  ;;  %v457_v63 = vmul.f32 %v636_v46, %v636_v46 }
 0x107   : > { %v460_v54 = vadd.f32 %v459_v39, %v453_v51  ;;  %433 = vst [vmem:[%s802_s29 + $0x18] sm:$0xff] %v627_v52  ;;  %v440_v55 = vadd.f32 %v627_v52, %v439_v50  ;;  %v454_v56 = vmul.f32 %v627_v52, %v627_v52 }
 0x108   : > { %437 = vst [vmem:[%s802_s29 + $0x38] sm:$0xff] %v639_v53  ;;  %v458_v4 = vmul.f32 %v639_v53, %v639_v53 }
 0x109   : > { %v441_v58 = vadd.f32 %v630_v30, %v440_v55  ;;  %v461_v59 = vadd.f32 %v460_v54, %v454_v56 }
 0x10b   : > { %v462_v61 = vadd.f32 %v461_v59, %v455_v57  ;;  %v442_v62 = vadd.f32 %v633_v35, %v441_v58 }
 0x10d   : > { %v443_v0 = vadd.f32 %v636_v46, %v442_v62  ;;  %v463_v1 = vadd.f32 %v462_v61, %v456_v60 }
 0x10f   : > { %v464_v2 = vadd.f32 %v463_v1, %v457_v63  ;;  %v444_v3 = vadd.f32 %v639_v53, %v443_v0 }
 0x111   : > { %v445_v5 = vrot.slane %v444_v3, 4  ;;  %v465_v6 = vadd.f32 %v464_v2, %v458_v4 }
 0x113   : > { %v446_v7 = vadd.f32 %v445_v5, %v444_v3  ;;  %v466_v8 = vrot.slane %v465_v6, 4 }
 0x115   : > { %v447_v9 = vrot.slane %v446_v7, 2  ;;  %v467_v10 = vadd.f32 %v466_v8, %v465_v6 }
 0x117   : > { %v448_v11 = vadd.f32 %v447_v9, %v446_v7  ;;  %v468_v12 = vrot.slane %v467_v10, 2 }
 0x119   : > { %v449_v13 = vrot.slane %v448_v11, 1  ;;  %v469_v14 = vadd.f32 %v468_v12, %v467_v10 }
 0x11b   : > { %v470_v15 = vrot.slane %v469_v14, 1  ;;  %v450_v16 = vadd.f32 %v449_v13, %v448_v11 }
 0x11d   : > { %v471_v17 = vadd.f32 %v470_v15, %v469_v14 }
 0x11f   : > { %v473_v18 = vsel %vm472_vm0, %v450_v16, %v471_v17 }
 0x120   : > { %474 = vst [vmem:[%s187_s5] sm:$0x3] %v473_v18 }
 0x121 PF: > { %s14_s12 = sadd.s32 1, %s698_s12  }
 0x122   : > { %p11_p5 = scmp.ge.s32.totalorder %s14_s12, 4  }
 0x124   :  { %13 = sbr.rel (!%p11_p5) target bundleno = 1 (0x1), region = 70 }

// kernel: encoder_forward_pallas.21
= control target key start
LH: loop header
LB: loop body
LE: loop exit
PB: predicated region body
PF: predicated region fallthrough
CT: control target
= control target key end

     0   :  { %s750_s12 = smov 0   ;;  %s851_s0 = inlined_call_operand.vmem [shape: bf16[32,384], index: 0, kind: input, shape index: {}]   ;;  %s852_s1 = inlined_call_operand.vmem [shape: bf16[384,128], index: 1, kind: input, shape index: {}]   ;;  %s853_s2 = inlined_call_operand.vmem [shape: f32[32,128], index: 2, kind: output, shape index: {0}]   ;;  %s854_s3 = inlined_call_operand.vmem [shape: f32[2,2,128], index: 3, kind: output, shape index: {1}]  }
   0x1 LB: > { %s756_s13 = sadd.s32 4294967295, %s726_s12   ;;  %p595_p0 = scmp.ge.s32.totalorder %s726_s12, 1  ;;  %s726_s12 = sphi %s750_s12, %s14_s12  }
   0x2   : > { %p142_p1 = scmp.lt.s32.totalorder %s726_s12, 3 }
   0x4   : > { %p143_p2 = pnand %p595_p0, %p142_p1 }
   0x5   : > { %v692_v0 = vld [vmem:[%s852_s1 + $0x40] sm:$0xff] (!%p143_p2)   ;;  %v728_v1 = vmov (!%p143_p2), 0.0   ;;  %v695_v4 = vld [vmem:[%s852_s1 + $0x48] sm:$0xff] (!%p143_p2)   ;;  %vm729_vm0 = vmmov (!%p143_p2), 0   ;;  %v698_v7 = vld [vmem:[%s852_s1 + $0x50] sm:$0xff] (!%p143_p2)   ;;  %s596_s30 = sshll.u32 (!%p143_p2), %s756_s13, 1 }
   0x6   : > { %146 = sbr.rel (%p143_p2) target bundleno = 275 (0x113), region = 28  ;;  %661 = vmatprep.subr.bf16.mxu1 (!%p143_p2), %v728_v1  ;;  %v693_v2 = vld [vmem:[%s852_s1] sm:$0xff] (!%p143_p2)   ;;  %630 = vmatprep.subr.bf16.mxu0 (!%p143_p2), %v692_v0  ;;  %v696_v5 = vld [vmem:[%s852_s1 + $0x8] sm:$0xff] (!%p143_p2)   ;;  %v699_v8 = vld [vmem:[%s852_s1 + $0x10] sm:$0xff] (!%p143_p2)   ;;  %p172_p3 = scmp.lt.s32.totalorder (!%p143_p2), %s596_s30, 3  ;;  %vm501_vm1 = vcmask (!%p143_p2), 1040384  }
   0x7   : > { %v694_v3 = vld [vmem:[%s852_s1 + $0x80] sm:$0xff] (!%p143_p2)   ;;  %631 = vmatpush3.bf16.msra.mxu0 (!%p143_p2), %v693_v2  ;;  %677 = vmatprep.mubr.msk.bf16.mxu1 (!%p143_p2), %vm729_vm0, %v728_v1  ;;  %v697_v6 = vld [vmem:[%s852_s1 + $0x88] sm:$0xff] (!%p143_p2)   ;;  %v700_v9 = vld [vmem:[%s852_s1 + $0x90] sm:$0xff] (!%p143_p2)   ;;  %p184_p4 = scmp.lt.s32.totalorder (!%p143_p2), %s756_s13, 1 }
   0x8   : > { %662 = vmatpush3.bf16.msra.mxu1 (!%p143_p2), %v694_v3  ;;  %632 = vmatprep.subr.bf16.mxu0 (!%p143_p2), %v695_v4  ;;  %v701_v10 = vld [vmem:[%s852_s1 + $0x58] sm:$0xff] (!%p143_p2)   ;;  %v704_v13 = vld [vmem:[%s852_s1 + $0x60] sm:$0xff] (!%p143_p2)   ;;  %v707_v16 = vld [vmem:[%s852_s1 + $0x68] sm:$0xff] (!%p143_p2)  }
   0x9   : > { %663 = vmatprep.subr.bf16.mxu1 (!%p143_p2), %v728_v1  ;;  %v702_v11 = vld [vmem:[%s852_s1 + $0x18] sm:$0xff] (!%p143_p2)   ;;  %v705_v14 = vld [vmem:[%s852_s1 + $0x20] sm:$0xff] (!%p143_p2)   ;;  %v708_v17 = vld [vmem:[%s852_s1 + $0x28] sm:$0xff] (!%p143_p2)  }
   0xa   : > { %v703_v12 = vld [vmem:[%s852_s1 + $0x98] sm:$0xff] (!%p143_p2)   ;;  %v706_v15 = vld [vmem:[%s852_s1 + $0xa0] sm:$0xff] (!%p143_p2)   ;;  %v709_v18 = vld [vmem:[%s852_s1 + $0xa8] sm:$0xff] (!%p143_p2)  }
   0xb   : > { %633 = vmatpush3.bf16.msra.mxu0 (!%p143_p2), %v696_v5  ;;  %v710_v19 = vld [vmem:[%s852_s1 + $0x70] sm:$0xff] (!%p143_p2)   ;;  %v713_v22 = vld [vmem:[%s852_s1 + $0x78] sm:$0xff] (!%p143_p2)  }
   0xc   : > { %664 = vmatpush3.bf16.msra.mxu1 (!%p143_p2), %v697_v6  ;;  %634 = vmatprep.subr.bf16.mxu0 (!%p143_p2), %v698_v7  ;;  %v711_v20 = vld [vmem:[%s852_s1 + $0x30] sm:$0xff] (!%p143_p2)   ;;  %v714_v24 = vld [vmem:[%s852_s1 + $0x38] sm:$0xff] (!%p143_p2)  }
   0xd   : > { %665 = vmatprep.subr.bf16.mxu1 %v728_v1  ;;  %s856_s30 = smov (!%p172_p3, %s596_s30), 3  ;;  %v712_v21 = vld [vmem:[%s852_s1 + $0xb0] sm:$0xff]   ;;  %v715_v25 = vld [vmem:[%s852_s1 + $0xb8] sm:$0xff]   ;;  %s858_s13 = smov (!%p184_p4, %s756_s13), 1 }
   0xe   : > { %s681_s24 = smul.u32 12, %s856_s30  ;;  %s599_s18 = sshll.u32 %s856_s30, 3 }
   0xf   : > { %635 = vmatpush3.bf16.msra.mxu0 %v699_v8  ;;  %s182_s21 = scalar_lea.vmem %s853_s2, %s599_s18  ;;  %s600_s30 = sshll.u32 %s858_s13, 1 }
  0x10   : > { %666 = vmatpush3.bf16.msra.mxu1 %v700_v9  ;;  %636 = vmatprep.subr.bf16.mxu0 %v701_v10  ;;  %s176_s7 = scalar_lea.vmem %s851_s0, %s681_s24  ;;  %s187_s24 = scalar_lea.vmem %s854_s3, %s600_s30 }
  0x11   : > { %667 = vmatprep.subr.bf16.mxu1 %v728_v1  ;;  %v718_v23 = vld [vmem:[%s176_s7 + $0x4] ss:$12 sps:$4 sm:$0xff]   ;;  %v716_v26 = vld [vmem:[%s176_s7] ss:$12 sps:$4 sm:$0xff]   ;;  %v719_v27 = vld [vmem:[%s176_s7 + $0x8] ss:$12 sps:$4 sm:$0xff]  }
  0x12   : > { %433 = vmatprep.mubr.bf16.mxu0 %v718_v23 }
  0x13   : > { %637 = vmatpush3.bf16.msra.mxu0 %v702_v11 }
  0x14   : > { %668 = vmatpush3.bf16.msra.mxu1 %v703_v12  ;;  %638 = vmatprep.subr.bf16.mxu0 %v704_v13 }
  0x15   : > { %669 = vmatprep.subr.bf16.mxu1 %v728_v1 }
  0x17   : > { %639 = vmatpush3.bf16.msra.mxu0 %v705_v14 }
  0x18   : > { %670 = vmatpush3.bf16.msra.mxu1 %v706_v15  ;;  %640 = vmatprep.subr.bf16.mxu0 %v707_v16 }
  0x19   : > { %671 = vmatprep.subr.bf16.mxu1 %v728_v1 }
  0x1b   : > { %641 = vmatpush3.bf16.msra.mxu0 %v708_v17 }
  0x1c   : > { %672 = vmatpush3.bf16.msra.mxu1 %v709_v18  ;;  %642 = vmatprep.subr.bf16.mxu0 %v710_v19 }
  0x1d   : > { %673 = vmatprep.subr.bf16.mxu1 %v728_v1 }
  0x1f   : > { %643 = vmatpush3.bf16.msra.mxu0 %v711_v20 }
  0x20   : > { %674 = vmatpush3.bf16.msra.mxu1 %v712_v21  ;;  %644 = vmatprep.subr.bf16.mxu0 %v713_v22 }
  0x21   : > { %675 = vmatprep.subr.bf16.mxu1 %v728_v1 }
  0x23   : > { %645 = vmatpush3.bf16.msra.mxu0 %v714_v24 }
  0x24   : > { %676 = vmatpush3.bf16.msra.mxu1 %v715_v25 }
  0x26   : > { %434 = vmatmul.mubr.bf16.vlgmr.msra.gmra.mrb[0].mxu0 %v716_v26 }
  0x27   : > { %678 = vmatmul.mubr.bf16.vlgmr.msra.gmra.mrb[0].mxu1 %v719_v27 }
  0xf9   : > { %v646_v28 = vpop.f32.mrb[0].mxu0 }
  0xfa   : > { %v476_v29 = vpop.f32.mrb[0].mxu1  ;;  %v647_v30 = vpop.f32.mrb[1].mxu0 }
  0xfb   : > { %v648_v31 = vadd.f32 %v647_v30, %v646_v28  ;;  %v679_v32 = vpop.f32.mrb[1].mxu1  ;;  %v649_v33 = vpop.f32.mrb[2].mxu0 }
  0xfc   : > { %v479_v34 = vpop.f32.mrb[2].mxu1  ;;  %v650_v35 = vpop.f32.mrb[3].mxu0 }
  0xfd   : > { %v477_v36 = vadd.f32 %v648_v31, %v476_v29  ;;  %v651_v37 = vadd.f32 %v650_v35, %v649_v33  ;;  %v680_v38 = vpop.f32.mrb[3].mxu1 }
  0xff   : > { %483 = vst [vmem:[%s182_s21] sm:$0xff] %v477_v36  ;;  %v480_v39 = vadd.f32 %v651_v37, %v479_v34  ;;  %v492_v40 = vmul.f32 %v477_v36, %v477_v36 }
 0x101   : > { %484 = vst [vmem:[%s182_s21 + $0x8] sm:$0xff] %v480_v39  ;;  %v485_v41 = vadd.f32 %v480_v39, %v477_v36  ;;  %v493_v42 = vmul.f32 %v480_v39, %v480_v39 }
 0x103   : > { %v486_v43 = vrot.slane %v485_v41, 4  ;;  %v494_v44 = vadd.f32 %v493_v42, %v492_v40 }
 0x105   : > { %v487_v45 = vadd.f32 %v486_v43, %v485_v41  ;;  %v495_v46 = vrot.slane %v494_v44, 4 }
 0x107   : > { %v488_v47 = vrot.slane %v487_v45, 2  ;;  %v496_v48 = vadd.f32 %v495_v46, %v494_v44 }
 0x109   : > { %v489_v49 = vadd.f32 %v488_v47, %v487_v45  ;;  %v497_v50 = vrot.slane %v496_v48, 2 }
 0x10b   : > { %v490_v51 = vrot.slane %v489_v49, 1  ;;  %v498_v52 = vadd.f32 %v497_v50, %v496_v48 }
 0x10d   : > { %v499_v53 = vrot.slane %v498_v52, 1  ;;  %v491_v54 = vadd.f32 %v490_v51, %v489_v49 }
 0x10f   : > { %v500_v55 = vadd.f32 %v499_v53, %v498_v52 }
 0x111   : > { %v502_v56 = vsel %vm501_vm1, %v491_v54, %v500_v55 }
 0x112   : > { %503 = vst [vmem:[%s187_s24] sm:$0x3] %v502_v56 }
 0x113 PF: > { %s14_s12 = sadd.s32 1, %s726_s12  }
 0x114   : > { %p11_p5 = scmp.ge.s32.totalorder %s14_s12, 4  }
 0x116   :  { %13 = sbr.rel (!%p11_p5) target bundleno = 1 (0x1), region = 70 }

// kernel: encoder_forward_pallas.22
= control target key start
LH: loop header
LB: loop body
LE: loop exit
PB: predicated region body
PF: predicated region fallthrough
CT: control target
= control target key end

     0   :  { %s385_s15 = smov 0   ;;  %s421_s0 = inlined_call_operand.vmem [shape: f32[32,128], index: 0, kind: input, shape index: {}]   ;;  %s422_s1 = inlined_call_operand.vmem [shape: f32[2,2,128], index: 1, kind: input, shape index: {}]   ;;  %s423_s2 = inlined_call_operand.vmem [shape: f32[1,128], index: 2, kind: input, shape index: {}]   ;;  %s424_s3 = inlined_call_operand.vmem [shape: f32[1,128], index: 3, kind: input, shape index: {}]   ;;  %s425_s4 = inlined_call_operand.vmem [shape: f32[32,128], index: 4, kind: output, shape index: {}]  }
   0x1 LB: > { %s319_s16 = sadd.s32 4294967295, %s358_s15   ;;  %p323_p0 = scmp.ge.s32.totalorder %s358_s15, 1  ;;  %s358_s15 = sphi %s385_s15, %s14_s15  }
   0x2   : > { %p163_p1 = scmp.lt.s32.totalorder %s358_s15, 3 }
   0x4   : > { %p164_p2 = pnand %p323_p0, %p163_p1 }
   0x5   : > { %v201_v0 = vld [vmem:[%s422_s1] sm:$0x3] (!%p164_p2)  ;;  %v202_v1 = vld [vmem:[%s422_s1 + $0x2] sm:$0x3] (!%p164_p2)  ;;  %vm203_vm0 = vcmask (!%p164_p2), 1041408   ;;  %s324_s21 = sshll.u32 (!%p164_p2), %s319_s16, 1  ;;  %v218_v9 = vlaneseq (!%p164_p2) }
   0x6   : > { %167 = sbr.rel (%p164_p2) target bundleno = 70 (0x46), region = 36  ;;  %v204_v2 = vsel (!%p164_p2), %vm203_vm0, %v201_v0, 0.0  ;;  %v205_v3 = vsel (!%p164_p2), %vm203_vm0, %v202_v1, 0.0  ;;  %p190_p3 = scmp.lt.s32.totalorder (!%p164_p2), %s324_s21, 3  ;;  %v328_v17 = vld [vmem:[%s423_s2] ss:$0 sm:$0xff] (!%p164_p2) }
   0x7   : > { %v206_v4 = vadd.f32 (!%p164_p2), %v205_v3, %v204_v2  ;;  %v219_v12 = vshrl.u32 (!%p164_p2), %v218_v9, 7  ;;  %v329_v24 = vld [vmem:[%s424_s3] ss:$0 sm:$0xff] (!%p164_p2) }
   0x9   : > { %v207_v5 = vmul.f32 (!%p164_p2), 0.03125, %v206_v4  ;;  %v220_v13 = vsub.s32 (!%p164_p2), 0, %v219_v12  ;;  %v234_v18 = vsub.s32 (!%p164_p2), 1, %v219_v12 }
   0xb   : > { %v208_v6 = vmul.f32 (!%p164_p2), %v207_v5, %v207_v5  ;;  %v221_v14 = vrot.slane (!%p164_p2), %v207_v5, %v220_v13 }
   0xd   : > { %v210_v7 = vrot.slane %v208_v6, 7  ;;  %s427_s21 = smov (!%p190_p3, %s324_s21), 3 }
   0xe   : > { %s325_s22 = sshll.u32 %s427_s21, 3 }
   0xf   : > { %v212_v8 = vsub.f32 %v207_v5, %v210_v7  ;;  %s193_s25 = scalar_lea.vmem %s421_s0, %s325_s22  ;;  %s199_s6 = scalar_lea.vmem %s425_s4, %s325_s22 }
  0x10   : > { %v216_v15 = vld [vmem:[%s193_s25] sm:$0xff]  ;;  %v217_v16 = vld [vmem:[%s193_s25 + $0x8] sm:$0xff] }
  0x11   : > { %v213_v10 = vmax.f32 %v212_v8, 0.0  ;;  %v222_v20 = vsub.f32 %v216_v15, %v221_v14  ;;  %v223_v21 = vsub.f32 %v217_v16, %v221_v14 }
  0x13   : > { %v214_v11 = vadd.f32 1e-05, %v213_v10 }
  0x15   : > { %342 = vrsqrt.f32 %v214_v11 }
  0x1f   : > { %v343_v19 = vpop.eup %342 }
  0x20   : > { %v231_v22 = vmul.f32 %v343_v19, %v328_v17 }
  0x22   : > { %v235_v23 = vrot.slane %v231_v22, %v234_v18 }
  0x24   : > { %v236_v25 = vmul.f32 %v235_v23, %v222_v20  ;;  %v237_v26 = vmul.f32 %v235_v23, %v223_v21 }
  0x26   : > { %v245_v27 = vadd.f32 %v329_v24, %v236_v25  ;;  %v246_v28 = vadd.f32 %v329_v24, %v237_v26 }
  0x28   : > { %v330_v29 = vmul.f32 -1.442695, %v245_v27  ;;  %v331_v30 = vmul.f32 -1.442695, %v246_v28 }
  0x2a   : > { %344 = vpow2.f32 %v330_v29 }
  0x2b   : > { %346 = vpow2.f32 %v331_v30 }
  0x34   : > { %v345_v31 = vpop.eup %344 }
  0x35   : > { %v347_v32 = vpop.eup %346  ;;  %v253_v33 = vadd.f32 1.0, %v345_v31 }
  0x36   : > { %v254_v34 = vadd.f32 1.0, %v347_v32 }
  0x37   : > { %348 = vrcp.f32 %v253_v33 }
  0x38   : > { %350 = vrcp.f32 %v254_v34 }
  0x41   : > { %v349_v35 = vpop.eup %348 }
  0x42   : > { %v351_v36 = vpop.eup %350  ;;  %v259_v37 = vmul.f32 %v349_v35, %v245_v27 }
  0x43   : > { %v260_v38 = vmul.f32 %v351_v36, %v246_v28 }
  0x44   : > { %261 = vst [vmem:[%s199_s6] sm:$0xff] %v259_v37 }
  0x45   : > { %262 = vst [vmem:[%s199_s6 + $0x8] sm:$0xff] %v260_v38 }
  0x46 PF: > { %s14_s15 = sadd.s32 1, %s358_s15  }
  0x47   : > { %p11_p4 = scmp.ge.s32.totalorder %s14_s15, 4  }
  0x49   :  { %13 = sbr.rel (!%p11_p4) target bundleno = 1 (0x1), region = 66 }

// kernel: encoder_forward_pallas.26
= control target key start
LH: loop header
LB: loop body
LE: loop exit
PB: predicated region body
PF: predicated region fallthrough
CT: control target
= control target key end

     0   :  { %v29_v5 = vlaneseq  ;;  %s116_s1 = inlined_call_operand.vmem [shape: f32[1,2,128], index: 1, kind: input, shape index: {}]   ;;  %s117_s0 = inlined_call_operand.vmem [shape: f32[8,128], index: 0, kind: input, shape index: {}]   ;;  %s118_s2 = inlined_call_operand.vmem [shape: f32[1,128], index: 2, kind: input, shape index: {}]   ;;  %s119_s3 = inlined_call_operand.vmem [shape: f32[1,128], index: 3, kind: input, shape index: {}]   ;;  %s120_s4 = inlined_call_operand.vmem [shape: f32[8,128], index: 4, kind: output, shape index: {}]  }
   0x1   :  { %v17_v0 = vld [vmem:[%s116_s1] sm:$0x3] }
   0x2   :  { %v19_v1 = vmul.f32 0.125, %v17_v0  ;;  %v30_v8 = vshrl.u32 %v29_v5, 7  ;;  %v28_v11 = vld [vmem:[%s117_s0] sm:$0xff] }
   0x3   :  { %v67_v12 = vld [vmem:[%s118_s2] ss:$0 sm:$0xff] }
   0x4   :  { %v20_v2 = vmul.f32 %v19_v1, %v19_v1  ;;  %v31_v9 = vsub.s32 0, %v30_v8  ;;  %v44_v13 = vsub.s32 1, %v30_v8  ;;  %v68_v18 = vld [vmem:[%s119_s3] ss:$0 sm:$0xff] }
   0x6   :  { %v22_v3 = vrot.slane %v20_v2, 7  ;;  %v32_v10 = vrot.slane %v19_v1, %v31_v9 }
   0x8   :  { %v24_v4 = vsub.f32 %v19_v1, %v22_v3  ;;  %v33_v15 = vsub.f32 %v28_v11, %v32_v10 }
   0xa   :  { %v25_v6 = vmax.f32 %v24_v4, 0.0 }
   0xc   :  { %v26_v7 = vadd.f32 1e-05, %v25_v6 }
   0xe   :  { %70 = vrsqrt.f32 %v26_v7 }
  0x18   :  { %v71_v14 = vpop.eup %70 }
  0x19   :  { %v41_v16 = vmul.f32 %v71_v14, %v67_v12 }
  0x1b   :  { %v45_v17 = vrot.slane %v41_v16, %v44_v13 }
  0x1d   :  { %v46_v19 = vmul.f32 %v45_v17, %v33_v15 }
  0x1f   :  { %v54_v20 = vadd.f32 %v68_v18, %v46_v19 }
  0x21   :  { %v69_v21 = vmul.f32 -1.442695, %v54_v20 }
  0x23   :  { %72 = vpow2.f32 %v69_v21 }
  0x2d   :  { %v73_v22 = vpop.eup %72 }
  0x2e   :  { %v58_v23 = vadd.f32 1.0, %v73_v22 }
  0x30   :  { %74 = vrcp.f32 %v58_v23 }
  0x3a   :  { %v75_v24 = vpop.eup %74 }
  0x3b   :  { %v61_v25 = vmul.f32 %v75_v24, %v54_v20 }
  0x3d   :  { %62 = vst [vmem:[%s120_s4] sm:$0xff] %v61_v25 }

// kernel: encoder_forward_pallas.25
= control target key start
LH: loop header
LB: loop body
LE: loop exit
PB: predicated region body
PF: predicated region fallthrough
CT: control target
= control target key end

     0   :  { %v665_v36 = vmov 0.0   ;;  %vm666_vm0 = vmmov 0   ;;  %vm489_vm1 = vcmask 1040384   ;;  %s822_s1 = inlined_call_operand.vmem [shape: bf16[640,128], index: 1, kind: input, shape index: {}]   ;;  %s823_s0 = inlined_call_operand.vmem [shape: bf16[8,640], index: 0, kind: input, shape index: {}]   ;;  %s824_s2 = inlined_call_operand.vmem [shape: f32[8,128], index: 2, kind: output, shape index: {0}]   ;;  %s825_s3 = inlined_call_operand.vmem [shape: f32[1,2,128], index: 3, kind: output, shape index: {1}]  }
   0x1   :  { %v620_v0 = vld [vmem:[%s822_s1 + $0x40] sm:$0xff]   ;;  %v624_v4 = vld [vmem:[%s822_s1 + $0x48] sm:$0xff]   ;;  %v628_v8 = vld [vmem:[%s822_s1 + $0x50] sm:$0xff]  }
   0x2   :  { %v621_v1 = vld [vmem:[%s822_s1 + $0xc0] sm:$0xff]   ;;  %545 = vmatprep.subr.bf16.mxu0 %v620_v0  ;;  %v625_v5 = vld [vmem:[%s822_s1 + $0xc8] sm:$0xff]   ;;  %v629_v9 = vld [vmem:[%s822_s1 + $0xd0] sm:$0xff]  }
   0x3   :  { %v622_v2 = vld [vmem:[%s822_s1] sm:$0xff]   ;;  %567 = vmatprep.subr.bf16.mxu1 %v621_v1  ;;  %v626_v6 = vld [vmem:[%s822_s1 + $0x8] sm:$0xff]   ;;  %v630_v10 = vld [vmem:[%s822_s1 + $0x10] sm:$0xff]  }
   0x4   :  { %v623_v3 = vld [vmem:[%s822_s1 + $0x80] sm:$0xff]   ;;  %546 = vmatpush3.bf16.msra.mxu0 %v622_v2  ;;  %v627_v7 = vld [vmem:[%s822_s1 + $0x88] sm:$0xff]   ;;  %v631_v11 = vld [vmem:[%s822_s1 + $0x90] sm:$0xff]  }
   0x5   :  { %568 = vmatpush3.bf16.msra.mxu1 %v623_v3  ;;  %547 = vmatprep.subr.bf16.mxu0 %v624_v4  ;;  %v632_v12 = vld [vmem:[%s822_s1 + $0x58] sm:$0xff]   ;;  %v636_v16 = vld [vmem:[%s822_s1 + $0x60] sm:$0xff]   ;;  %v640_v20 = vld [vmem:[%s822_s1 + $0x68] sm:$0xff]  }
   0x6   :  { %569 = vmatprep.subr.bf16.mxu1 %v625_v5  ;;  %v633_v13 = vld [vmem:[%s822_s1 + $0xd8] sm:$0xff]   ;;  %v637_v17 = vld [vmem:[%s822_s1 + $0xe0] sm:$0xff]   ;;  %v641_v21 = vld [vmem:[%s822_s1 + $0xe8] sm:$0xff]  }
   0x7   :  { %v634_v14 = vld [vmem:[%s822_s1 + $0x18] sm:$0xff]   ;;  %v638_v18 = vld [vmem:[%s822_s1 + $0x20] sm:$0xff]   ;;  %v642_v22 = vld [vmem:[%s822_s1 + $0x28] sm:$0xff]  }
   0x8   :  { %548 = vmatpush3.bf16.msra.mxu0 %v626_v6  ;;  %v635_v15 = vld [vmem:[%s822_s1 + $0x98] sm:$0xff]   ;;  %v639_v19 = vld [vmem:[%s822_s1 + $0xa0] sm:$0xff]   ;;  %v643_v23 = vld [vmem:[%s822_s1 + $0xa8] sm:$0xff]  }
   0x9   :  { %570 = vmatpush3.bf16.msra.mxu1 %v627_v7  ;;  %549 = vmatprep.subr.bf16.mxu0 %v628_v8  ;;  %v644_v24 = vld [vmem:[%s822_s1 + $0x70] sm:$0xff]   ;;  %v648_v28 = vld [vmem:[%s822_s1 + $0x78] sm:$0xff]   ;;  %v14_v32 = vld [vmem:[%s823_s0] sm:$0xff] }
   0xa   :  { %571 = vmatprep.subr.bf16.mxu1 %v629_v9  ;;  %v645_v25 = vld [vmem:[%s822_s1 + $0xf0] sm:$0xff]   ;;  %v649_v29 = vld [vmem:[%s822_s1 + $0xf8] sm:$0xff]   ;;  %v500_v33 = vcombine.low %v14_v32, %v14_v32  ;;  %v501_v34 = vcombine.high %v14_v32, %v14_v32  ;;  %v15_v35 = vld [vmem:[%s823_s0 + $0x8] sm:$0xff] }
   0xb   :  { %v646_v26 = vld [vmem:[%s822_s1 + $0x30] sm:$0xff]   ;;  %v650_v30 = vld [vmem:[%s822_s1 + $0x38] sm:$0xff]   ;;  %v502_v37 = vcombine.low %v15_v35, %v15_v35  ;;  %v503_v38 = vcombine.high %v15_v35, %v15_v35  ;;  %v657_v39 = vld [vmem:[%s822_s1 + $0x100] sm:$0xff]  }
   0xc   :  { %550 = vmatpush3.bf16.msra.mxu0 %v630_v10  ;;  %v647_v27 = vld [vmem:[%s822_s1 + $0xb0] sm:$0xff]   ;;  %v651_v31 = vld [vmem:[%s822_s1 + $0xb8] sm:$0xff]   ;;  %387 = vmatprep.mubr.bf16.mxu0 %v501_v34  ;;  %v658_v40 = vld [vmem:[%s822_s1 + $0x108] sm:$0xff]  }
   0xd   :  { %572 = vmatpush3.bf16.msra.mxu1 %v631_v11  ;;  %551 = vmatprep.subr.bf16.mxu0 %v632_v12  ;;  %v659_v41 = vld [vmem:[%s822_s1 + $0x110] sm:$0xff]   ;;  %v660_v42 = vld [vmem:[%s822_s1 + $0x118] sm:$0xff]   ;;  %v661_v43 = vld [vmem:[%s822_s1 + $0x120] sm:$0xff]  }
   0xe   :  { %573 = vmatprep.subr.bf16.mxu1 %v633_v13  ;;  %427 = vmatprep.mubr.bf16.mxu1 %v503_v38  ;;  %v662_v44 = vld [vmem:[%s822_s1 + $0x128] sm:$0xff]   ;;  %v663_v45 = vld [vmem:[%s822_s1 + $0x130] sm:$0xff]   ;;  %v664_v46 = vld [vmem:[%s822_s1 + $0x138] sm:$0xff]  }
   0xf   :  { %v654_v47 = vld [vmem:[%s823_s0 + $0x10] ss:$0 sps:$4 sm:$0xff]  }
  0x10   :  { %552 = vmatpush3.bf16.msra.mxu0 %v634_v14 }
  0x11   :  { %574 = vmatpush3.bf16.msra.mxu1 %v635_v15  ;;  %553 = vmatprep.subr.bf16.mxu0 %v636_v16 }
  0x12   :  { %575 = vmatprep.subr.bf16.mxu1 %v637_v17 }
  0x14   :  { %554 = vmatpush3.bf16.msra.mxu0 %v638_v18 }
  0x15   :  { %576 = vmatpush3.bf16.msra.mxu1 %v639_v19  ;;  %555 = vmatprep.subr.bf16.mxu0 %v640_v20 }
  0x16   :  { %577 = vmatprep.subr.bf16.mxu1 %v641_v21 }
  0x18   :  { %556 = vmatpush3.bf16.msra.mxu0 %v642_v22 }
  0x19   :  { %578 = vmatpush3.bf16.msra.mxu1 %v643_v23  ;;  %557 = vmatprep.subr.bf16.mxu0 %v644_v24 }
  0x1a   :  { %579 = vmatprep.subr.bf16.mxu1 %v645_v25 }
  0x1c   :  { %558 = vmatpush3.bf16.msra.mxu0 %v646_v26 }
  0x1d   :  { %580 = vmatpush3.bf16.msra.mxu1 %v647_v27  ;;  %559 = vmatprep.subr.bf16.mxu0 %v648_v28 }
  0x1e   :  { %581 = vmatprep.subr.bf16.mxu1 %v649_v29 }
  0x20   :  { %560 = vmatpush3.bf16.msra.mxu0 %v650_v30 }
  0x21   :  { %582 = vmatpush3.bf16.msra.mxu1 %v651_v31  ;;  %598 = vmatprep.subr.bf16.mxu0 %v665_v36 }
  0x23   :  { %388 = vmatmul.mubr.bf16.vlgmr.msra.gmra.mrb[0].mxu0 %v500_v33 }
  0x24   :  { %428 = vmatmul.mubr.bf16.vlgmr.msra.gmra.mrb[0].mxu1 %v502_v37  ;;  %599 = vmatpush3.bf16.msra.mxu0 %v657_v39 }
  0x25   :  { %600 = vmatprep.subr.bf16.mxu0 %v665_v36  ;;  %614 = vmatprep.mubr.msk.bf16.mxu0 %vm666_vm0, %v665_v36 }
  0x28   :  { %601 = vmatpush3.bf16.msra.mxu0 %v658_v40 }
  0x29   :  { %602 = vmatprep.subr.bf16.mxu0 %v665_v36 }
  0x2c   :  { %603 = vmatpush3.bf16.msra.mxu0 %v659_v41 }
  0x2d   :  { %604 = vmatprep.subr.bf16.mxu0 %v665_v36 }
  0x30   :  { %605 = vmatpush3.bf16.msra.mxu0 %v660_v42 }
  0x31   :  { %606 = vmatprep.subr.bf16.mxu0 %v665_v36 }
  0x34   :  { %607 = vmatpush3.bf16.msra.mxu0 %v661_v43 }
  0x35   :  { %608 = vmatprep.subr.bf16.mxu0 %v665_v36 }
  0x38   :  { %609 = vmatpush3.bf16.msra.mxu0 %v662_v44 }
  0x39   :  { %610 = vmatprep.subr.bf16.mxu0 %v665_v36 }
  0x3c   :  { %611 = vmatpush3.bf16.msra.mxu0 %v663_v45 }
  0x3d   :  { %612 = vmatprep.subr.bf16.mxu0 %v665_v36 }
  0x40   :  { %613 = vmatpush3.bf16.msra.mxu0 %v664_v46 }
  0x43   :  { %615 = vmatmul.mubr.bf16.vlgmr.msra.gmra.mrb[4].mxu0 %v654_v47 }
  0xf6   :  { %v561_v48 = vpop.f32.mrb[0].mxu0 }
  0xf7   :  { %v583_v49 = vpop.f32.mrb[0].mxu1  ;;  %v562_v50 = vpop.f32.mrb[1].mxu0 }
  0xf8   :  { %v563_v51 = vadd.f32 %v562_v50, %v561_v48  ;;  %v584_v52 = vpop.f32.mrb[1].mxu1  ;;  %v564_v53 = vpop.f32.mrb[2].mxu0 }
  0xf9   :  { %v585_v54 = vadd.f32 %v584_v52, %v583_v49  ;;  %v565_v55 = vpop.f32.mrb[3].mxu0  ;;  %v586_v56 = vpop.f32.mrb[2].mxu1 }
  0xfa   :  { %v587_v57 = vpop.f32.mrb[3].mxu1 }
  0xfb   :  { %v430_v58 = vadd.f32 %v585_v54, %v563_v51 }
 0x116   :  { %v469_v59 = vpop.f32.mrb[4].mxu0 }
 0x117   :  { %v470_v60 = vadd.f32 %v469_v59, %v430_v58  ;;  %v616_v61 = vpop.f32.mrb[5].mxu0 }
 0x118   :  { %v472_v62 = vpop.f32.mrb[6].mxu0 }
 0x119   :  { %475 = vst [vmem:[%s824_s2] sm:$0xff] %v470_v60  ;;  %v476_v63 = vrot.slane %v470_v60, 4  ;;  %v482_v0 = vmul.f32 %v470_v60, %v470_v60  ;;  %v617_v1 = vpop.f32.mrb[7].mxu0 }
 0x11b   :  { %v477_v2 = vadd.f32 %v476_v63, %v470_v60  ;;  %v483_v3 = vrot.slane %v482_v0, 4 }
 0x11d   :  { %v478_v4 = vrot.slane %v477_v2, 2  ;;  %v484_v5 = vadd.f32 %v483_v3, %v482_v0 }
 0x11f   :  { %v479_v6 = vadd.f32 %v478_v4, %v477_v2  ;;  %v485_v7 = vrot.slane %v484_v5, 2 }
 0x121   :  { %v480_v8 = vrot.slane %v479_v6, 1  ;;  %v486_v9 = vadd.f32 %v485_v7, %v484_v5 }
 0x123   :  { %v487_v10 = vrot.slane %v486_v9, 1  ;;  %v481_v11 = vadd.f32 %v480_v8, %v479_v6 }
 0x125   :  { %v488_v12 = vadd.f32 %v487_v10, %v486_v9 }
 0x127   :  { %v490_v13 = vsel %vm489_vm1, %v481_v11, %v488_v12 }
 0x128   :  { %491 = vst [vmem:[%s825_s3] sm:$0x3] %v490_v13 }

// kernel: encoder_forward_pallas.27
= control target key start
LH: loop header
LB: loop body
LE: loop exit
PB: predicated region body
PF: predicated region fallthrough
CT: control target
= control target key end

     0   :  { %v690_v35 = vmov 0.0   ;;  %vm691_vm0 = vmmov 0   ;;  %s857_s0 = inlined_call_operand.vmem [shape: bf16[8,640], index: 0, kind: input, shape index: {}]   ;;  %s858_s1 = inlined_call_operand.vmem [shape: bf16[640,128], index: 1, kind: input, shape index: {}]   ;;  %s859_s2 = inlined_call_operand.vmem [shape: f32[1,128], index: 2, kind: input, shape index: {}]   ;;  %s860_s3 = inlined_call_operand.hbm [shape: f32[8,128], index: 3, kind: output, shape index: {}]  }
   0x1   :  { %v621_v0 = vld [vmem:[%s858_s1 + $0x40] sm:$0xff]   ;;  %v625_v4 = vld [vmem:[%s858_s1 + $0x48] sm:$0xff]   ;;  %v629_v8 = vld [vmem:[%s858_s1 + $0x50] sm:$0xff]  }
   0x2   :  { %v622_v1 = vld [vmem:[%s858_s1] sm:$0xff]   ;;  %545 = vmatprep.subr.bf16.mxu0 %v621_v0  ;;  %v626_v5 = vld [vmem:[%s858_s1 + $0x8] sm:$0xff]   ;;  %v630_v9 = vld [vmem:[%s858_s1 + $0x10] sm:$0xff]  }
   0x3   :  { %v623_v2 = vld [vmem:[%s858_s1 + $0xc0] sm:$0xff]   ;;  %546 = vmatpush3.bf16.msra.mxu0 %v622_v1  ;;  %v627_v6 = vld [vmem:[%s858_s1 + $0xc8] sm:$0xff]   ;;  %v631_v10 = vld [vmem:[%s858_s1 + $0xd0] sm:$0xff]  }
   0x4   :  { %v624_v3 = vld [vmem:[%s858_s1 + $0x80] sm:$0xff]   ;;  %567 = vmatprep.subr.bf16.mxu1 %v623_v2  ;;  %547 = vmatprep.subr.bf16.mxu0 %v625_v4  ;;  %v628_v7 = vld [vmem:[%s858_s1 + $0x88] sm:$0xff]   ;;  %v632_v11 = vld [vmem:[%s858_s1 + $0x90] sm:$0xff]  }
   0x5   :  { %568 = vmatpush3.bf16.msra.mxu1 %v624_v3  ;;  %v633_v12 = vld [vmem:[%s858_s1 + $0x58] sm:$0xff]   ;;  %v637_v16 = vld [vmem:[%s858_s1 + $0x60] sm:$0xff]   ;;  %v641_v20 = vld [vmem:[%s858_s1 + $0x68] sm:$0xff]  }
   0x6   :  { %569 = vmatprep.subr.bf16.mxu1 %v627_v6  ;;  %v634_v13 = vld [vmem:[%s858_s1 + $0x18] sm:$0xff]   ;;  %v638_v17 = vld [vmem:[%s858_s1 + $0x20] sm:$0xff]   ;;  %v642_v21 = vld [vmem:[%s858_s1 + $0x28] sm:$0xff]  }
   0x7   :  { %548 = vmatpush3.bf16.msra.mxu0 %v626_v5  ;;  %v635_v14 = vld [vmem:[%s858_s1 + $0xd8] sm:$0xff]   ;;  %v639_v18 = vld [vmem:[%s858_s1 + $0xe0] sm:$0xff]   ;;  %v643_v22 = vld [vmem:[%s858_s1 + $0xe8] sm:$0xff]  }
   0x8   :  { %549 = vmatprep.subr.bf16.mxu0 %v629_v8  ;;  %v636_v15 = vld [vmem:[%s858_s1 + $0x98] sm:$0xff]   ;;  %v640_v19 = vld [vmem:[%s858_s1 + $0xa0] sm:$0xff]   ;;  %v644_v23 = vld [vmem:[%s858_s1 + $0xa8] sm:$0xff]  }
   0x9   :  { %570 = vmatpush3.bf16.msra.mxu1 %v628_v7  ;;  %v645_v24 = vld [vmem:[%s858_s1 + $0x70] sm:$0xff]   ;;  %v649_v28 = vld [vmem:[%s858_s1 + $0x78] sm:$0xff]   ;;  %v16_v31 = vld [vmem:[%s857_s0] sm:$0xff] }
   0xa   :  { %571 = vmatprep.subr.bf16.mxu1 %v631_v10  ;;  %v646_v25 = vld [vmem:[%s858_s1 + $0x30] sm:$0xff]   ;;  %v650_v29 = vld [vmem:[%s858_s1 + $0x38] sm:$0xff]   ;;  %v500_v32 = vcombine.low %v16_v31, %v16_v31  ;;  %v501_v33 = vcombine.high %v16_v31, %v16_v31  ;;  %v17_v36 = vld [vmem:[%s857_s0 + $0x8] sm:$0xff] }
   0xb   :  { %550 = vmatpush3.bf16.msra.mxu0 %v630_v9  ;;  %v647_v26 = vld [vmem:[%s858_s1 + $0xf0] sm:$0xff]   ;;  %v651_v30 = vld [vmem:[%s858_s1 + $0xf8] sm:$0xff]   ;;  %v502_v37 = vcombine.low %v17_v36, %v17_v36  ;;  %v503_v38 = vcombine.high %v17_v36, %v17_v36  ;;  %v657_v39 = vld [vmem:[%s858_s1 + $0x100] sm:$0xff]  }
   0xc   :  { %551 = vmatprep.subr.bf16.mxu0 %v633_v12  ;;  %v648_v27 = vld [vmem:[%s858_s1 + $0xb0] sm:$0xff]   ;;  %v654_v34 = vld [vmem:[%s858_s1 + $0xb8] sm:$0xff]   ;;  %396 = vmatprep.mubr.bf16.mxu0 %v501_v33  ;;  %v658_v40 = vld [vmem:[%s858_s1 + $0x108] sm:$0xff]  }
   0xd   :  { %572 = vmatpush3.bf16.msra.mxu1 %v632_v11  ;;  %436 = vmatprep.mubr.bf16.mxu1 %v503_v38  ;;  %v659_v41 = vld [vmem:[%s858_s1 + $0x110] sm:$0xff]  }
   0xe   :  { %573 = vmatprep.subr.bf16.mxu1 %v635_v14 }
   0xf   :  { %552 = vmatpush3.bf16.msra.mxu0 %v634_v13 }
  0x10   :  { %553 = vmatprep.subr.bf16.mxu0 %v637_v16 }
  0x11   :  { %574 = vmatpush3.bf16.msra.mxu1 %v636_v15 }
  0x12   :  { %575 = vmatprep.subr.bf16.mxu1 %v639_v18 }
  0x13   :  { %554 = vmatpush3.bf16.msra.mxu0 %v638_v17 }
  0x14   :  { %555 = vmatprep.subr.bf16.mxu0 %v641_v20 }
  0x15   :  { %576 = vmatpush3.bf16.msra.mxu1 %v640_v19 }
  0x16   :  { %577 = vmatprep.subr.bf16.mxu1 %v643_v22 }
  0x17   :  { %556 = vmatpush3.bf16.msra.mxu0 %v642_v21 }
  0x18   :  { %557 = vmatprep.subr.bf16.mxu0 %v645_v24 }
  0x19   :  { %578 = vmatpush3.bf16.msra.mxu1 %v644_v23 }
  0x1a   :  { %579 = vmatprep.subr.bf16.mxu1 %v647_v26 }
  0x1b   :  { %558 = vmatpush3.bf16.msra.mxu0 %v646_v25 }
  0x1c   :  { %559 = vmatprep.subr.bf16.mxu0 %v649_v28 }
  0x1d   :  { %580 = vmatpush3.bf16.msra.mxu1 %v648_v27 }
  0x1e   :  { %581 = vmatprep.subr.bf16.mxu1 %v651_v30 }
  0x1f   :  { %560 = vmatpush3.bf16.msra.mxu0 %v650_v29 }
  0x20   :  { %598 = vmatprep.subr.bf16.mxu0 %v690_v35 }
  0x21   :  { %582 = vmatpush3.bf16.msra.mxu1 %v654_v34 }
  0x22   :  { %397 = vmatmul.mubr.bf16.vlgmr.msra.gmra.mrb[0].mxu0 %v500_v32 }
  0x23   :  { %599 = vmatpush3.bf16.msra.mxu0 %v657_v39  ;;  %614 = vmatprep.mubr.msk.bf16.mxu0 %vm691_vm0, %v690_v35 }
  0x24   :  { %437 = vmatmul.mubr.bf16.vlgmr.msra.gmra.mrb[0].mxu1 %v502_v37  ;;  %600 = vmatprep.subr.bf16.mxu0 %v690_v35 }
  0x27   :  { %601 = vmatpush3.bf16.msra.mxu0 %v658_v40 }
  0x28   :  { %602 = vmatprep.subr.bf16.mxu0 %v690_v35 }
  0x29   :  { %8 = vsyncpa [#allocation3], 0  ;;  %v660_v42 = vld [vmem:[%s858_s1 + $0x118] sm:$0xff]   ;;  %v661_v43 = vld [vmem:[%s858_s1 + $0x120] sm:$0xff]  }
  0x2a   :  { %v662_v44 = vld [vmem:[%s858_s1 + $0x128] sm:$0xff]   ;;  %v663_v45 = vld [vmem:[%s858_s1 + $0x130] sm:$0xff]   ;;  %v664_v46 = vld [vmem:[%s858_s1 + $0x138] sm:$0xff]   ;;  %s692_s1 = smov [#allocation2]  }
  0x2b   :  { %603 = vmatpush3.bf16.msra.mxu0 %v659_v41  ;;  %v665_v47 = vld [vmem:[%s857_s0 + $0x10] ss:$0 sps:$4 sm:$0xff]   ;;  %v499_v49 = vld [vmem:[%s859_s2] ss:$0 sm:$0xff]  ;;  %s491_s0 = sshll.u32 %s692_s1, 4  ;;  %s492_s0 = int_to_ptr.vmem [resolvable:$true] %s491_s0 }
  0x2c   :  { %604 = vmatprep.subr.bf16.mxu0 %v690_v35  ;;  %s666_s2 = scalar_lea.vmem %s492_s0, 128  ;;  %p671_p1 = scmp.lt.s32.totalorder %s492_s0, %s492_s0 }
  0x2d   :  { %p667_p0 = scmp.ne.s32.totalorder %s492_s0, %s666_s2  ;;  %p672_p2 = scmp.lt.s32.totalorder %s666_s2, %s666_s2 }
  0x2f   :  { %605 = vmatpush3.bf16.msra.mxu0 %v660_v42  ;;  %p673_p3 = por %p672_p2, %p671_p1 }
  0x30   :  { %606 = vmatprep.subr.bf16.mxu0 %v690_v35 }
  0x31   :  { %p674_p4 = pnand %p673_p3, %p667_p0 }
  0x33   :  { %607 = vmatpush3.bf16.msra.mxu0 %v661_v43 }
  0x34   :  { %608 = vmatprep.subr.bf16.mxu0 %v690_v35 }
  0x37   :  { %609 = vmatpush3.bf16.msra.mxu0 %v662_v44 }
  0x38   :  { %610 = vmatprep.subr.bf16.mxu0 %v690_v35 }
  0x3b   :  { %611 = vmatpush3.bf16.msra.mxu0 %v663_v45 }
  0x3c   :  { %612 = vmatprep.subr.bf16.mxu0 %v690_v35 }
  0x3f   :  { %613 = vmatpush3.bf16.msra.mxu0 %v664_v46 }
  0x42   :  { %615 = vmatmul.mubr.bf16.vlgmr.msra.gmra.mrb[4].mxu0 %v665_v47 }
  0xf5   :  { %v561_v48 = vpop.f32.mrb[0].mxu0 }
  0xf6   :  { %v562_v50 = vpop.f32.mrb[1].mxu0 }
  0xf7   :  { %v563_v51 = vadd.f32 %v562_v50, %v561_v48  ;;  %v564_v52 = vpop.f32.mrb[2].mxu0  ;;  %v583_v53 = vpop.f32.mrb[0].mxu1 }
  0xf8   :  { %v565_v54 = vpop.f32.mrb[3].mxu0  ;;  %v584_v55 = vpop.f32.mrb[1].mxu1 }
  0xf9   :  { %v399_v56 = vadd.f32 %v563_v51, %v499_v49  ;;  %v585_v57 = vadd.f32 %v584_v55, %v583_v53  ;;  %v586_v58 = vpop.f32.mrb[2].mxu1 }
  0xfa   :  { %v587_v59 = vpop.f32.mrb[3].mxu1 }
  0xfb   :  { %v439_v60 = vadd.f32 %v585_v57, %v399_v56 }
 0x115   :  { %v478_v61 = vpop.f32.mrb[4].mxu0 }
 0x116   :  { %v479_v62 = vadd.f32 %v478_v61, %v439_v60  ;;  %v616_v63 = vpop.f32.mrb[5].mxu0 }
 0x117   :  { %v481_v0 = vpop.f32.mrb[6].mxu0 }
 0x118   :  { %484 = vst [vmem:[#allocation2] sm:$0xff] %v479_v62  ;;  %v617_v1 = vpop.f32.mrb[7].mxu0 }
 0x119   :  { %677 = shalt.err (!%p674_p4)
}
 0x11a   :  { %s678_s21 = scalar_lea.hbm %s860_s3, 128 }
 0x11b   :  { %p679_p5 = scmp.ne.s32.totalorder %s860_s3, %s678_s21  ;;  %p682_p6 = scmp.lt.u32.totalorder %s678_s21, %s860_s3 }
 0x11d   :  { %p684_p7 = pnand %p682_p6, %p679_p5 }
 0x11f   :  { %687 = shalt.err (!%p684_p7)
}
 0x120   :  { %494 = dma.vmem_to_hbm [thread:$0]  %s492_s0, 128, %s860_s3, [#allocation3]  }
 0x121   :  { %688 = dma.done.wait [#allocation3], 128  }
 0x122   :  { %689 = vsyncadd [#allocation3], 4294967168 }
 0x123   :  { %498 = vsyncpa [#allocation3], 1 }

</bundles_post_ra>
